<compile_context>
chip_gen: v7x
topology: tpu7x:2x2x1
jax: 0.10.0
libtpu: 0.0.40
codegen_flags: <defaults>
</compile_context>

<pallas_src>
import functools
import numpy as np
import jax
import jax.numpy as jnp
from jax import lax
from jax.experimental import pallas as pl
from jax.experimental.pallas import tpu as pltpu

NB = 7        # outer Bottle2neck blocks (Nes_ratio[0] - 1)
NI = 7        # inner res2net iterations per block (scale - 1)
EPS = 1e-5    # BatchNorm eps

_DIF5 = (-0.2, -0.1, 0.0, 0.1, 0.2)   # diflayer fixed k=5 kernel (taps t-2 .. t+2)
_DIF3 = (-0.5, 0.0, 0.5)              # diflayer fixed k=3 kernel (taps t-1 .. t+1)
_D2ROW = {-2: 0, -1: 1, 1: 2, 2: 3}   # time-shift offset -> row of the mask param

# Lane layouts used below
# -----------------------
#  h96 / outb / sp / residual : PyTorch channel order 0..95 (bn1 / conv3 input order).
#  inner slot state s96       : lane = 32*m + 4*s + c  <->  slot s (0..7), diflayer2
#                               output channel 4*m + c (m=0: conv, m=1: d5, m=2: d3).
#  inner conv input cin       : [carry (96 lanes, layout above) | new 12-ch slot spx[j]
#                               in PyTorch order]; at j==0 carry = [spx[7] | zeros].
#  wc (49, 3, 108, 32)        : Conv2d(12->4,(3,1)) folded onto that layout, dead slots
#                               zeroed, output lane = 4*s + c_out.


# ----------------------------------------------------------------------------- kernel
def _make_kernel(T, Bt):
    M = Bt * T
    f32, bf16 = jnp.float32, jnp.bfloat16

    def kernel(x_ref, tm_ref,
               c1w_ref, c1b_ref, bn1p_ref,
               wc_ref, cb_ref, ibnp_ref, rw_ref,
               c3w_ref, c3b_ref, bn3p_ref,
               sew1_ref, seb1_ref, sew2_ref, seb2_ref,
               obnp_ref, fbnp_ref, fcw_ref, fcb_ref,
               out_ref):

        def mm(a, w):                       # MXU matmul: bf16 operands, f32 accumulate
            return jnp.dot(a.astype(bf16), w, preferred_element_type=f32)

        # Precomputed boundary masks for time shifts (one (M,1) row per offset).
        tmask = [tm_ref[k] for k in range(4)]

        def tshift(x, d):
            # y[t] = x[t + d], zero outside the frame / across stacked batch elements.
            if d == 0:
                return x
            return pltpu.roll(x, (-d) % M, axis=0) * tmask[_D2ROW[d]]

        def dif_convs(h):                   # fixed depthwise k=5 / k=3 'same' time convs
            hm2, hm1 = tshift(h, -2), tshift(h, -1)
            hp1, hp2 = tshift(h, 1), tshift(h, 2)
            d1 = _DIF5[0] * hm2 + _DIF5[1] * hm1 + _DIF5[3] * hp1 + _DIF5[4] * hp2
            d2 = _DIF3[0] * hm1 + _DIF3[2] * hp1
            return d1, d2

        def diflayer(h32):                  # (M,32) -> (M,96): cat([x, d5(x), d3(x)])
            d1, d2 = dif_convs(h32)
            return jnp.concatenate([h32, d1, d2], axis=-1)

        def bottle2neck(i, sp_in):          # sp_in: (M, 96)
            residual = sp_in
            # conv1 (1x1) -> diflayer -> relu -> bn1
            h32 = mm(sp_in, c1w_ref[i]) + c1b_ref[i]
            h96 = jnp.maximum(diflayer(h32), 0.0)
            bn1 = bn1p_ref[i]
            h96 = h96 * bn1[0] + bn1[1]

            spx7 = h96[:, 84:96]                                   # spx[nums]
            carry = jnp.concatenate([spx7, jnp.zeros((M, 84), f32)], axis=-1)
            sp_s = []
            for j in range(NI):             # statically unrolled inner res2net loop
                idx = i * NI + j
                cin = jnp.concatenate([carry, h96[:, 12 * j:12 * (j + 1)]], axis=-1)
                w3 = wc_ref[idx]            # (3, 108, 32): taps t-1, t, t+1
                conv = (cb_ref[idx]
                        + mm(tshift(cin, -1), w3[0])
                        + mm(cin, w3[1])
                        + mm(tshift(cin, 1), w3[2]))               # (M, 32)
                # diflayer2: per-slot cat([x, d5(x), d3(x)]) is a plain lane concat here
                d1, d2 = dif_convs(conv)
                s96 = jnp.maximum(jnp.concatenate([conv, d1, d2], axis=-1), 0.0)
                bnp = ibnp_ref[idx]
                s96 = s96 * bnp[0] + bnp[1]                        # BN2d (inference)
                sp_s.append(mm(s96, rw_ref[j]))                    # weighted slot sum
                carry = s96
            outb = jnp.concatenate(sp_s + [spx7], axis=-1)         # (M, 96)

            # conv3 (1x1) -> diflayer -> relu -> bn3
            g32 = mm(outb, c3w_ref[i]) + c3b_ref[i]
            g96 = jnp.maximum(diflayer(g32), 0.0)
            bn3 = bn3p_ref[i]
            g96 = g96 * bn3[0] + bn3[1]

            # SE module (per-batch-element temporal mean)
            mvec = jnp.mean(g96.reshape(Bt, T, 96), axis=1)        # (Bt, 96)
            z1 = jnp.maximum(mm(mvec, sew1_ref[i]) + seb1_ref[i], 0.0)
            z2 = mm(z1, sew2_ref[i]) + seb2_ref[i]
            gate = 1.0 / (1.0 + jnp.exp(-z2))                      # sigmoid, (Bt, 96)
            g96 = (g96.reshape(Bt, T, 96) * gate[:, None, :]).reshape(M, 96)
            return g96 + residual

        def fold_final(blk, s96):
            # final BN(768) -> ReLU -> temporal mean -> FC, folded per 96-ch block
            fbn = fbnp_ref[blk]
            h = jnp.maximum(s96 * fbn[0] + fbn[1], 0.0)
            v = jnp.mean(h.reshape(Bt, T, 96), axis=1)             # (Bt, 96)
            return mm(v, fcw_ref[blk])                             # (Bt, 2)

        def outer(i, carry):
            sp_prev, acc = carry
            sp = bottle2neck(i, sp_prev + x_ref[i])                # sp = spx[i] (+ prev)
            sp = jnp.maximum(sp, 0.0)
            obn = obnp_ref[i]
            sp = sp * obn[0] + obn[1]                              # bns[i]
            return sp, acc + fold_final(i, sp)

        sp0 = jnp.zeros((M, 96), f32)
        acc0 = jnp.zeros((Bt, 2), f32)
        _, acc = lax.fori_loop(0, NB, outer, (sp0, acc0))
        acc = acc + fold_final(7, x_ref[7])                        # cat of spx[-1]
        out_ref[...] = acc + fcb_ref[...]

    return kernel


# --------------------------------------------------------------------------- parameters
def init_params(key):
    keys = iter(jax.random.split(key, 40))
    bf16 = jnp.bfloat16

    def nrm(shape, s=0.1):
        return s * jax.random.normal(next(keys), shape, jnp.float32)

    def unif(shape, lo, hi):
        return jax.random.uniform(next(keys), shape, jnp.float32, lo, hi)

    def bn_fold(shape):                     # inference-mode BN -> (scale, shift)
        g = unif(shape, 0.5, 1.5)
        b = nrm(shape)
        rm = nrm(shape)
        rv = unif(shape, 0.5, 1.5)
        scale = g / jnp.sqrt(rv + EPS)
        return scale, b - rm * scale

    c1w = nrm((NB, 96, 32))
    c1b = nrm((NB, 32))
    s, h = bn_fold((NB, 96)); bn1p = jnp.stack([s, h], axis=1)

    # inner Conv2d(12->4, kernel (3,1)) weights/biases folded onto the kernel layout
    wraw = np.asarray(nrm((NB, NI, 4, 12, 3)))          # (i, j, c_out, c_in, tap)
    braw = np.asarray(nrm((NB, NI, 4)))
    wc = np.zeros((NB * NI, 3, 108, 32), np.float32)
    cbias = np.zeros((NB * NI, 32), np.float32)
    for i in range(NB):
        for j in range(NI):
            idx = i * NI + j
            w = wraw[i, j]                              # (4, 12, 3)
            for tap in range(3):
                if j == 0:
                    # slot 0 carry = spx[7] (PyTorch 12-ch order) at lanes 0..11
                    for cin in range(12):
                        wc[idx, tap, cin, 0:4] = w[:, cin, tap]
                else:
                    # live carry slots 0..j in the m-major layout
                    for s_ in range(j + 1):
                        for m in range(3):
                            for c in range(4):
                                wc[idx, tap, 32 * m + 4 * s_ + c,
                                   4 * s_:4 * s_ + 4] = w[:, 4 * m + c, tap]
                # new slot spx[j] (PyTorch order) -> output slot j+1
                for cin in range(12):
                    wc[idx, tap, 96 + cin, 4 * (j + 1):4 * (j + 1) + 4] = w[:, cin, tap]
            for s_ in range(j + 2):                     # bias on live output slots
                cbias[idx, 4 * s_:4 * s_ + 4] = braw[i, j]

    # BN2d(12) tiled onto the m-major 96-lane layout (lane 32m+4s+c -> channel 4m+c)
    s12, h12 = bn_fold((NB, NI, 12))
    lane_ch = np.array([4 * m + c for m in range(3) for _ in range(8) for c in range(4)])
    ibnp = np.stack([np.asarray(s12).reshape(NB * NI, 12)[:, lane_ch],
                     np.asarray(h12).reshape(NB * NI, 12)[:, lane_ch]], axis=1)

    # weighted sum over live slots (initial value 1/(j+2)), m-major -> 12 channels
    rw = np.zeros((NI, 96, 12), np.float32)
    for j in range(NI):
        for m in range(3):
            for s_ in range(j + 2):
                for c in range(4):
                    rw[j, 32 * m + 4 * s_ + c, 4 * m + c] = 1.0 / (j + 2)

    c3w = nrm((NB, 96, 32))
    c3b = nrm((NB, 32))
    s, h = bn_fold((NB, 96)); bn3p = jnp.stack([s, h], axis=1)
    sew1 = nrm((NB, 96, 12)); seb1 = nrm((NB, 12))
    sew2 = nrm((NB, 12, 96)); seb2 = nrm((NB, 96))
    s, h = bn_fold((NB, 96)); obnp = jnp.stack([s, h], axis=1)
    s, h = bn_fold((768,))
    fbnp = jnp.stack([s.reshape(8, 96), h.reshape(8, 96)], axis=1)   # (8, 2, 96)
    fcw = nrm((768, 2)).reshape(8, 96, 2)
    fcb = nrm((1, 2))

    return (c1w.astype(bf16), c1b, bn1p,
            jnp.asarray(wc, bf16), jnp.asarray(cbias), jnp.asarray(ibnp),
            jnp.asarray(rw, bf16),
            c3w.astype(bf16), c3b, bn3p,
            sew1.astype(bf16), seb1, sew2.astype(bf16), seb2,
            obnp, fbnp, fcw.astype(bf16), fcb)


# ----------------------------------------------------------------------------- wrapper
def _zero_map(nd, b):
    return (0,) * nd


def _time_masks(T, Bt):
    M = Bt * T
    t = np.arange(M) % T
    rows = [((t + d >= 0) & (t + d < T)).astype(np.float32) for d in (-2, -1, 1, 2)]
    return jnp.asarray(np.stack(rows).reshape(4, M, 1))


def nes2net_forward(x_feat, params, *, batch_tile=None):
    """x_feat: (B, T, 768) SSL-style features (what SSLModel.extract_feat would emit)."""
    B, T, C = x_feat.shape
    assert C == 768
    if batch_tile is None:
        batch_tile = max(d for d in range(1, min(B, 8) + 1) if B % d == 0)
    Bt = batch_tile
    assert B % Bt == 0
    M = Bt * T
    assert M % 8 == 0 or Bt == B, "stacked rows must stay sublane-aligned"

    # (B, T, 768) -> 8 blocks of 96 channels, time-major, batch stacked along rows
    xs = (x_feat.astype(jnp.float32)
          .reshape(B, T, 8, 96).transpose(2, 0, 1, 3).reshape(8, B * T, 96))
    tmask = _time_masks(T, Bt)

    in_specs = [pl.BlockSpec((8, M, 96), lambda b: (0, b, 0)),
                pl.BlockSpec(tmask.shape, functools.partial(_zero_map, tmask.ndim))]
    for p in params:
        in_specs.append(pl.BlockSpec(p.shape, functools.partial(_zero_map, p.ndim)))

    out = pl.pallas_call(
        _make_kernel(T, Bt),
        out_shape=jax.ShapeDtypeStruct((B // Bt, Bt, 2), jnp.float32),
        grid=(B // Bt,),
        in_specs=in_specs,
        out_specs=pl.BlockSpec((None, Bt, 2), lambda b: (b, 0, 0)),
        compiler_params=pltpu.CompilerParams(
            dimension_semantics=("parallel",),           # batch tiles are independent
            vmem_limit_bytes=48 * 1024 * 1024),          # fits v7x's 64 MiB VMEM
    )(xs, tmask, *params)
    return out.reshape(B, 2)


# -------------------------------------------------------------------------------- main
if __name__ == "__main__":
    key = jax.random.PRNGKey(0)
    kp, kx = jax.random.split(key)
    B, T = 2, 16
    params = init_params(kp)
    x_feat = 0.5 * jax.random.normal(kx, (B, T, 768), jnp.float32)
    out = jax.block_until_ready(nes2net_forward(x_feat, params))
    assert out.shape == (B, 2), out.shape
    assert bool(jnp.all(jnp.isfinite(out)))
    print("KERNEL_OK")
</pallas_src>

<mosaic_0001>
module attributes {stable_mosaic.version = 11 : i64} {
  func.func @kernel(%arg0: i32, %arg1: memref<8x32x96xf32, #tpu.memory_space<vmem>>, %arg2: memref<4x32x1xf32, #tpu.memory_space<vmem>>, %arg3: memref<7x96x32xbf16, #tpu.memory_space<vmem>>, %arg4: memref<7x32xf32, #tpu.memory_space<vmem>>, %arg5: memref<7x2x96xf32, #tpu.memory_space<vmem>>, %arg6: memref<49x3x108x32xbf16, #tpu.memory_space<vmem>>, %arg7: memref<49x32xf32, #tpu.memory_space<vmem>>, %arg8: memref<49x2x96xf32, #tpu.memory_space<vmem>>, %arg9: memref<7x96x12xbf16, #tpu.memory_space<vmem>>, %arg10: memref<7x96x32xbf16, #tpu.memory_space<vmem>>, %arg11: memref<7x32xf32, #tpu.memory_space<vmem>>, %arg12: memref<7x2x96xf32, #tpu.memory_space<vmem>>, %arg13: memref<7x96x12xbf16, #tpu.memory_space<vmem>>, %arg14: memref<7x12xf32, #tpu.memory_space<vmem>>, %arg15: memref<7x12x96xbf16, #tpu.memory_space<vmem>>, %arg16: memref<7x96xf32, #tpu.memory_space<vmem>>, %arg17: memref<7x2x96xf32, #tpu.memory_space<vmem>>, %arg18: memref<8x2x96xf32, #tpu.memory_space<vmem>>, %arg19: memref<8x96x2xbf16, #tpu.memory_space<vmem>>, %arg20: memref<1x2xf32, #tpu.memory_space<vmem>>, %arg21: memref<1x2x2xf32, #tpu.memory_space<vmem>>) attributes {dimension_semantics = [#tpu.dimension_semantics<parallel>], iteration_bounds = array<i64: 1>, scalar_prefetch = 0 : i64, scratch_operands = 0 : i64, tpu.core_type = #tpu.core_type<tc>, window_params = [{transform_indices = @transform_0, window_bounds = array<i64: 8, 32, 96>}, {pipeline_mode = #tpu.pipeline_mode<synchronous>, transform_indices = @transform_1, window_bounds = array<i64: 4, 32, 1>}, {pipeline_mode = #tpu.pipeline_mode<synchronous>, transform_indices = @transform_2, window_bounds = array<i64: 7, 96, 32>}, {pipeline_mode = #tpu.pipeline_mode<synchronous>, transform_indices = @transform_3, window_bounds = array<i64: 7, 32>}, {pipeline_mode = #tpu.pipeline_mode<synchronous>, transform_indices = @transform_4, window_bounds = array<i64: 7, 2, 96>}, {pipeline_mode = #tpu.pipeline_mode<synchronous>, transform_indices = @transform_5, window_bounds = array<i64: 49, 3, 108, 32>}, {pipeline_mode = #tpu.pipeline_mode<synchronous>, transform_indices = @transform_6, window_bounds = array<i64: 49, 32>}, {pipeline_mode = #tpu.pipeline_mode<synchronous>, transform_indices = @transform_7, window_bounds = array<i64: 49, 2, 96>}, {pipeline_mode = #tpu.pipeline_mode<synchronous>, transform_indices = @transform_8, window_bounds = array<i64: 7, 96, 12>}, {pipeline_mode = #tpu.pipeline_mode<synchronous>, transform_indices = @transform_9, window_bounds = array<i64: 7, 96, 32>}, {pipeline_mode = #tpu.pipeline_mode<synchronous>, transform_indices = @transform_10, window_bounds = array<i64: 7, 32>}, {pipeline_mode = #tpu.pipeline_mode<synchronous>, transform_indices = @transform_11, window_bounds = array<i64: 7, 2, 96>}, {pipeline_mode = #tpu.pipeline_mode<synchronous>, transform_indices = @transform_12, window_bounds = array<i64: 7, 96, 12>}, {pipeline_mode = #tpu.pipeline_mode<synchronous>, transform_indices = @transform_13, window_bounds = array<i64: 7, 12>}, {pipeline_mode = #tpu.pipeline_mode<synchronous>, transform_indices = @transform_14, window_bounds = array<i64: 7, 12, 96>}, {pipeline_mode = #tpu.pipeline_mode<synchronous>, transform_indices = @transform_15, window_bounds = array<i64: 7, 96>}, {pipeline_mode = #tpu.pipeline_mode<synchronous>, transform_indices = @transform_16, window_bounds = array<i64: 7, 2, 96>}, {pipeline_mode = #tpu.pipeline_mode<synchronous>, transform_indices = @transform_17, window_bounds = array<i64: 8, 2, 96>}, {pipeline_mode = #tpu.pipeline_mode<synchronous>, transform_indices = @transform_18, window_bounds = array<i64: 8, 96, 2>}, {pipeline_mode = #tpu.pipeline_mode<synchronous>, transform_indices = @transform_19, window_bounds = array<i64: 1, 2>}, {transform_indices = @transform_20, window_bounds = array<i64: 1, 2, 2>}]} {
    %c0 = arith.constant 0 : index
    %c0_0 = arith.constant 0 : index
    %c0_1 = arith.constant 0 : index
    %0 = vector.load %arg2[%c0, %c0_0, %c0_1] : memref<4x32x1xf32, #tpu.memory_space<vmem>>, vector<1x32x1xf32>
    %1 = vector.shape_cast %0 : vector<1x32x1xf32> to vector<32x1xf32>
    %c1 = arith.constant 1 : index
    %c0_2 = arith.constant 0 : index
    %c0_3 = arith.constant 0 : index
    %2 = vector.load %arg2[%c1, %c0_2, %c0_3] : memref<4x32x1xf32, #tpu.memory_space<vmem>>, vector<1x32x1xf32>
    %3 = vector.shape_cast %2 : vector<1x32x1xf32> to vector<32x1xf32>
    %c2 = arith.constant 2 : index
    %c0_4 = arith.constant 0 : index
    %c0_5 = arith.constant 0 : index
    %4 = vector.load %arg2[%c2, %c0_4, %c0_5] : memref<4x32x1xf32, #tpu.memory_space<vmem>>, vector<1x32x1xf32>
    %5 = vector.shape_cast %4 : vector<1x32x1xf32> to vector<32x1xf32>
    %c3 = arith.constant 3 : index
    %c0_6 = arith.constant 0 : index
    %c0_7 = arith.constant 0 : index
    %6 = vector.load %arg2[%c3, %c0_6, %c0_7] : memref<4x32x1xf32, #tpu.memory_space<vmem>>, vector<1x32x1xf32>
    %7 = vector.shape_cast %6 : vector<1x32x1xf32> to vector<32x1xf32>
    %cst = arith.constant 0.000000e+00 : f32
    %8 = vector.broadcast %cst : f32 to vector<32x96xf32>
    %cst_8 = arith.constant 0.000000e+00 : f32
    %9 = vector.broadcast %cst_8 : f32 to vector<2x2xf32>
    %c0_i32 = arith.constant 0 : i32
    %c7_i32 = arith.constant 7 : i32
    %10 = arith.addi %c0_i32, %c7_i32 : i32
    %c1_i32 = arith.constant 1 : i32
    %11:2 = scf.for %arg22 = %c0_i32 to %10 step %c1_i32 iter_args(%arg23 = %8, %arg24 = %9) -> (vector<32x96xf32>, vector<2x2xf32>)  : i32 {
      %43 = arith.index_cast %arg22 : i32 to index
      %c0_27 = arith.constant 0 : index
      %c0_28 = arith.constant 0 : index
      %44 = vector.load %arg1[%43, %c0_27, %c0_28] : memref<8x32x96xf32, #tpu.memory_space<vmem>>, vector<1x32x96xf32>
      %45 = vector.shape_cast %44 : vector<1x32x96xf32> to vector<32x96xf32>
      %46 = arith.addf %arg23, %45 : vector<32x96xf32>
      %47 = arith.index_cast %arg22 : i32 to index
      %c0_29 = arith.constant 0 : index
      %c0_30 = arith.constant 0 : index
      %48 = vector.load %arg3[%47, %c0_29, %c0_30] : memref<7x96x32xbf16, #tpu.memory_space<vmem>>, vector<1x96x32xbf16>
      %49 = vector.shape_cast %48 : vector<1x96x32xbf16> to vector<96x32xbf16>
      %50 = arith.truncf %46 : vector<32x96xf32> to vector<32x96xbf16>
      %cst_31 = arith.constant dense<0.000000e+00> : vector<32x32xf32>
      %51 = tpu.matmul %50, %49, %cst_31 {dimension_numbers = #tpu.dot_dimension_numbers<[1], [0], [0], [1], [0, 0, 1, 1], [], []>} : vector<32x96xbf16>, vector<96x32xbf16>, vector<32x32xf32> -> vector<32x32xf32>
      %52 = arith.index_cast %arg22 : i32 to index
      %c0_32 = arith.constant 0 : index
      %53 = vector.load %arg4[%52, %c0_32] : memref<7x32xf32, #tpu.memory_space<vmem>>, vector<1x32xf32>
      %54 = vector.shape_cast %53 : vector<1x32xf32> to vector<32xf32>
      %55 = vector.shape_cast %54 : vector<32xf32> to vector<1x32xf32>
      %56 = vector.broadcast %55 : vector<1x32xf32> to vector<32x32xf32>
      %57 = arith.addf %51, %56 : vector<32x32xf32>
      %c2_i32 = arith.constant 2 : i32
      %58 = tpu.dynamic_rotate %57 by %c2_i32 dim 0 : vector<32x32xf32>, i32 -> vector<32x32xf32>
      %59 = vector.broadcast %1 : vector<32x1xf32> to vector<32x32xf32>
      %60 = arith.mulf %58, %59 : vector<32x32xf32>
      %c1_i32_33 = arith.constant 1 : i32
      %61 = tpu.dynamic_rotate %57 by %c1_i32_33 dim 0 : vector<32x32xf32>, i32 -> vector<32x32xf32>
      %62 = vector.broadcast %3 : vector<32x1xf32> to vector<32x32xf32>
      %63 = arith.mulf %61, %62 : vector<32x32xf32>
      %c31_i32 = arith.constant 31 : i32
      %64 = tpu.dynamic_rotate %57 by %c31_i32 dim 0 : vector<32x32xf32>, i32 -> vector<32x32xf32>
      %65 = vector.broadcast %5 : vector<32x1xf32> to vector<32x32xf32>
      %66 = arith.mulf %64, %65 : vector<32x32xf32>
      %c30_i32 = arith.constant 30 : i32
      %67 = tpu.dynamic_rotate %57 by %c30_i32 dim 0 : vector<32x32xf32>, i32 -> vector<32x32xf32>
      %68 = vector.broadcast %7 : vector<32x1xf32> to vector<32x32xf32>
      %69 = arith.mulf %67, %68 : vector<32x32xf32>
      %cst_34 = arith.constant -2.000000e-01 : f32
      %70 = vector.broadcast %cst_34 : f32 to vector<32x32xf32>
      %71 = arith.mulf %70, %60 : vector<32x32xf32>
      %cst_35 = arith.constant -1.000000e-01 : f32
      %72 = vector.broadcast %cst_35 : f32 to vector<32x32xf32>
      %73 = arith.mulf %72, %63 : vector<32x32xf32>
      %74 = arith.addf %71, %73 : vector<32x32xf32>
      %cst_36 = arith.constant 1.000000e-01 : f32
      %75 = vector.broadcast %cst_36 : f32 to vector<32x32xf32>
      %76 = arith.mulf %75, %66 : vector<32x32xf32>
      %77 = arith.addf %74, %76 : vector<32x32xf32>
      %cst_37 = arith.constant 2.000000e-01 : f32
      %78 = vector.broadcast %cst_37 : f32 to vector<32x32xf32>
      %79 = arith.mulf %78, %69 : vector<32x32xf32>
      %80 = arith.addf %77, %79 : vector<32x32xf32>
      %cst_38 = arith.constant -5.000000e-01 : f32
      %81 = vector.broadcast %cst_38 : f32 to vector<32x32xf32>
      %82 = arith.mulf %81, %63 : vector<32x32xf32>
      %cst_39 = arith.constant 5.000000e-01 : f32
      %83 = vector.broadcast %cst_39 : f32 to vector<32x32xf32>
      %84 = arith.mulf %83, %66 : vector<32x32xf32>
      %85 = arith.addf %82, %84 : vector<32x32xf32>
      %86 = tpu.concatenate %57, %80, %85 in 1 : vector<32x32xf32>, vector<32x32xf32>, vector<32x32xf32> -> vector<32x96xf32>
      %cst_40 = arith.constant 0.000000e+00 : f32
      %87 = vector.broadcast %cst_40 : f32 to vector<32x96xf32>
      %88 = arith.maximumf %86, %87 : vector<32x96xf32>
      %89 = arith.index_cast %arg22 : i32 to index
      %c0_41 = arith.constant 0 : index
      %c0_42 = arith.constant 0 : index
      %90 = vector.load %arg5[%89, %c0_41, %c0_42] : memref<7x2x96xf32, #tpu.memory_space<vmem>>, vector<1x2x96xf32>
      %91 = vector.shape_cast %90 : vector<1x2x96xf32> to vector<2x96xf32>
      %92 = vector.extract_strided_slice %91 {offsets = [0, 0], sizes = [1, 96], strides = [1, 1]} : vector<2x96xf32> to vector<1x96xf32>
      %93 = vector.shape_cast %92 : vector<1x96xf32> to vector<96xf32>
      %94 = vector.shape_cast %93 : vector<96xf32> to vector<1x96xf32>
      %95 = vector.broadcast %94 : vector<1x96xf32> to vector<32x96xf32>
      %96 = arith.mulf %88, %95 : vector<32x96xf32>
      %97 = vector.extract_strided_slice %91 {offsets = [1, 0], sizes = [1, 96], strides = [1, 1]} : vector<2x96xf32> to vector<1x96xf32>
      %98 = vector.shape_cast %97 : vector<1x96xf32> to vector<96xf32>
      %99 = vector.shape_cast %98 : vector<96xf32> to vector<1x96xf32>
      %100 = vector.broadcast %99 : vector<1x96xf32> to vector<32x96xf32>
      %101 = arith.addf %96, %100 : vector<32x96xf32>
      %102 = vector.extract_strided_slice %101 {offsets = [0, 84], sizes = [32, 12], strides = [1, 1]} : vector<32x96xf32> to vector<32x12xf32>
      %cst_43 = arith.constant 0.000000e+00 : f32
      %103 = vector.broadcast %cst_43 : f32 to vector<32x84xf32>
      %104 = tpu.concatenate %102, %103 in 1 : vector<32x12xf32>, vector<32x84xf32> -> vector<32x96xf32>
      %c7_i32_44 = arith.constant 7 : i32
      %105 = arith.muli %arg22, %c7_i32_44 : i32
      %c0_i32_45 = arith.constant 0 : i32
      %106 = arith.addi %105, %c0_i32_45 : i32
      %107 = vector.extract_strided_slice %101 {offsets = [0, 0], sizes = [32, 12], strides = [1, 1]} : vector<32x96xf32> to vector<32x12xf32>
      %108 = tpu.concatenate %104, %107 in 1 : vector<32x96xf32>, vector<32x12xf32> -> vector<32x108xf32>
      %109 = arith.index_cast %106 : i32 to index
      %c0_46 = arith.constant 0 : index
      %c0_47 = arith.constant 0 : index
      %c0_48 = arith.constant 0 : index
      %110 = vector.load %arg6[%109, %c0_46, %c0_47, %c0_48] : memref<49x3x108x32xbf16, #tpu.memory_space<vmem>>, vector<1x3x108x32xbf16>
      %111 = vector.shape_cast %110 : vector<1x3x108x32xbf16> to vector<3x108x32xbf16>
      %112 = arith.index_cast %106 : i32 to index
      %c0_49 = arith.constant 0 : index
      %113 = vector.load %arg7[%112, %c0_49] : memref<49x32xf32, #tpu.memory_space<vmem>>, vector<1x32xf32>
      %114 = vector.shape_cast %113 : vector<1x32xf32> to vector<32xf32>
      %c1_i32_50 = arith.constant 1 : i32
      %115 = tpu.dynamic_rotate %108 by %c1_i32_50 dim 0 : vector<32x108xf32>, i32 -> vector<32x108xf32>
      %116 = vector.broadcast %3 : vector<32x1xf32> to vector<32x108xf32>
      %117 = arith.mulf %115, %116 : vector<32x108xf32>
      %118 = vector.extract_strided_slice %111 {offsets = [0, 0, 0], sizes = [1, 108, 32], strides = [1, 1, 1]} : vector<3x108x32xbf16> to vector<1x108x32xbf16>
      %119 = vector.shape_cast %118 : vector<1x108x32xbf16> to vector<108x32xbf16>
      %120 = arith.truncf %117 : vector<32x108xf32> to vector<32x108xbf16>
      %cst_51 = arith.constant dense<0.000000e+00> : vector<32x32xf32>
      %121 = tpu.matmul %120, %119, %cst_51 {dimension_numbers = #tpu.dot_dimension_numbers<[1], [0], [0], [1], [0, 0, 1, 1], [], []>} : vector<32x108xbf16>, vector<108x32xbf16>, vector<32x32xf32> -> vector<32x32xf32>
      %122 = vector.shape_cast %114 : vector<32xf32> to vector<1x32xf32>
      %123 = vector.broadcast %122 : vector<1x32xf32> to vector<32x32xf32>
      %124 = arith.addf %123, %121 : vector<32x32xf32>
      %125 = vector.extract_strided_slice %111 {offsets = [1, 0, 0], sizes = [1, 108, 32], strides = [1, 1, 1]} : vector<3x108x32xbf16> to vector<1x108x32xbf16>
      %126 = vector.shape_cast %125 : vector<1x108x32xbf16> to vector<108x32xbf16>
      %127 = arith.truncf %108 : vector<32x108xf32> to vector<32x108xbf16>
      %cst_52 = arith.constant dense<0.000000e+00> : vector<32x32xf32>
      %128 = tpu.matmul %127, %126, %cst_52 {dimension_numbers = #tpu.dot_dimension_numbers<[1], [0], [0], [1], [0, 0, 1, 1], [], []>} : vector<32x108xbf16>, vector<108x32xbf16>, vector<32x32xf32> -> vector<32x32xf32>
      %129 = arith.addf %124, %128 : vector<32x32xf32>
      %c31_i32_53 = arith.constant 31 : i32
      %130 = tpu.dynamic_rotate %108 by %c31_i32_53 dim 0 : vector<32x108xf32>, i32 -> vector<32x108xf32>
      %131 = vector.broadcast %5 : vector<32x1xf32> to vector<32x108xf32>
      %132 = arith.mulf %130, %131 : vector<32x108xf32>
      %133 = vector.extract_strided_slice %111 {offsets = [2, 0, 0], sizes = [1, 108, 32], strides = [1, 1, 1]} : vector<3x108x32xbf16> to vector<1x108x32xbf16>
      %134 = vector.shape_cast %133 : vector<1x108x32xbf16> to vector<108x32xbf16>
      %135 = arith.truncf %132 : vector<32x108xf32> to vector<32x108xbf16>
      %cst_54 = arith.constant dense<0.000000e+00> : vector<32x32xf32>
      %136 = tpu.matmul %135, %134, %cst_54 {dimension_numbers = #tpu.dot_dimension_numbers<[1], [0], [0], [1], [0, 0, 1, 1], [], []>} : vector<32x108xbf16>, vector<108x32xbf16>, vector<32x32xf32> -> vector<32x32xf32>
      %137 = arith.addf %129, %136 : vector<32x32xf32>
      %c2_i32_55 = arith.constant 2 : i32
      %138 = tpu.dynamic_rotate %137 by %c2_i32_55 dim 0 : vector<32x32xf32>, i32 -> vector<32x32xf32>
      %139 = vector.broadcast %1 : vector<32x1xf32> to vector<32x32xf32>
      %140 = arith.mulf %138, %139 : vector<32x32xf32>
      %c1_i32_56 = arith.constant 1 : i32
      %141 = tpu.dynamic_rotate %137 by %c1_i32_56 dim 0 : vector<32x32xf32>, i32 -> vector<32x32xf32>
      %142 = vector.broadcast %3 : vector<32x1xf32> to vector<32x32xf32>
      %143 = arith.mulf %141, %142 : vector<32x32xf32>
      %c31_i32_57 = arith.constant 31 : i32
      %144 = tpu.dynamic_rotate %137 by %c31_i32_57 dim 0 : vector<32x32xf32>, i32 -> vector<32x32xf32>
      %145 = vector.broadcast %5 : vector<32x1xf32> to vector<32x32xf32>
      %146 = arith.mulf %144, %145 : vector<32x32xf32>
      %c30_i32_58 = arith.constant 30 : i32
      %147 = tpu.dynamic_rotate %137 by %c30_i32_58 dim 0 : vector<32x32xf32>, i32 -> vector<32x32xf32>
      %148 = vector.broadcast %7 : vector<32x1xf32> to vector<32x32xf32>
      %149 = arith.mulf %147, %148 : vector<32x32xf32>
      %cst_59 = arith.constant -2.000000e-01 : f32
      %150 = vector.broadcast %cst_59 : f32 to vector<32x32xf32>
      %151 = arith.mulf %150, %140 : vector<32x32xf32>
      %cst_60 = arith.constant -1.000000e-01 : f32
      %152 = vector.broadcast %cst_60 : f32 to vector<32x32xf32>
      %153 = arith.mulf %152, %143 : vector<32x32xf32>
      %154 = arith.addf %151, %153 : vector<32x32xf32>
      %cst_61 = arith.constant 1.000000e-01 : f32
      %155 = vector.broadcast %cst_61 : f32 to vector<32x32xf32>
      %156 = arith.mulf %155, %146 : vector<32x32xf32>
      %157 = arith.addf %154, %156 : vector<32x32xf32>
      %cst_62 = arith.constant 2.000000e-01 : f32
      %158 = vector.broadcast %cst_62 : f32 to vector<32x32xf32>
      %159 = arith.mulf %158, %149 : vector<32x32xf32>
      %160 = arith.addf %157, %159 : vector<32x32xf32>
      %cst_63 = arith.constant -5.000000e-01 : f32
      %161 = vector.broadcast %cst_63 : f32 to vector<32x32xf32>
      %162 = arith.mulf %161, %143 : vector<32x32xf32>
      %cst_64 = arith.constant 5.000000e-01 : f32
      %163 = vector.broadcast %cst_64 : f32 to vector<32x32xf32>
      %164 = arith.mulf %163, %146 : vector<32x32xf32>
      %165 = arith.addf %162, %164 : vector<32x32xf32>
      %166 = tpu.concatenate %137, %160, %165 in 1 : vector<32x32xf32>, vector<32x32xf32>, vector<32x32xf32> -> vector<32x96xf32>
      %cst_65 = arith.constant 0.000000e+00 : f32
      %167 = vector.broadcast %cst_65 : f32 to vector<32x96xf32>
      %168 = arith.maximumf %166, %167 : vector<32x96xf32>
      %169 = arith.index_cast %106 : i32 to index
      %c0_66 = arith.constant 0 : index
      %c0_67 = arith.constant 0 : index
      %170 = vector.load %arg8[%169, %c0_66, %c0_67] : memref<49x2x96xf32, #tpu.memory_space<vmem>>, vector<1x2x96xf32>
      %171 = vector.shape_cast %170 : vector<1x2x96xf32> to vector<2x96xf32>
      %172 = vector.extract_strided_slice %171 {offsets = [0, 0], sizes = [1, 96], strides = [1, 1]} : vector<2x96xf32> to vector<1x96xf32>
      %173 = vector.shape_cast %172 : vector<1x96xf32> to vector<96xf32>
      %174 = vector.shape_cast %173 : vector<96xf32> to vector<1x96xf32>
      %175 = vector.broadcast %174 : vector<1x96xf32> to vector<32x96xf32>
      %176 = arith.mulf %168, %175 : vector<32x96xf32>
      %177 = vector.extract_strided_slice %171 {offsets = [1, 0], sizes = [1, 96], strides = [1, 1]} : vector<2x96xf32> to vector<1x96xf32>
      %178 = vector.shape_cast %177 : vector<1x96xf32> to vector<96xf32>
      %179 = vector.shape_cast %178 : vector<96xf32> to vector<1x96xf32>
      %180 = vector.broadcast %179 : vector<1x96xf32> to vector<32x96xf32>
      %181 = arith.addf %176, %180 : vector<32x96xf32>
      %c0_68 = arith.constant 0 : index
      %c0_69 = arith.constant 0 : index
      %c0_70 = arith.constant 0 : index
      %182 = vector.load %arg9[%c0_68, %c0_69, %c0_70] : memref<7x96x12xbf16, #tpu.memory_space<vmem>>, vector<1x96x12xbf16>
      %183 = vector.shape_cast %182 : vector<1x96x12xbf16> to vector<96x12xbf16>
      %184 = arith.truncf %181 : vector<32x96xf32> to vector<32x96xbf16>
      %cst_71 = arith.constant dense<0.000000e+00> : vector<32x12xf32>
      %185 = tpu.matmul %184, %183, %cst_71 {dimension_numbers = #tpu.dot_dimension_numbers<[1], [0], [0], [1], [0, 0, 1, 1], [], []>} : vector<32x96xbf16>, vector<96x12xbf16>, vector<32x12xf32> -> vector<32x12xf32>
      %c7_i32_72 = arith.constant 7 : i32
      %186 = arith.muli %arg22, %c7_i32_72 : i32
      %c1_i32_73 = arith.constant 1 : i32
      %187 = arith.addi %186, %c1_i32_73 : i32
      %188 = vector.extract_strided_slice %101 {offsets = [0, 12], sizes = [32, 12], strides = [1, 1]} : vector<32x96xf32> to vector<32x12xf32>
      %189 = tpu.concatenate %181, %188 in 1 : vector<32x96xf32>, vector<32x12xf32> -> vector<32x108xf32>
      %190 = arith.index_cast %187 : i32 to index
      %c0_74 = arith.constant 0 : index
      %c0_75 = arith.constant 0 : index
      %c0_76 = arith.constant 0 : index
      %191 = vector.load %arg6[%190, %c0_74, %c0_75, %c0_76] : memref<49x3x108x32xbf16, #tpu.memory_space<vmem>>, vector<1x3x108x32xbf16>
      %192 = vector.shape_cast %191 : vector<1x3x108x32xbf16> to vector<3x108x32xbf16>
      %193 = arith.index_cast %187 : i32 to index
      %c0_77 = arith.constant 0 : index
      %194 = vector.load %arg7[%193, %c0_77] : memref<49x32xf32, #tpu.memory_space<vmem>>, vector<1x32xf32>
      %195 = vector.shape_cast %194 : vector<1x32xf32> to vector<32xf32>
      %c1_i32_78 = arith.constant 1 : i32
      %196 = tpu.dynamic_rotate %189 by %c1_i32_78 dim 0 : vector<32x108xf32>, i32 -> vector<32x108xf32>
      %197 = vector.broadcast %3 : vector<32x1xf32> to vector<32x108xf32>
      %198 = arith.mulf %196, %197 : vector<32x108xf32>
      %199 = vector.extract_strided_slice %192 {offsets = [0, 0, 0], sizes = [1, 108, 32], strides = [1, 1, 1]} : vector<3x108x32xbf16> to vector<1x108x32xbf16>
      %200 = vector.shape_cast %199 : vector<1x108x32xbf16> to vector<108x32xbf16>
      %201 = arith.truncf %198 : vector<32x108xf32> to vector<32x108xbf16>
      %cst_79 = arith.constant dense<0.000000e+00> : vector<32x32xf32>
      %202 = tpu.matmul %201, %200, %cst_79 {dimension_numbers = #tpu.dot_dimension_numbers<[1], [0], [0], [1], [0, 0, 1, 1], [], []>} : vector<32x108xbf16>, vector<108x32xbf16>, vector<32x32xf32> -> vector<32x32xf32>
      %203 = vector.shape_cast %195 : vector<32xf32> to vector<1x32xf32>
      %204 = vector.broadcast %203 : vector<1x32xf32> to vector<32x32xf32>
      %205 = arith.addf %204, %202 : vector<32x32xf32>
      %206 = vector.extract_strided_slice %192 {offsets = [1, 0, 0], sizes = [1, 108, 32], strides = [1, 1, 1]} : vector<3x108x32xbf16> to vector<1x108x32xbf16>
      %207 = vector.shape_cast %206 : vector<1x108x32xbf16> to vector<108x32xbf16>
      %208 = arith.truncf %189 : vector<32x108xf32> to vector<32x108xbf16>
      %cst_80 = arith.constant dense<0.000000e+00> : vector<32x32xf32>
      %209 = tpu.matmul %208, %207, %cst_80 {dimension_numbers = #tpu.dot_dimension_numbers<[1], [0], [0], [1], [0, 0, 1, 1], [], []>} : vector<32x108xbf16>, vector<108x32xbf16>, vector<32x32xf32> -> vector<32x32xf32>
      %210 = arith.addf %205, %209 : vector<32x32xf32>
      %c31_i32_81 = arith.constant 31 : i32
      %211 = tpu.dynamic_rotate %189 by %c31_i32_81 dim 0 : vector<32x108xf32>, i32 -> vector<32x108xf32>
      %212 = vector.broadcast %5 : vector<32x1xf32> to vector<32x108xf32>
      %213 = arith.mulf %211, %212 : vector<32x108xf32>
      %214 = vector.extract_strided_slice %192 {offsets = [2, 0, 0], sizes = [1, 108, 32], strides = [1, 1, 1]} : vector<3x108x32xbf16> to vector<1x108x32xbf16>
      %215 = vector.shape_cast %214 : vector<1x108x32xbf16> to vector<108x32xbf16>
      %216 = arith.truncf %213 : vector<32x108xf32> to vector<32x108xbf16>
      %cst_82 = arith.constant dense<0.000000e+00> : vector<32x32xf32>
      %217 = tpu.matmul %216, %215, %cst_82 {dimension_numbers = #tpu.dot_dimension_numbers<[1], [0], [0], [1], [0, 0, 1, 1], [], []>} : vector<32x108xbf16>, vector<108x32xbf16>, vector<32x32xf32> -> vector<32x32xf32>
      %218 = arith.addf %210, %217 : vector<32x32xf32>
      %c2_i32_83 = arith.constant 2 : i32
      %219 = tpu.dynamic_rotate %218 by %c2_i32_83 dim 0 : vector<32x32xf32>, i32 -> vector<32x32xf32>
      %220 = vector.broadcast %1 : vector<32x1xf32> to vector<32x32xf32>
      %221 = arith.mulf %219, %220 : vector<32x32xf32>
      %c1_i32_84 = arith.constant 1 : i32
      %222 = tpu.dynamic_rotate %218 by %c1_i32_84 dim 0 : vector<32x32xf32>, i32 -> vector<32x32xf32>
      %223 = vector.broadcast %3 : vector<32x1xf32> to vector<32x32xf32>
      %224 = arith.mulf %222, %223 : vector<32x32xf32>
      %c31_i32_85 = arith.constant 31 : i32
      %225 = tpu.dynamic_rotate %218 by %c31_i32_85 dim 0 : vector<32x32xf32>, i32 -> vector<32x32xf32>
      %226 = vector.broadcast %5 : vector<32x1xf32> to vector<32x32xf32>
      %227 = arith.mulf %225, %226 : vector<32x32xf32>
      %c30_i32_86 = arith.constant 30 : i32
      %228 = tpu.dynamic_rotate %218 by %c30_i32_86 dim 0 : vector<32x32xf32>, i32 -> vector<32x32xf32>
      %229 = vector.broadcast %7 : vector<32x1xf32> to vector<32x32xf32>
      %230 = arith.mulf %228, %229 : vector<32x32xf32>
      %cst_87 = arith.constant -2.000000e-01 : f32
      %231 = vector.broadcast %cst_87 : f32 to vector<32x32xf32>
      %232 = arith.mulf %231, %221 : vector<32x32xf32>
      %cst_88 = arith.constant -1.000000e-01 : f32
      %233 = vector.broadcast %cst_88 : f32 to vector<32x32xf32>
      %234 = arith.mulf %233, %224 : vector<32x32xf32>
      %235 = arith.addf %232, %234 : vector<32x32xf32>
      %cst_89 = arith.constant 1.000000e-01 : f32
      %236 = vector.broadcast %cst_89 : f32 to vector<32x32xf32>
      %237 = arith.mulf %236, %227 : vector<32x32xf32>
      %238 = arith.addf %235, %237 : vector<32x32xf32>
      %cst_90 = arith.constant 2.000000e-01 : f32
      %239 = vector.broadcast %cst_90 : f32 to vector<32x32xf32>
      %240 = arith.mulf %239, %230 : vector<32x32xf32>
      %241 = arith.addf %238, %240 : vector<32x32xf32>
      %cst_91 = arith.constant -5.000000e-01 : f32
      %242 = vector.broadcast %cst_91 : f32 to vector<32x32xf32>
      %243 = arith.mulf %242, %224 : vector<32x32xf32>
      %cst_92 = arith.constant 5.000000e-01 : f32
      %244 = vector.broadcast %cst_92 : f32 to vector<32x32xf32>
      %245 = arith.mulf %244, %227 : vector<32x32xf32>
      %246 = arith.addf %243, %245 : vector<32x32xf32>
      %247 = tpu.concatenate %218, %241, %246 in 1 : vector<32x32xf32>, vector<32x32xf32>, vector<32x32xf32> -> vector<32x96xf32>
      %cst_93 = arith.constant 0.000000e+00 : f32
      %248 = vector.broadcast %cst_93 : f32 to vector<32x96xf32>
      %249 = arith.maximumf %247, %248 : vector<32x96xf32>
      %250 = arith.index_cast %187 : i32 to index
      %c0_94 = arith.constant 0 : index
      %c0_95 = arith.constant 0 : index
      %251 = vector.load %arg8[%250, %c0_94, %c0_95] : memref<49x2x96xf32, #tpu.memory_space<vmem>>, vector<1x2x96xf32>
      %252 = vector.shape_cast %251 : vector<1x2x96xf32> to vector<2x96xf32>
      %253 = vector.extract_strided_slice %252 {offsets = [0, 0], sizes = [1, 96], strides = [1, 1]} : vector<2x96xf32> to vector<1x96xf32>
      %254 = vector.shape_cast %253 : vector<1x96xf32> to vector<96xf32>
      %255 = vector.shape_cast %254 : vector<96xf32> to vector<1x96xf32>
      %256 = vector.broadcast %255 : vector<1x96xf32> to vector<32x96xf32>
      %257 = arith.mulf %249, %256 : vector<32x96xf32>
      %258 = vector.extract_strided_slice %252 {offsets = [1, 0], sizes = [1, 96], strides = [1, 1]} : vector<2x96xf32> to vector<1x96xf32>
      %259 = vector.shape_cast %258 : vector<1x96xf32> to vector<96xf32>
      %260 = vector.shape_cast %259 : vector<96xf32> to vector<1x96xf32>
      %261 = vector.broadcast %260 : vector<1x96xf32> to vector<32x96xf32>
      %262 = arith.addf %257, %261 : vector<32x96xf32>
      %c1_96 = arith.constant 1 : index
      %c0_97 = arith.constant 0 : index
      %c0_98 = arith.constant 0 : index
      %263 = vector.load %arg9[%c1_96, %c0_97, %c0_98] : memref<7x96x12xbf16, #tpu.memory_space<vmem>>, vector<1x96x12xbf16>
      %264 = vector.shape_cast %263 : vector<1x96x12xbf16> to vector<96x12xbf16>
      %265 = arith.truncf %262 : vector<32x96xf32> to vector<32x96xbf16>
      %cst_99 = arith.constant dense<0.000000e+00> : vector<32x12xf32>
      %266 = tpu.matmul %265, %264, %cst_99 {dimension_numbers = #tpu.dot_dimension_numbers<[1], [0], [0], [1], [0, 0, 1, 1], [], []>} : vector<32x96xbf16>, vector<96x12xbf16>, vector<32x12xf32> -> vector<32x12xf32>
      %c7_i32_100 = arith.constant 7 : i32
      %267 = arith.muli %arg22, %c7_i32_100 : i32
      %c2_i32_101 = arith.constant 2 : i32
      %268 = arith.addi %267, %c2_i32_101 : i32
      %269 = vector.extract_strided_slice %101 {offsets = [0, 24], sizes = [32, 12], strides = [1, 1]} : vector<32x96xf32> to vector<32x12xf32>
      %270 = tpu.concatenate %262, %269 in 1 : vector<32x96xf32>, vector<32x12xf32> -> vector<32x108xf32>
      %271 = arith.index_cast %268 : i32 to index
      %c0_102 = arith.constant 0 : index
      %c0_103 = arith.constant 0 : index
      %c0_104 = arith.constant 0 : index
      %272 = vector.load %arg6[%271, %c0_102, %c0_103, %c0_104] : memref<49x3x108x32xbf16, #tpu.memory_space<vmem>>, vector<1x3x108x32xbf16>
      %273 = vector.shape_cast %272 : vector<1x3x108x32xbf16> to vector<3x108x32xbf16>
      %274 = arith.index_cast %268 : i32 to index
      %c0_105 = arith.constant 0 : index
      %275 = vector.load %arg7[%274, %c0_105] : memref<49x32xf32, #tpu.memory_space<vmem>>, vector<1x32xf32>
      %276 = vector.shape_cast %275 : vector<1x32xf32> to vector<32xf32>
      %c1_i32_106 = arith.constant 1 : i32
      %277 = tpu.dynamic_rotate %270 by %c1_i32_106 dim 0 : vector<32x108xf32>, i32 -> vector<32x108xf32>
      %278 = vector.broadcast %3 : vector<32x1xf32> to vector<32x108xf32>
      %279 = arith.mulf %277, %278 : vector<32x108xf32>
      %280 = vector.extract_strided_slice %273 {offsets = [0, 0, 0], sizes = [1, 108, 32], strides = [1, 1, 1]} : vector<3x108x32xbf16> to vector<1x108x32xbf16>
      %281 = vector.shape_cast %280 : vector<1x108x32xbf16> to vector<108x32xbf16>
      %282 = arith.truncf %279 : vector<32x108xf32> to vector<32x108xbf16>
      %cst_107 = arith.constant dense<0.000000e+00> : vector<32x32xf32>
      %283 = tpu.matmul %282, %281, %cst_107 {dimension_numbers = #tpu.dot_dimension_numbers<[1], [0], [0], [1], [0, 0, 1, 1], [], []>} : vector<32x108xbf16>, vector<108x32xbf16>, vector<32x32xf32> -> vector<32x32xf32>
      %284 = vector.shape_cast %276 : vector<32xf32> to vector<1x32xf32>
      %285 = vector.broadcast %284 : vector<1x32xf32> to vector<32x32xf32>
      %286 = arith.addf %285, %283 : vector<32x32xf32>
      %287 = vector.extract_strided_slice %273 {offsets = [1, 0, 0], sizes = [1, 108, 32], strides = [1, 1, 1]} : vector<3x108x32xbf16> to vector<1x108x32xbf16>
      %288 = vector.shape_cast %287 : vector<1x108x32xbf16> to vector<108x32xbf16>
      %289 = arith.truncf %270 : vector<32x108xf32> to vector<32x108xbf16>
      %cst_108 = arith.constant dense<0.000000e+00> : vector<32x32xf32>
      %290 = tpu.matmul %289, %288, %cst_108 {dimension_numbers = #tpu.dot_dimension_numbers<[1], [0], [0], [1], [0, 0, 1, 1], [], []>} : vector<32x108xbf16>, vector<108x32xbf16>, vector<32x32xf32> -> vector<32x32xf32>
      %291 = arith.addf %286, %290 : vector<32x32xf32>
      %c31_i32_109 = arith.constant 31 : i32
      %292 = tpu.dynamic_rotate %270 by %c31_i32_109 dim 0 : vector<32x108xf32>, i32 -> vector<32x108xf32>
      %293 = vector.broadcast %5 : vector<32x1xf32> to vector<32x108xf32>
      %294 = arith.mulf %292, %293 : vector<32x108xf32>
      %295 = vector.extract_strided_slice %273 {offsets = [2, 0, 0], sizes = [1, 108, 32], strides = [1, 1, 1]} : vector<3x108x32xbf16> to vector<1x108x32xbf16>
      %296 = vector.shape_cast %295 : vector<1x108x32xbf16> to vector<108x32xbf16>
      %297 = arith.truncf %294 : vector<32x108xf32> to vector<32x108xbf16>
      %cst_110 = arith.constant dense<0.000000e+00> : vector<32x32xf32>
      %298 = tpu.matmul %297, %296, %cst_110 {dimension_numbers = #tpu.dot_dimension_numbers<[1], [0], [0], [1], [0, 0, 1, 1], [], []>} : vector<32x108xbf16>, vector<108x32xbf16>, vector<32x32xf32> -> vector<32x32xf32>
      %299 = arith.addf %291, %298 : vector<32x32xf32>
      %c2_i32_111 = arith.constant 2 : i32
      %300 = tpu.dynamic_rotate %299 by %c2_i32_111 dim 0 : vector<32x32xf32>, i32 -> vector<32x32xf32>
      %301 = vector.broadcast %1 : vector<32x1xf32> to vector<32x32xf32>
      %302 = arith.mulf %300, %301 : vector<32x32xf32>
      %c1_i32_112 = arith.constant 1 : i32
      %303 = tpu.dynamic_rotate %299 by %c1_i32_112 dim 0 : vector<32x32xf32>, i32 -> vector<32x32xf32>
      %304 = vector.broadcast %3 : vector<32x1xf32> to vector<32x32xf32>
      %305 = arith.mulf %303, %304 : vector<32x32xf32>
      %c31_i32_113 = arith.constant 31 : i32
      %306 = tpu.dynamic_rotate %299 by %c31_i32_113 dim 0 : vector<32x32xf32>, i32 -> vector<32x32xf32>
      %307 = vector.broadcast %5 : vector<32x1xf32> to vector<32x32xf32>
      %308 = arith.mulf %306, %307 : vector<32x32xf32>
      %c30_i32_114 = arith.constant 30 : i32
      %309 = tpu.dynamic_rotate %299 by %c30_i32_114 dim 0 : vector<32x32xf32>, i32 -> vector<32x32xf32>
      %310 = vector.broadcast %7 : vector<32x1xf32> to vector<32x32xf32>
      %311 = arith.mulf %309, %310 : vector<32x32xf32>
      %cst_115 = arith.constant -2.000000e-01 : f32
      %312 = vector.broadcast %cst_115 : f32 to vector<32x32xf32>
      %313 = arith.mulf %312, %302 : vector<32x32xf32>
      %cst_116 = arith.constant -1.000000e-01 : f32
      %314 = vector.broadcast %cst_116 : f32 to vector<32x32xf32>
      %315 = arith.mulf %314, %305 : vector<32x32xf32>
      %316 = arith.addf %313, %315 : vector<32x32xf32>
      %cst_117 = arith.constant 1.000000e-01 : f32
      %317 = vector.broadcast %cst_117 : f32 to vector<32x32xf32>
      %318 = arith.mulf %317, %308 : vector<32x32xf32>
      %319 = arith.addf %316, %318 : vector<32x32xf32>
      %cst_118 = arith.constant 2.000000e-01 : f32
      %320 = vector.broadcast %cst_118 : f32 to vector<32x32xf32>
      %321 = arith.mulf %320, %311 : vector<32x32xf32>
      %322 = arith.addf %319, %321 : vector<32x32xf32>
      %cst_119 = arith.constant -5.000000e-01 : f32
      %323 = vector.broadcast %cst_119 : f32 to vector<32x32xf32>
      %324 = arith.mulf %323, %305 : vector<32x32xf32>
      %cst_120 = arith.constant 5.000000e-01 : f32
      %325 = vector.broadcast %cst_120 : f32 to vector<32x32xf32>
      %326 = arith.mulf %325, %308 : vector<32x32xf32>
      %327 = arith.addf %324, %326 : vector<32x32xf32>
      %328 = tpu.concatenate %299, %322, %327 in 1 : vector<32x32xf32>, vector<32x32xf32>, vector<32x32xf32> -> vector<32x96xf32>
      %cst_121 = arith.constant 0.000000e+00 : f32
      %329 = vector.broadcast %cst_121 : f32 to vector<32x96xf32>
      %330 = arith.maximumf %328, %329 : vector<32x96xf32>
      %331 = arith.index_cast %268 : i32 to index
      %c0_122 = arith.constant 0 : index
      %c0_123 = arith.constant 0 : index
      %332 = vector.load %arg8[%331, %c0_122, %c0_123] : memref<49x2x96xf32, #tpu.memory_space<vmem>>, vector<1x2x96xf32>
      %333 = vector.shape_cast %332 : vector<1x2x96xf32> to vector<2x96xf32>
      %334 = vector.extract_strided_slice %333 {offsets = [0, 0], sizes = [1, 96], strides = [1, 1]} : vector<2x96xf32> to vector<1x96xf32>
      %335 = vector.shape_cast %334 : vector<1x96xf32> to vector<96xf32>
      %336 = vector.shape_cast %335 : vector<96xf32> to vector<1x96xf32>
      %337 = vector.broadcast %336 : vector<1x96xf32> to vector<32x96xf32>
      %338 = arith.mulf %330, %337 : vector<32x96xf32>
      %339 = vector.extract_strided_slice %333 {offsets = [1, 0], sizes = [1, 96], strides = [1, 1]} : vector<2x96xf32> to vector<1x96xf32>
      %340 = vector.shape_cast %339 : vector<1x96xf32> to vector<96xf32>
      %341 = vector.shape_cast %340 : vector<96xf32> to vector<1x96xf32>
      %342 = vector.broadcast %341 : vector<1x96xf32> to vector<32x96xf32>
      %343 = arith.addf %338, %342 : vector<32x96xf32>
      %c2_124 = arith.constant 2 : index
      %c0_125 = arith.constant 0 : index
      %c0_126 = arith.constant 0 : index
      %344 = vector.load %arg9[%c2_124, %c0_125, %c0_126] : memref<7x96x12xbf16, #tpu.memory_space<vmem>>, vector<1x96x12xbf16>
      %345 = vector.shape_cast %344 : vector<1x96x12xbf16> to vector<96x12xbf16>
      %346 = arith.truncf %343 : vector<32x96xf32> to vector<32x96xbf16>
      %cst_127 = arith.constant dense<0.000000e+00> : vector<32x12xf32>
      %347 = tpu.matmul %346, %345, %cst_127 {dimension_numbers = #tpu.dot_dimension_numbers<[1], [0], [0], [1], [0, 0, 1, 1], [], []>} : vector<32x96xbf16>, vector<96x12xbf16>, vector<32x12xf32> -> vector<32x12xf32>
      %c7_i32_128 = arith.constant 7 : i32
      %348 = arith.muli %arg22, %c7_i32_128 : i32
      %c3_i32 = arith.constant 3 : i32
      %349 = arith.addi %348, %c3_i32 : i32
      %350 = vector.extract_strided_slice %101 {offsets = [0, 36], sizes = [32, 12], strides = [1, 1]} : vector<32x96xf32> to vector<32x12xf32>
      %351 = tpu.concatenate %343, %350 in 1 : vector<32x96xf32>, vector<32x12xf32> -> vector<32x108xf32>
      %352 = arith.index_cast %349 : i32 to index
      %c0_129 = arith.constant 0 : index
      %c0_130 = arith.constant 0 : index
      %c0_131 = arith.constant 0 : index
      %353 = vector.load %arg6[%352, %c0_129, %c0_130, %c0_131] : memref<49x3x108x32xbf16, #tpu.memory_space<vmem>>, vector<1x3x108x32xbf16>
      %354 = vector.shape_cast %353 : vector<1x3x108x32xbf16> to vector<3x108x32xbf16>
      %355 = arith.index_cast %349 : i32 to index
      %c0_132 = arith.constant 0 : index
      %356 = vector.load %arg7[%355, %c0_132] : memref<49x32xf32, #tpu.memory_space<vmem>>, vector<1x32xf32>
      %357 = vector.shape_cast %356 : vector<1x32xf32> to vector<32xf32>
      %c1_i32_133 = arith.constant 1 : i32
      %358 = tpu.dynamic_rotate %351 by %c1_i32_133 dim 0 : vector<32x108xf32>, i32 -> vector<32x108xf32>
      %359 = vector.broadcast %3 : vector<32x1xf32> to vector<32x108xf32>
      %360 = arith.mulf %358, %359 : vector<32x108xf32>
      %361 = vector.extract_strided_slice %354 {offsets = [0, 0, 0], sizes = [1, 108, 32], strides = [1, 1, 1]} : vector<3x108x32xbf16> to vector<1x108x32xbf16>
      %362 = vector.shape_cast %361 : vector<1x108x32xbf16> to vector<108x32xbf16>
      %363 = arith.truncf %360 : vector<32x108xf32> to vector<32x108xbf16>
      %cst_134 = arith.constant dense<0.000000e+00> : vector<32x32xf32>
      %364 = tpu.matmul %363, %362, %cst_134 {dimension_numbers = #tpu.dot_dimension_numbers<[1], [0], [0], [1], [0, 0, 1, 1], [], []>} : vector<32x108xbf16>, vector<108x32xbf16>, vector<32x32xf32> -> vector<32x32xf32>
      %365 = vector.shape_cast %357 : vector<32xf32> to vector<1x32xf32>
      %366 = vector.broadcast %365 : vector<1x32xf32> to vector<32x32xf32>
      %367 = arith.addf %366, %364 : vector<32x32xf32>
      %368 = vector.extract_strided_slice %354 {offsets = [1, 0, 0], sizes = [1, 108, 32], strides = [1, 1, 1]} : vector<3x108x32xbf16> to vector<1x108x32xbf16>
      %369 = vector.shape_cast %368 : vector<1x108x32xbf16> to vector<108x32xbf16>
      %370 = arith.truncf %351 : vector<32x108xf32> to vector<32x108xbf16>
      %cst_135 = arith.constant dense<0.000000e+00> : vector<32x32xf32>
      %371 = tpu.matmul %370, %369, %cst_135 {dimension_numbers = #tpu.dot_dimension_numbers<[1], [0], [0], [1], [0, 0, 1, 1], [], []>} : vector<32x108xbf16>, vector<108x32xbf16>, vector<32x32xf32> -> vector<32x32xf32>
      %372 = arith.addf %367, %371 : vector<32x32xf32>
      %c31_i32_136 = arith.constant 31 : i32
      %373 = tpu.dynamic_rotate %351 by %c31_i32_136 dim 0 : vector<32x108xf32>, i32 -> vector<32x108xf32>
      %374 = vector.broadcast %5 : vector<32x1xf32> to vector<32x108xf32>
      %375 = arith.mulf %373, %374 : vector<32x108xf32>
      %376 = vector.extract_strided_slice %354 {offsets = [2, 0, 0], sizes = [1, 108, 32], strides = [1, 1, 1]} : vector<3x108x32xbf16> to vector<1x108x32xbf16>
      %377 = vector.shape_cast %376 : vector<1x108x32xbf16> to vector<108x32xbf16>
      %378 = arith.truncf %375 : vector<32x108xf32> to vector<32x108xbf16>
      %cst_137 = arith.constant dense<0.000000e+00> : vector<32x32xf32>
      %379 = tpu.matmul %378, %377, %cst_137 {dimension_numbers = #tpu.dot_dimension_numbers<[1], [0], [0], [1], [0, 0, 1, 1], [], []>} : vector<32x108xbf16>, vector<108x32xbf16>, vector<32x32xf32> -> vector<32x32xf32>
      %380 = arith.addf %372, %379 : vector<32x32xf32>
      %c2_i32_138 = arith.constant 2 : i32
      %381 = tpu.dynamic_rotate %380 by %c2_i32_138 dim 0 : vector<32x32xf32>, i32 -> vector<32x32xf32>
      %382 = vector.broadcast %1 : vector<32x1xf32> to vector<32x32xf32>
      %383 = arith.mulf %381, %382 : vector<32x32xf32>
      %c1_i32_139 = arith.constant 1 : i32
      %384 = tpu.dynamic_rotate %380 by %c1_i32_139 dim 0 : vector<32x32xf32>, i32 -> vector<32x32xf32>
      %385 = vector.broadcast %3 : vector<32x1xf32> to vector<32x32xf32>
      %386 = arith.mulf %384, %385 : vector<32x32xf32>
      %c31_i32_140 = arith.constant 31 : i32
      %387 = tpu.dynamic_rotate %380 by %c31_i32_140 dim 0 : vector<32x32xf32>, i32 -> vector<32x32xf32>
      %388 = vector.broadcast %5 : vector<32x1xf32> to vector<32x32xf32>
      %389 = arith.mulf %387, %388 : vector<32x32xf32>
      %c30_i32_141 = arith.constant 30 : i32
      %390 = tpu.dynamic_rotate %380 by %c30_i32_141 dim 0 : vector<32x32xf32>, i32 -> vector<32x32xf32>
      %391 = vector.broadcast %7 : vector<32x1xf32> to vector<32x32xf32>
      %392 = arith.mulf %390, %391 : vector<32x32xf32>
      %cst_142 = arith.constant -2.000000e-01 : f32
      %393 = vector.broadcast %cst_142 : f32 to vector<32x32xf32>
      %394 = arith.mulf %393, %383 : vector<32x32xf32>
      %cst_143 = arith.constant -1.000000e-01 : f32
      %395 = vector.broadcast %cst_143 : f32 to vector<32x32xf32>
      %396 = arith.mulf %395, %386 : vector<32x32xf32>
      %397 = arith.addf %394, %396 : vector<32x32xf32>
      %cst_144 = arith.constant 1.000000e-01 : f32
      %398 = vector.broadcast %cst_144 : f32 to vector<32x32xf32>
      %399 = arith.mulf %398, %389 : vector<32x32xf32>
      %400 = arith.addf %397, %399 : vector<32x32xf32>
      %cst_145 = arith.constant 2.000000e-01 : f32
      %401 = vector.broadcast %cst_145 : f32 to vector<32x32xf32>
      %402 = arith.mulf %401, %392 : vector<32x32xf32>
      %403 = arith.addf %400, %402 : vector<32x32xf32>
      %cst_146 = arith.constant -5.000000e-01 : f32
      %404 = vector.broadcast %cst_146 : f32 to vector<32x32xf32>
      %405 = arith.mulf %404, %386 : vector<32x32xf32>
      %cst_147 = arith.constant 5.000000e-01 : f32
      %406 = vector.broadcast %cst_147 : f32 to vector<32x32xf32>
      %407 = arith.mulf %406, %389 : vector<32x32xf32>
      %408 = arith.addf %405, %407 : vector<32x32xf32>
      %409 = tpu.concatenate %380, %403, %408 in 1 : vector<32x32xf32>, vector<32x32xf32>, vector<32x32xf32> -> vector<32x96xf32>
      %cst_148 = arith.constant 0.000000e+00 : f32
      %410 = vector.broadcast %cst_148 : f32 to vector<32x96xf32>
      %411 = arith.maximumf %409, %410 : vector<32x96xf32>
      %412 = arith.index_cast %349 : i32 to index
      %c0_149 = arith.constant 0 : index
      %c0_150 = arith.constant 0 : index
      %413 = vector.load %arg8[%412, %c0_149, %c0_150] : memref<49x2x96xf32, #tpu.memory_space<vmem>>, vector<1x2x96xf32>
      %414 = vector.shape_cast %413 : vector<1x2x96xf32> to vector<2x96xf32>
      %415 = vector.extract_strided_slice %414 {offsets = [0, 0], sizes = [1, 96], strides = [1, 1]} : vector<2x96xf32> to vector<1x96xf32>
      %416 = vector.shape_cast %415 : vector<1x96xf32> to vector<96xf32>
      %417 = vector.shape_cast %416 : vector<96xf32> to vector<1x96xf32>
      %418 = vector.broadcast %417 : vector<1x96xf32> to vector<32x96xf32>
      %419 = arith.mulf %411, %418 : vector<32x96xf32>
      %420 = vector.extract_strided_slice %414 {offsets = [1, 0], sizes = [1, 96], strides = [1, 1]} : vector<2x96xf32> to vector<1x96xf32>
      %421 = vector.shape_cast %420 : vector<1x96xf32> to vector<96xf32>
      %422 = vector.shape_cast %421 : vector<96xf32> to vector<1x96xf32>
      %423 = vector.broadcast %422 : vector<1x96xf32> to vector<32x96xf32>
      %424 = arith.addf %419, %423 : vector<32x96xf32>
      %c3_151 = arith.constant 3 : index
      %c0_152 = arith.constant 0 : index
      %c0_153 = arith.constant 0 : index
      %425 = vector.load %arg9[%c3_151, %c0_152, %c0_153] : memref<7x96x12xbf16, #tpu.memory_space<vmem>>, vector<1x96x12xbf16>
      %426 = vector.shape_cast %425 : vector<1x96x12xbf16> to vector<96x12xbf16>
      %427 = arith.truncf %424 : vector<32x96xf32> to vector<32x96xbf16>
      %cst_154 = arith.constant dense<0.000000e+00> : vector<32x12xf32>
      %428 = tpu.matmul %427, %426, %cst_154 {dimension_numbers = #tpu.dot_dimension_numbers<[1], [0], [0], [1], [0, 0, 1, 1], [], []>} : vector<32x96xbf16>, vector<96x12xbf16>, vector<32x12xf32> -> vector<32x12xf32>
      %c7_i32_155 = arith.constant 7 : i32
      %429 = arith.muli %arg22, %c7_i32_155 : i32
      %c4_i32 = arith.constant 4 : i32
      %430 = arith.addi %429, %c4_i32 : i32
      %431 = vector.extract_strided_slice %101 {offsets = [0, 48], sizes = [32, 12], strides = [1, 1]} : vector<32x96xf32> to vector<32x12xf32>
      %432 = tpu.concatenate %424, %431 in 1 : vector<32x96xf32>, vector<32x12xf32> -> vector<32x108xf32>
      %433 = arith.index_cast %430 : i32 to index
      %c0_156 = arith.constant 0 : index
      %c0_157 = arith.constant 0 : index
      %c0_158 = arith.constant 0 : index
      %434 = vector.load %arg6[%433, %c0_156, %c0_157, %c0_158] : memref<49x3x108x32xbf16, #tpu.memory_space<vmem>>, vector<1x3x108x32xbf16>
      %435 = vector.shape_cast %434 : vector<1x3x108x32xbf16> to vector<3x108x32xbf16>
      %436 = arith.index_cast %430 : i32 to index
      %c0_159 = arith.constant 0 : index
      %437 = vector.load %arg7[%436, %c0_159] : memref<49x32xf32, #tpu.memory_space<vmem>>, vector<1x32xf32>
      %438 = vector.shape_cast %437 : vector<1x32xf32> to vector<32xf32>
      %c1_i32_160 = arith.constant 1 : i32
      %439 = tpu.dynamic_rotate %432 by %c1_i32_160 dim 0 : vector<32x108xf32>, i32 -> vector<32x108xf32>
      %440 = vector.broadcast %3 : vector<32x1xf32> to vector<32x108xf32>
      %441 = arith.mulf %439, %440 : vector<32x108xf32>
      %442 = vector.extract_strided_slice %435 {offsets = [0, 0, 0], sizes = [1, 108, 32], strides = [1, 1, 1]} : vector<3x108x32xbf16> to vector<1x108x32xbf16>
      %443 = vector.shape_cast %442 : vector<1x108x32xbf16> to vector<108x32xbf16>
      %444 = arith.truncf %441 : vector<32x108xf32> to vector<32x108xbf16>
      %cst_161 = arith.constant dense<0.000000e+00> : vector<32x32xf32>
      %445 = tpu.matmul %444, %443, %cst_161 {dimension_numbers = #tpu.dot_dimension_numbers<[1], [0], [0], [1], [0, 0, 1, 1], [], []>} : vector<32x108xbf16>, vector<108x32xbf16>, vector<32x32xf32> -> vector<32x32xf32>
      %446 = vector.shape_cast %438 : vector<32xf32> to vector<1x32xf32>
      %447 = vector.broadcast %446 : vector<1x32xf32> to vector<32x32xf32>
      %448 = arith.addf %447, %445 : vector<32x32xf32>
      %449 = vector.extract_strided_slice %435 {offsets = [1, 0, 0], sizes = [1, 108, 32], strides = [1, 1, 1]} : vector<3x108x32xbf16> to vector<1x108x32xbf16>
      %450 = vector.shape_cast %449 : vector<1x108x32xbf16> to vector<108x32xbf16>
      %451 = arith.truncf %432 : vector<32x108xf32> to vector<32x108xbf16>
      %cst_162 = arith.constant dense<0.000000e+00> : vector<32x32xf32>
      %452 = tpu.matmul %451, %450, %cst_162 {dimension_numbers = #tpu.dot_dimension_numbers<[1], [0], [0], [1], [0, 0, 1, 1], [], []>} : vector<32x108xbf16>, vector<108x32xbf16>, vector<32x32xf32> -> vector<32x32xf32>
      %453 = arith.addf %448, %452 : vector<32x32xf32>
      %c31_i32_163 = arith.constant 31 : i32
      %454 = tpu.dynamic_rotate %432 by %c31_i32_163 dim 0 : vector<32x108xf32>, i32 -> vector<32x108xf32>
      %455 = vector.broadcast %5 : vector<32x1xf32> to vector<32x108xf32>
      %456 = arith.mulf %454, %455 : vector<32x108xf32>
      %457 = vector.extract_strided_slice %435 {offsets = [2, 0, 0], sizes = [1, 108, 32], strides = [1, 1, 1]} : vector<3x108x32xbf16> to vector<1x108x32xbf16>
      %458 = vector.shape_cast %457 : vector<1x108x32xbf16> to vector<108x32xbf16>
      %459 = arith.truncf %456 : vector<32x108xf32> to vector<32x108xbf16>
      %cst_164 = arith.constant dense<0.000000e+00> : vector<32x32xf32>
      %460 = tpu.matmul %459, %458, %cst_164 {dimension_numbers = #tpu.dot_dimension_numbers<[1], [0], [0], [1], [0, 0, 1, 1], [], []>} : vector<32x108xbf16>, vector<108x32xbf16>, vector<32x32xf32> -> vector<32x32xf32>
      %461 = arith.addf %453, %460 : vector<32x32xf32>
      %c2_i32_165 = arith.constant 2 : i32
      %462 = tpu.dynamic_rotate %461 by %c2_i32_165 dim 0 : vector<32x32xf32>, i32 -> vector<32x32xf32>
      %463 = vector.broadcast %1 : vector<32x1xf32> to vector<32x32xf32>
      %464 = arith.mulf %462, %463 : vector<32x32xf32>
      %c1_i32_166 = arith.constant 1 : i32
      %465 = tpu.dynamic_rotate %461 by %c1_i32_166 dim 0 : vector<32x32xf32>, i32 -> vector<32x32xf32>
      %466 = vector.broadcast %3 : vector<32x1xf32> to vector<32x32xf32>
      %467 = arith.mulf %465, %466 : vector<32x32xf32>
      %c31_i32_167 = arith.constant 31 : i32
      %468 = tpu.dynamic_rotate %461 by %c31_i32_167 dim 0 : vector<32x32xf32>, i32 -> vector<32x32xf32>
      %469 = vector.broadcast %5 : vector<32x1xf32> to vector<32x32xf32>
      %470 = arith.mulf %468, %469 : vector<32x32xf32>
      %c30_i32_168 = arith.constant 30 : i32
      %471 = tpu.dynamic_rotate %461 by %c30_i32_168 dim 0 : vector<32x32xf32>, i32 -> vector<32x32xf32>
      %472 = vector.broadcast %7 : vector<32x1xf32> to vector<32x32xf32>
      %473 = arith.mulf %471, %472 : vector<32x32xf32>
      %cst_169 = arith.constant -2.000000e-01 : f32
      %474 = vector.broadcast %cst_169 : f32 to vector<32x32xf32>
      %475 = arith.mulf %474, %464 : vector<32x32xf32>
      %cst_170 = arith.constant -1.000000e-01 : f32
      %476 = vector.broadcast %cst_170 : f32 to vector<32x32xf32>
      %477 = arith.mulf %476, %467 : vector<32x32xf32>
      %478 = arith.addf %475, %477 : vector<32x32xf32>
      %cst_171 = arith.constant 1.000000e-01 : f32
      %479 = vector.broadcast %cst_171 : f32 to vector<32x32xf32>
      %480 = arith.mulf %479, %470 : vector<32x32xf32>
      %481 = arith.addf %478, %480 : vector<32x32xf32>
      %cst_172 = arith.constant 2.000000e-01 : f32
      %482 = vector.broadcast %cst_172 : f32 to vector<32x32xf32>
      %483 = arith.mulf %482, %473 : vector<32x32xf32>
      %484 = arith.addf %481, %483 : vector<32x32xf32>
      %cst_173 = arith.constant -5.000000e-01 : f32
      %485 = vector.broadcast %cst_173 : f32 to vector<32x32xf32>
      %486 = arith.mulf %485, %467 : vector<32x32xf32>
      %cst_174 = arith.constant 5.000000e-01 : f32
      %487 = vector.broadcast %cst_174 : f32 to vector<32x32xf32>
      %488 = arith.mulf %487, %470 : vector<32x32xf32>
      %489 = arith.addf %486, %488 : vector<32x32xf32>
      %490 = tpu.concatenate %461, %484, %489 in 1 : vector<32x32xf32>, vector<32x32xf32>, vector<32x32xf32> -> vector<32x96xf32>
      %cst_175 = arith.constant 0.000000e+00 : f32
      %491 = vector.broadcast %cst_175 : f32 to vector<32x96xf32>
      %492 = arith.maximumf %490, %491 : vector<32x96xf32>
      %493 = arith.index_cast %430 : i32 to index
      %c0_176 = arith.constant 0 : index
      %c0_177 = arith.constant 0 : index
      %494 = vector.load %arg8[%493, %c0_176, %c0_177] : memref<49x2x96xf32, #tpu.memory_space<vmem>>, vector<1x2x96xf32>
      %495 = vector.shape_cast %494 : vector<1x2x96xf32> to vector<2x96xf32>
      %496 = vector.extract_strided_slice %495 {offsets = [0, 0], sizes = [1, 96], strides = [1, 1]} : vector<2x96xf32> to vector<1x96xf32>
      %497 = vector.shape_cast %496 : vector<1x96xf32> to vector<96xf32>
      %498 = vector.shape_cast %497 : vector<96xf32> to vector<1x96xf32>
      %499 = vector.broadcast %498 : vector<1x96xf32> to vector<32x96xf32>
      %500 = arith.mulf %492, %499 : vector<32x96xf32>
      %501 = vector.extract_strided_slice %495 {offsets = [1, 0], sizes = [1, 96], strides = [1, 1]} : vector<2x96xf32> to vector<1x96xf32>
      %502 = vector.shape_cast %501 : vector<1x96xf32> to vector<96xf32>
      %503 = vector.shape_cast %502 : vector<96xf32> to vector<1x96xf32>
      %504 = vector.broadcast %503 : vector<1x96xf32> to vector<32x96xf32>
      %505 = arith.addf %500, %504 : vector<32x96xf32>
      %c4 = arith.constant 4 : index
      %c0_178 = arith.constant 0 : index
      %c0_179 = arith.constant 0 : index
      %506 = vector.load %arg9[%c4, %c0_178, %c0_179] : memref<7x96x12xbf16, #tpu.memory_space<vmem>>, vector<1x96x12xbf16>
      %507 = vector.shape_cast %506 : vector<1x96x12xbf16> to vector<96x12xbf16>
      %508 = arith.truncf %505 : vector<32x96xf32> to vector<32x96xbf16>
      %cst_180 = arith.constant dense<0.000000e+00> : vector<32x12xf32>
      %509 = tpu.matmul %508, %507, %cst_180 {dimension_numbers = #tpu.dot_dimension_numbers<[1], [0], [0], [1], [0, 0, 1, 1], [], []>} : vector<32x96xbf16>, vector<96x12xbf16>, vector<32x12xf32> -> vector<32x12xf32>
      %c7_i32_181 = arith.constant 7 : i32
      %510 = arith.muli %arg22, %c7_i32_181 : i32
      %c5_i32 = arith.constant 5 : i32
      %511 = arith.addi %510, %c5_i32 : i32
      %512 = vector.extract_strided_slice %101 {offsets = [0, 60], sizes = [32, 12], strides = [1, 1]} : vector<32x96xf32> to vector<32x12xf32>
      %513 = tpu.concatenate %505, %512 in 1 : vector<32x96xf32>, vector<32x12xf32> -> vector<32x108xf32>
      %514 = arith.index_cast %511 : i32 to index
      %c0_182 = arith.constant 0 : index
      %c0_183 = arith.constant 0 : index
      %c0_184 = arith.constant 0 : index
      %515 = vector.load %arg6[%514, %c0_182, %c0_183, %c0_184] : memref<49x3x108x32xbf16, #tpu.memory_space<vmem>>, vector<1x3x108x32xbf16>
      %516 = vector.shape_cast %515 : vector<1x3x108x32xbf16> to vector<3x108x32xbf16>
      %517 = arith.index_cast %511 : i32 to index
      %c0_185 = arith.constant 0 : index
      %518 = vector.load %arg7[%517, %c0_185] : memref<49x32xf32, #tpu.memory_space<vmem>>, vector<1x32xf32>
      %519 = vector.shape_cast %518 : vector<1x32xf32> to vector<32xf32>
      %c1_i32_186 = arith.constant 1 : i32
      %520 = tpu.dynamic_rotate %513 by %c1_i32_186 dim 0 : vector<32x108xf32>, i32 -> vector<32x108xf32>
      %521 = vector.broadcast %3 : vector<32x1xf32> to vector<32x108xf32>
      %522 = arith.mulf %520, %521 : vector<32x108xf32>
      %523 = vector.extract_strided_slice %516 {offsets = [0, 0, 0], sizes = [1, 108, 32], strides = [1, 1, 1]} : vector<3x108x32xbf16> to vector<1x108x32xbf16>
      %524 = vector.shape_cast %523 : vector<1x108x32xbf16> to vector<108x32xbf16>
      %525 = arith.truncf %522 : vector<32x108xf32> to vector<32x108xbf16>
      %cst_187 = arith.constant dense<0.000000e+00> : vector<32x32xf32>
      %526 = tpu.matmul %525, %524, %cst_187 {dimension_numbers = #tpu.dot_dimension_numbers<[1], [0], [0], [1], [0, 0, 1, 1], [], []>} : vector<32x108xbf16>, vector<108x32xbf16>, vector<32x32xf32> -> vector<32x32xf32>
      %527 = vector.shape_cast %519 : vector<32xf32> to vector<1x32xf32>
      %528 = vector.broadcast %527 : vector<1x32xf32> to vector<32x32xf32>
      %529 = arith.addf %528, %526 : vector<32x32xf32>
      %530 = vector.extract_strided_slice %516 {offsets = [1, 0, 0], sizes = [1, 108, 32], strides = [1, 1, 1]} : vector<3x108x32xbf16> to vector<1x108x32xbf16>
      %531 = vector.shape_cast %530 : vector<1x108x32xbf16> to vector<108x32xbf16>
      %532 = arith.truncf %513 : vector<32x108xf32> to vector<32x108xbf16>
      %cst_188 = arith.constant dense<0.000000e+00> : vector<32x32xf32>
      %533 = tpu.matmul %532, %531, %cst_188 {dimension_numbers = #tpu.dot_dimension_numbers<[1], [0], [0], [1], [0, 0, 1, 1], [], []>} : vector<32x108xbf16>, vector<108x32xbf16>, vector<32x32xf32> -> vector<32x32xf32>
      %534 = arith.addf %529, %533 : vector<32x32xf32>
      %c31_i32_189 = arith.constant 31 : i32
      %535 = tpu.dynamic_rotate %513 by %c31_i32_189 dim 0 : vector<32x108xf32>, i32 -> vector<32x108xf32>
      %536 = vector.broadcast %5 : vector<32x1xf32> to vector<32x108xf32>
      %537 = arith.mulf %535, %536 : vector<32x108xf32>
      %538 = vector.extract_strided_slice %516 {offsets = [2, 0, 0], sizes = [1, 108, 32], strides = [1, 1, 1]} : vector<3x108x32xbf16> to vector<1x108x32xbf16>
      %539 = vector.shape_cast %538 : vector<1x108x32xbf16> to vector<108x32xbf16>
      %540 = arith.truncf %537 : vector<32x108xf32> to vector<32x108xbf16>
      %cst_190 = arith.constant dense<0.000000e+00> : vector<32x32xf32>
      %541 = tpu.matmul %540, %539, %cst_190 {dimension_numbers = #tpu.dot_dimension_numbers<[1], [0], [0], [1], [0, 0, 1, 1], [], []>} : vector<32x108xbf16>, vector<108x32xbf16>, vector<32x32xf32> -> vector<32x32xf32>
      %542 = arith.addf %534, %541 : vector<32x32xf32>
      %c2_i32_191 = arith.constant 2 : i32
      %543 = tpu.dynamic_rotate %542 by %c2_i32_191 dim 0 : vector<32x32xf32>, i32 -> vector<32x32xf32>
      %544 = vector.broadcast %1 : vector<32x1xf32> to vector<32x32xf32>
      %545 = arith.mulf %543, %544 : vector<32x32xf32>
      %c1_i32_192 = arith.constant 1 : i32
      %546 = tpu.dynamic_rotate %542 by %c1_i32_192 dim 0 : vector<32x32xf32>, i32 -> vector<32x32xf32>
      %547 = vector.broadcast %3 : vector<32x1xf32> to vector<32x32xf32>
      %548 = arith.mulf %546, %547 : vector<32x32xf32>
      %c31_i32_193 = arith.constant 31 : i32
      %549 = tpu.dynamic_rotate %542 by %c31_i32_193 dim 0 : vector<32x32xf32>, i32 -> vector<32x32xf32>
      %550 = vector.broadcast %5 : vector<32x1xf32> to vector<32x32xf32>
      %551 = arith.mulf %549, %550 : vector<32x32xf32>
      %c30_i32_194 = arith.constant 30 : i32
      %552 = tpu.dynamic_rotate %542 by %c30_i32_194 dim 0 : vector<32x32xf32>, i32 -> vector<32x32xf32>
      %553 = vector.broadcast %7 : vector<32x1xf32> to vector<32x32xf32>
      %554 = arith.mulf %552, %553 : vector<32x32xf32>
      %cst_195 = arith.constant -2.000000e-01 : f32
      %555 = vector.broadcast %cst_195 : f32 to vector<32x32xf32>
      %556 = arith.mulf %555, %545 : vector<32x32xf32>
      %cst_196 = arith.constant -1.000000e-01 : f32
      %557 = vector.broadcast %cst_196 : f32 to vector<32x32xf32>
      %558 = arith.mulf %557, %548 : vector<32x32xf32>
      %559 = arith.addf %556, %558 : vector<32x32xf32>
      %cst_197 = arith.constant 1.000000e-01 : f32
      %560 = vector.broadcast %cst_197 : f32 to vector<32x32xf32>
      %561 = arith.mulf %560, %551 : vector<32x32xf32>
      %562 = arith.addf %559, %561 : vector<32x32xf32>
      %cst_198 = arith.constant 2.000000e-01 : f32
      %563 = vector.broadcast %cst_198 : f32 to vector<32x32xf32>
      %564 = arith.mulf %563, %554 : vector<32x32xf32>
      %565 = arith.addf %562, %564 : vector<32x32xf32>
      %cst_199 = arith.constant -5.000000e-01 : f32
      %566 = vector.broadcast %cst_199 : f32 to vector<32x32xf32>
      %567 = arith.mulf %566, %548 : vector<32x32xf32>
      %cst_200 = arith.constant 5.000000e-01 : f32
      %568 = vector.broadcast %cst_200 : f32 to vector<32x32xf32>
      %569 = arith.mulf %568, %551 : vector<32x32xf32>
      %570 = arith.addf %567, %569 : vector<32x32xf32>
      %571 = tpu.concatenate %542, %565, %570 in 1 : vector<32x32xf32>, vector<32x32xf32>, vector<32x32xf32> -> vector<32x96xf32>
      %cst_201 = arith.constant 0.000000e+00 : f32
      %572 = vector.broadcast %cst_201 : f32 to vector<32x96xf32>
      %573 = arith.maximumf %571, %572 : vector<32x96xf32>
      %574 = arith.index_cast %511 : i32 to index
      %c0_202 = arith.constant 0 : index
      %c0_203 = arith.constant 0 : index
      %575 = vector.load %arg8[%574, %c0_202, %c0_203] : memref<49x2x96xf32, #tpu.memory_space<vmem>>, vector<1x2x96xf32>
      %576 = vector.shape_cast %575 : vector<1x2x96xf32> to vector<2x96xf32>
      %577 = vector.extract_strided_slice %576 {offsets = [0, 0], sizes = [1, 96], strides = [1, 1]} : vector<2x96xf32> to vector<1x96xf32>
      %578 = vector.shape_cast %577 : vector<1x96xf32> to vector<96xf32>
      %579 = vector.shape_cast %578 : vector<96xf32> to vector<1x96xf32>
      %580 = vector.broadcast %579 : vector<1x96xf32> to vector<32x96xf32>
      %581 = arith.mulf %573, %580 : vector<32x96xf32>
      %582 = vector.extract_strided_slice %576 {offsets = [1, 0], sizes = [1, 96], strides = [1, 1]} : vector<2x96xf32> to vector<1x96xf32>
      %583 = vector.shape_cast %582 : vector<1x96xf32> to vector<96xf32>
      %584 = vector.shape_cast %583 : vector<96xf32> to vector<1x96xf32>
      %585 = vector.broadcast %584 : vector<1x96xf32> to vector<32x96xf32>
      %586 = arith.addf %581, %585 : vector<32x96xf32>
      %c5 = arith.constant 5 : index
      %c0_204 = arith.constant 0 : index
      %c0_205 = arith.constant 0 : index
      %587 = vector.load %arg9[%c5, %c0_204, %c0_205] : memref<7x96x12xbf16, #tpu.memory_space<vmem>>, vector<1x96x12xbf16>
      %588 = vector.shape_cast %587 : vector<1x96x12xbf16> to vector<96x12xbf16>
      %589 = arith.truncf %586 : vector<32x96xf32> to vector<32x96xbf16>
      %cst_206 = arith.constant dense<0.000000e+00> : vector<32x12xf32>
      %590 = tpu.matmul %589, %588, %cst_206 {dimension_numbers = #tpu.dot_dimension_numbers<[1], [0], [0], [1], [0, 0, 1, 1], [], []>} : vector<32x96xbf16>, vector<96x12xbf16>, vector<32x12xf32> -> vector<32x12xf32>
      %c7_i32_207 = arith.constant 7 : i32
      %591 = arith.muli %arg22, %c7_i32_207 : i32
      %c6_i32 = arith.constant 6 : i32
      %592 = arith.addi %591, %c6_i32 : i32
      %593 = vector.extract_strided_slice %101 {offsets = [0, 72], sizes = [32, 12], strides = [1, 1]} : vector<32x96xf32> to vector<32x12xf32>
      %594 = tpu.concatenate %586, %593 in 1 : vector<32x96xf32>, vector<32x12xf32> -> vector<32x108xf32>
      %595 = arith.index_cast %592 : i32 to index
      %c0_208 = arith.constant 0 : index
      %c0_209 = arith.constant 0 : index
      %c0_210 = arith.constant 0 : index
      %596 = vector.load %arg6[%595, %c0_208, %c0_209, %c0_210] : memref<49x3x108x32xbf16, #tpu.memory_space<vmem>>, vector<1x3x108x32xbf16>
      %597 = vector.shape_cast %596 : vector<1x3x108x32xbf16> to vector<3x108x32xbf16>
      %598 = arith.index_cast %592 : i32 to index
      %c0_211 = arith.constant 0 : index
      %599 = vector.load %arg7[%598, %c0_211] : memref<49x32xf32, #tpu.memory_space<vmem>>, vector<1x32xf32>
      %600 = vector.shape_cast %599 : vector<1x32xf32> to vector<32xf32>
      %c1_i32_212 = arith.constant 1 : i32
      %601 = tpu.dynamic_rotate %594 by %c1_i32_212 dim 0 : vector<32x108xf32>, i32 -> vector<32x108xf32>
      %602 = vector.broadcast %3 : vector<32x1xf32> to vector<32x108xf32>
      %603 = arith.mulf %601, %602 : vector<32x108xf32>
      %604 = vector.extract_strided_slice %597 {offsets = [0, 0, 0], sizes = [1, 108, 32], strides = [1, 1, 1]} : vector<3x108x32xbf16> to vector<1x108x32xbf16>
      %605 = vector.shape_cast %604 : vector<1x108x32xbf16> to vector<108x32xbf16>
      %606 = arith.truncf %603 : vector<32x108xf32> to vector<32x108xbf16>
      %cst_213 = arith.constant dense<0.000000e+00> : vector<32x32xf32>
      %607 = tpu.matmul %606, %605, %cst_213 {dimension_numbers = #tpu.dot_dimension_numbers<[1], [0], [0], [1], [0, 0, 1, 1], [], []>} : vector<32x108xbf16>, vector<108x32xbf16>, vector<32x32xf32> -> vector<32x32xf32>
      %608 = vector.shape_cast %600 : vector<32xf32> to vector<1x32xf32>
      %609 = vector.broadcast %608 : vector<1x32xf32> to vector<32x32xf32>
      %610 = arith.addf %609, %607 : vector<32x32xf32>
      %611 = vector.extract_strided_slice %597 {offsets = [1, 0, 0], sizes = [1, 108, 32], strides = [1, 1, 1]} : vector<3x108x32xbf16> to vector<1x108x32xbf16>
      %612 = vector.shape_cast %611 : vector<1x108x32xbf16> to vector<108x32xbf16>
      %613 = arith.truncf %594 : vector<32x108xf32> to vector<32x108xbf16>
      %cst_214 = arith.constant dense<0.000000e+00> : vector<32x32xf32>
      %614 = tpu.matmul %613, %612, %cst_214 {dimension_numbers = #tpu.dot_dimension_numbers<[1], [0], [0], [1], [0, 0, 1, 1], [], []>} : vector<32x108xbf16>, vector<108x32xbf16>, vector<32x32xf32> -> vector<32x32xf32>
      %615 = arith.addf %610, %614 : vector<32x32xf32>
      %c31_i32_215 = arith.constant 31 : i32
      %616 = tpu.dynamic_rotate %594 by %c31_i32_215 dim 0 : vector<32x108xf32>, i32 -> vector<32x108xf32>
      %617 = vector.broadcast %5 : vector<32x1xf32> to vector<32x108xf32>
      %618 = arith.mulf %616, %617 : vector<32x108xf32>
      %619 = vector.extract_strided_slice %597 {offsets = [2, 0, 0], sizes = [1, 108, 32], strides = [1, 1, 1]} : vector<3x108x32xbf16> to vector<1x108x32xbf16>
      %620 = vector.shape_cast %619 : vector<1x108x32xbf16> to vector<108x32xbf16>
      %621 = arith.truncf %618 : vector<32x108xf32> to vector<32x108xbf16>
      %cst_216 = arith.constant dense<0.000000e+00> : vector<32x32xf32>
      %622 = tpu.matmul %621, %620, %cst_216 {dimension_numbers = #tpu.dot_dimension_numbers<[1], [0], [0], [1], [0, 0, 1, 1], [], []>} : vector<32x108xbf16>, vector<108x32xbf16>, vector<32x32xf32> -> vector<32x32xf32>
      %623 = arith.addf %615, %622 : vector<32x32xf32>
      %c2_i32_217 = arith.constant 2 : i32
      %624 = tpu.dynamic_rotate %623 by %c2_i32_217 dim 0 : vector<32x32xf32>, i32 -> vector<32x32xf32>
      %625 = vector.broadcast %1 : vector<32x1xf32> to vector<32x32xf32>
      %626 = arith.mulf %624, %625 : vector<32x32xf32>
      %c1_i32_218 = arith.constant 1 : i32
      %627 = tpu.dynamic_rotate %623 by %c1_i32_218 dim 0 : vector<32x32xf32>, i32 -> vector<32x32xf32>
      %628 = vector.broadcast %3 : vector<32x1xf32> to vector<32x32xf32>
      %629 = arith.mulf %627, %628 : vector<32x32xf32>
      %c31_i32_219 = arith.constant 31 : i32
      %630 = tpu.dynamic_rotate %623 by %c31_i32_219 dim 0 : vector<32x32xf32>, i32 -> vector<32x32xf32>
      %631 = vector.broadcast %5 : vector<32x1xf32> to vector<32x32xf32>
      %632 = arith.mulf %630, %631 : vector<32x32xf32>
      %c30_i32_220 = arith.constant 30 : i32
      %633 = tpu.dynamic_rotate %623 by %c30_i32_220 dim 0 : vector<32x32xf32>, i32 -> vector<32x32xf32>
      %634 = vector.broadcast %7 : vector<32x1xf32> to vector<32x32xf32>
      %635 = arith.mulf %633, %634 : vector<32x32xf32>
      %cst_221 = arith.constant -2.000000e-01 : f32
      %636 = vector.broadcast %cst_221 : f32 to vector<32x32xf32>
      %637 = arith.mulf %636, %626 : vector<32x32xf32>
      %cst_222 = arith.constant -1.000000e-01 : f32
      %638 = vector.broadcast %cst_222 : f32 to vector<32x32xf32>
      %639 = arith.mulf %638, %629 : vector<32x32xf32>
      %640 = arith.addf %637, %639 : vector<32x32xf32>
      %cst_223 = arith.constant 1.000000e-01 : f32
      %641 = vector.broadcast %cst_223 : f32 to vector<32x32xf32>
      %642 = arith.mulf %641, %632 : vector<32x32xf32>
      %643 = arith.addf %640, %642 : vector<32x32xf32>
      %cst_224 = arith.constant 2.000000e-01 : f32
      %644 = vector.broadcast %cst_224 : f32 to vector<32x32xf32>
      %645 = arith.mulf %644, %635 : vector<32x32xf32>
      %646 = arith.addf %643, %645 : vector<32x32xf32>
      %cst_225 = arith.constant -5.000000e-01 : f32
      %647 = vector.broadcast %cst_225 : f32 to vector<32x32xf32>
      %648 = arith.mulf %647, %629 : vector<32x32xf32>
      %cst_226 = arith.constant 5.000000e-01 : f32
      %649 = vector.broadcast %cst_226 : f32 to vector<32x32xf32>
      %650 = arith.mulf %649, %632 : vector<32x32xf32>
      %651 = arith.addf %648, %650 : vector<32x32xf32>
      %652 = tpu.concatenate %623, %646, %651 in 1 : vector<32x32xf32>, vector<32x32xf32>, vector<32x32xf32> -> vector<32x96xf32>
      %cst_227 = arith.constant 0.000000e+00 : f32
      %653 = vector.broadcast %cst_227 : f32 to vector<32x96xf32>
      %654 = arith.maximumf %652, %653 : vector<32x96xf32>
      %655 = arith.index_cast %592 : i32 to index
      %c0_228 = arith.constant 0 : index
      %c0_229 = arith.constant 0 : index
      %656 = vector.load %arg8[%655, %c0_228, %c0_229] : memref<49x2x96xf32, #tpu.memory_space<vmem>>, vector<1x2x96xf32>
      %657 = vector.shape_cast %656 : vector<1x2x96xf32> to vector<2x96xf32>
      %658 = vector.extract_strided_slice %657 {offsets = [0, 0], sizes = [1, 96], strides = [1, 1]} : vector<2x96xf32> to vector<1x96xf32>
      %659 = vector.shape_cast %658 : vector<1x96xf32> to vector<96xf32>
      %660 = vector.shape_cast %659 : vector<96xf32> to vector<1x96xf32>
      %661 = vector.broadcast %660 : vector<1x96xf32> to vector<32x96xf32>
      %662 = arith.mulf %654, %661 : vector<32x96xf32>
      %663 = vector.extract_strided_slice %657 {offsets = [1, 0], sizes = [1, 96], strides = [1, 1]} : vector<2x96xf32> to vector<1x96xf32>
      %664 = vector.shape_cast %663 : vector<1x96xf32> to vector<96xf32>
      %665 = vector.shape_cast %664 : vector<96xf32> to vector<1x96xf32>
      %666 = vector.broadcast %665 : vector<1x96xf32> to vector<32x96xf32>
      %667 = arith.addf %662, %666 : vector<32x96xf32>
      %c6 = arith.constant 6 : index
      %c0_230 = arith.constant 0 : index
      %c0_231 = arith.constant 0 : index
      %668 = vector.load %arg9[%c6, %c0_230, %c0_231] : memref<7x96x12xbf16, #tpu.memory_space<vmem>>, vector<1x96x12xbf16>
      %669 = vector.shape_cast %668 : vector<1x96x12xbf16> to vector<96x12xbf16>
      %670 = arith.truncf %667 : vector<32x96xf32> to vector<32x96xbf16>
      %cst_232 = arith.constant dense<0.000000e+00> : vector<32x12xf32>
      %671 = tpu.matmul %670, %669, %cst_232 {dimension_numbers = #tpu.dot_dimension_numbers<[1], [0], [0], [1], [0, 0, 1, 1], [], []>} : vector<32x96xbf16>, vector<96x12xbf16>, vector<32x12xf32> -> vector<32x12xf32>
      %672 = tpu.concatenate %185, %266, %347, %428, %509, %590, %671, %102 in 1 : vector<32x12xf32>, vector<32x12xf32>, vector<32x12xf32>, vector<32x12xf32>, vector<32x12xf32>, vector<32x12xf32>, vector<32x12xf32>, vector<32x12xf32> -> vector<32x96xf32>
      %673 = arith.index_cast %arg22 : i32 to index
      %c0_233 = arith.constant 0 : index
      %c0_234 = arith.constant 0 : index
      %674 = vector.load %arg10[%673, %c0_233, %c0_234] : memref<7x96x32xbf16, #tpu.memory_space<vmem>>, vector<1x96x32xbf16>
      %675 = vector.shape_cast %674 : vector<1x96x32xbf16> to vector<96x32xbf16>
      %676 = arith.truncf %672 : vector<32x96xf32> to vector<32x96xbf16>
      %cst_235 = arith.constant dense<0.000000e+00> : vector<32x32xf32>
      %677 = tpu.matmul %676, %675, %cst_235 {dimension_numbers = #tpu.dot_dimension_numbers<[1], [0], [0], [1], [0, 0, 1, 1], [], []>} : vector<32x96xbf16>, vector<96x32xbf16>, vector<32x32xf32> -> vector<32x32xf32>
      %678 = arith.index_cast %arg22 : i32 to index
      %c0_236 = arith.constant 0 : index
      %679 = vector.load %arg11[%678, %c0_236] : memref<7x32xf32, #tpu.memory_space<vmem>>, vector<1x32xf32>
      %680 = vector.shape_cast %679 : vector<1x32xf32> to vector<32xf32>
      %681 = vector.shape_cast %680 : vector<32xf32> to vector<1x32xf32>
      %682 = vector.broadcast %681 : vector<1x32xf32> to vector<32x32xf32>
      %683 = arith.addf %677, %682 : vector<32x32xf32>
      %c2_i32_237 = arith.constant 2 : i32
      %684 = tpu.dynamic_rotate %683 by %c2_i32_237 dim 0 : vector<32x32xf32>, i32 -> vector<32x32xf32>
      %685 = vector.broadcast %1 : vector<32x1xf32> to vector<32x32xf32>
      %686 = arith.mulf %684, %685 : vector<32x32xf32>
      %c1_i32_238 = arith.constant 1 : i32
      %687 = tpu.dynamic_rotate %683 by %c1_i32_238 dim 0 : vector<32x32xf32>, i32 -> vector<32x32xf32>
      %688 = vector.broadcast %3 : vector<32x1xf32> to vector<32x32xf32>
      %689 = arith.mulf %687, %688 : vector<32x32xf32>
      %c31_i32_239 = arith.constant 31 : i32
      %690 = tpu.dynamic_rotate %683 by %c31_i32_239 dim 0 : vector<32x32xf32>, i32 -> vector<32x32xf32>
      %691 = vector.broadcast %5 : vector<32x1xf32> to vector<32x32xf32>
      %692 = arith.mulf %690, %691 : vector<32x32xf32>
      %c30_i32_240 = arith.constant 30 : i32
      %693 = tpu.dynamic_rotate %683 by %c30_i32_240 dim 0 : vector<32x32xf32>, i32 -> vector<32x32xf32>
      %694 = vector.broadcast %7 : vector<32x1xf32> to vector<32x32xf32>
      %695 = arith.mulf %693, %694 : vector<32x32xf32>
      %cst_241 = arith.constant -2.000000e-01 : f32
      %696 = vector.broadcast %cst_241 : f32 to vector<32x32xf32>
      %697 = arith.mulf %696, %686 : vector<32x32xf32>
      %cst_242 = arith.constant -1.000000e-01 : f32
      %698 = vector.broadcast %cst_242 : f32 to vector<32x32xf32>
      %699 = arith.mulf %698, %689 : vector<32x32xf32>
      %700 = arith.addf %697, %699 : vector<32x32xf32>
      %cst_243 = arith.constant 1.000000e-01 : f32
      %701 = vector.broadcast %cst_243 : f32 to vector<32x32xf32>
      %702 = arith.mulf %701, %692 : vector<32x32xf32>
      %703 = arith.addf %700, %702 : vector<32x32xf32>
      %cst_244 = arith.constant 2.000000e-01 : f32
      %704 = vector.broadcast %cst_244 : f32 to vector<32x32xf32>
      %705 = arith.mulf %704, %695 : vector<32x32xf32>
      %706 = arith.addf %703, %705 : vector<32x32xf32>
      %cst_245 = arith.constant -5.000000e-01 : f32
      %707 = vector.broadcast %cst_245 : f32 to vector<32x32xf32>
      %708 = arith.mulf %707, %689 : vector<32x32xf32>
      %cst_246 = arith.constant 5.000000e-01 : f32
      %709 = vector.broadcast %cst_246 : f32 to vector<32x32xf32>
      %710 = arith.mulf %709, %692 : vector<32x32xf32>
      %711 = arith.addf %708, %710 : vector<32x32xf32>
      %712 = tpu.concatenate %683, %706, %711 in 1 : vector<32x32xf32>, vector<32x32xf32>, vector<32x32xf32> -> vector<32x96xf32>
      %cst_247 = arith.constant 0.000000e+00 : f32
      %713 = vector.broadcast %cst_247 : f32 to vector<32x96xf32>
      %714 = arith.maximumf %712, %713 : vector<32x96xf32>
      %715 = arith.index_cast %arg22 : i32 to index
      %c0_248 = arith.constant 0 : index
      %c0_249 = arith.constant 0 : index
      %716 = vector.load %arg12[%715, %c0_248, %c0_249] : memref<7x2x96xf32, #tpu.memory_space<vmem>>, vector<1x2x96xf32>
      %717 = vector.shape_cast %716 : vector<1x2x96xf32> to vector<2x96xf32>
      %718 = vector.extract_strided_slice %717 {offsets = [0, 0], sizes = [1, 96], strides = [1, 1]} : vector<2x96xf32> to vector<1x96xf32>
      %719 = vector.shape_cast %718 : vector<1x96xf32> to vector<96xf32>
      %720 = vector.shape_cast %719 : vector<96xf32> to vector<1x96xf32>
      %721 = vector.broadcast %720 : vector<1x96xf32> to vector<32x96xf32>
      %722 = arith.mulf %714, %721 : vector<32x96xf32>
      %723 = vector.extract_strided_slice %717 {offsets = [1, 0], sizes = [1, 96], strides = [1, 1]} : vector<2x96xf32> to vector<1x96xf32>
      %724 = vector.shape_cast %723 : vector<1x96xf32> to vector<96xf32>
      %725 = vector.shape_cast %724 : vector<96xf32> to vector<1x96xf32>
      %726 = vector.broadcast %725 : vector<1x96xf32> to vector<32x96xf32>
      %727 = arith.addf %722, %726 : vector<32x96xf32>
      %728 = vector.shape_cast %727 : vector<32x96xf32> to vector<2x16x96xf32>
      %cst_250 = arith.constant dense<0.000000e+00> : vector<2x96xf32>
      %729 = vector.multi_reduction <add>, %728, %cst_250 [1] : vector<2x16x96xf32> to vector<2x96xf32>
      %cst_251 = arith.constant 1.600000e+01 : f32
      %730 = vector.broadcast %cst_251 : f32 to vector<2x96xf32>
      %731 = arith.divf %729, %730 : vector<2x96xf32>
      %732 = arith.index_cast %arg22 : i32 to index
      %c0_252 = arith.constant 0 : index
      %c0_253 = arith.constant 0 : index
      %733 = vector.load %arg13[%732, %c0_252, %c0_253] : memref<7x96x12xbf16, #tpu.memory_space<vmem>>, vector<1x96x12xbf16>
      %734 = vector.shape_cast %733 : vector<1x96x12xbf16> to vector<96x12xbf16>
      %735 = arith.truncf %731 : vector<2x96xf32> to vector<2x96xbf16>
      %cst_254 = arith.constant dense<0.000000e+00> : vector<2x12xf32>
      %736 = tpu.matmul %735, %734, %cst_254 {dimension_numbers = #tpu.dot_dimension_numbers<[1], [0], [0], [1], [0, 0, 1, 1], [], []>} : vector<2x96xbf16>, vector<96x12xbf16>, vector<2x12xf32> -> vector<2x12xf32>
      %737 = arith.index_cast %arg22 : i32 to index
      %c0_255 = arith.constant 0 : index
      %738 = vector.load %arg14[%737, %c0_255] : memref<7x12xf32, #tpu.memory_space<vmem>>, vector<1x12xf32>
      %739 = vector.shape_cast %738 : vector<1x12xf32> to vector<12xf32>
      %740 = vector.shape_cast %739 : vector<12xf32> to vector<1x12xf32>
      %741 = vector.broadcast %740 : vector<1x12xf32> to vector<2x12xf32>
      %742 = arith.addf %736, %741 : vector<2x12xf32>
      %cst_256 = arith.constant 0.000000e+00 : f32
      %743 = vector.broadcast %cst_256 : f32 to vector<2x12xf32>
      %744 = arith.maximumf %742, %743 : vector<2x12xf32>
      %745 = arith.index_cast %arg22 : i32 to index
      %c0_257 = arith.constant 0 : index
      %c0_258 = arith.constant 0 : index
      %746 = vector.load %arg15[%745, %c0_257, %c0_258] : memref<7x12x96xbf16, #tpu.memory_space<vmem>>, vector<1x12x96xbf16>
      %747 = vector.shape_cast %746 : vector<1x12x96xbf16> to vector<12x96xbf16>
      %748 = arith.truncf %744 : vector<2x12xf32> to vector<2x12xbf16>
      %cst_259 = arith.constant dense<0.000000e+00> : vector<2x96xf32>
      %749 = tpu.matmul %748, %747, %cst_259 {dimension_numbers = #tpu.dot_dimension_numbers<[1], [0], [0], [1], [0, 0, 1, 1], [], []>} : vector<2x12xbf16>, vector<12x96xbf16>, vector<2x96xf32> -> vector<2x96xf32>
      %750 = arith.index_cast %arg22 : i32 to index
      %c0_260 = arith.constant 0 : index
      %751 = vector.load %arg16[%750, %c0_260] : memref<7x96xf32, #tpu.memory_space<vmem>>, vector<1x96xf32>
      %752 = vector.shape_cast %751 : vector<1x96xf32> to vector<96xf32>
      %753 = vector.shape_cast %752 : vector<96xf32> to vector<1x96xf32>
      %754 = vector.broadcast %753 : vector<1x96xf32> to vector<2x96xf32>
      %755 = arith.addf %749, %754 : vector<2x96xf32>
      %cst_261 = arith.constant 0.000000e+00 : f32
      %756 = vector.broadcast %cst_261 : f32 to vector<2x96xf32>
      %757 = arith.subf %756, %755 : vector<2x96xf32>
      %758 = math.exp %757 : vector<2x96xf32>
      %cst_262 = arith.constant 1.000000e+00 : f32
      %759 = vector.broadcast %cst_262 : f32 to vector<2x96xf32>
      %760 = arith.addf %759, %758 : vector<2x96xf32>
      %cst_263 = arith.constant 1.000000e+00 : f32
      %761 = vector.broadcast %cst_263 : f32 to vector<2x96xf32>
      %762 = arith.divf %761, %760 : vector<2x96xf32>
      %763 = vector.shape_cast %727 : vector<32x96xf32> to vector<2x16x96xf32>
      %764 = vector.shape_cast %762 : vector<2x96xf32> to vector<2x1x96xf32>
      %765 = vector.broadcast %764 : vector<2x1x96xf32> to vector<2x16x96xf32>
      %766 = arith.mulf %763, %765 : vector<2x16x96xf32>
      %767 = vector.shape_cast %766 : vector<2x16x96xf32> to vector<32x96xf32>
      %768 = arith.addf %767, %46 : vector<32x96xf32>
      %cst_264 = arith.constant 0.000000e+00 : f32
      %769 = vector.broadcast %cst_264 : f32 to vector<32x96xf32>
      %770 = arith.maximumf %768, %769 : vector<32x96xf32>
      %771 = arith.index_cast %arg22 : i32 to index
      %c0_265 = arith.constant 0 : index
      %c0_266 = arith.constant 0 : index
      %772 = vector.load %arg17[%771, %c0_265, %c0_266] : memref<7x2x96xf32, #tpu.memory_space<vmem>>, vector<1x2x96xf32>
      %773 = vector.shape_cast %772 : vector<1x2x96xf32> to vector<2x96xf32>
      %774 = vector.extract_strided_slice %773 {offsets = [0, 0], sizes = [1, 96], strides = [1, 1]} : vector<2x96xf32> to vector<1x96xf32>
      %775 = vector.shape_cast %774 : vector<1x96xf32> to vector<96xf32>
      %776 = vector.shape_cast %775 : vector<96xf32> to vector<1x96xf32>
      %777 = vector.broadcast %776 : vector<1x96xf32> to vector<32x96xf32>
      %778 = arith.mulf %770, %777 : vector<32x96xf32>
      %779 = vector.extract_strided_slice %773 {offsets = [1, 0], sizes = [1, 96], strides = [1, 1]} : vector<2x96xf32> to vector<1x96xf32>
      %780 = vector.shape_cast %779 : vector<1x96xf32> to vector<96xf32>
      %781 = vector.shape_cast %780 : vector<96xf32> to vector<1x96xf32>
      %782 = vector.broadcast %781 : vector<1x96xf32> to vector<32x96xf32>
      %783 = arith.addf %778, %782 : vector<32x96xf32>
      %784 = arith.index_cast %arg22 : i32 to index
      %c0_267 = arith.constant 0 : index
      %c0_268 = arith.constant 0 : index
      %785 = vector.load %arg18[%784, %c0_267, %c0_268] : memref<8x2x96xf32, #tpu.memory_space<vmem>>, vector<1x2x96xf32>
      %786 = vector.shape_cast %785 : vector<1x2x96xf32> to vector<2x96xf32>
      %787 = vector.extract_strided_slice %786 {offsets = [0, 0], sizes = [1, 96], strides = [1, 1]} : vector<2x96xf32> to vector<1x96xf32>
      %788 = vector.shape_cast %787 : vector<1x96xf32> to vector<96xf32>
      %789 = vector.shape_cast %788 : vector<96xf32> to vector<1x96xf32>
      %790 = vector.broadcast %789 : vector<1x96xf32> to vector<32x96xf32>
      %791 = arith.mulf %783, %790 : vector<32x96xf32>
      %792 = vector.extract_strided_slice %786 {offsets = [1, 0], sizes = [1, 96], strides = [1, 1]} : vector<2x96xf32> to vector<1x96xf32>
      %793 = vector.shape_cast %792 : vector<1x96xf32> to vector<96xf32>
      %794 = vector.shape_cast %793 : vector<96xf32> to vector<1x96xf32>
      %795 = vector.broadcast %794 : vector<1x96xf32> to vector<32x96xf32>
      %796 = arith.addf %791, %795 : vector<32x96xf32>
      %cst_269 = arith.constant 0.000000e+00 : f32
      %797 = vector.broadcast %cst_269 : f32 to vector<32x96xf32>
      %798 = arith.maximumf %796, %797 : vector<32x96xf32>
      %799 = vector.shape_cast %798 : vector<32x96xf32> to vector<2x16x96xf32>
      %cst_270 = arith.constant dense<0.000000e+00> : vector<2x96xf32>
      %800 = vector.multi_reduction <add>, %799, %cst_270 [1] : vector<2x16x96xf32> to vector<2x96xf32>
      %cst_271 = arith.constant 1.600000e+01 : f32
      %801 = vector.broadcast %cst_271 : f32 to vector<2x96xf32>
      %802 = arith.divf %800, %801 : vector<2x96xf32>
      %803 = arith.index_cast %arg22 : i32 to index
      %c0_272 = arith.constant 0 : index
      %c0_273 = arith.constant 0 : index
      %804 = vector.load %arg19[%803, %c0_272, %c0_273] : memref<8x96x2xbf16, #tpu.memory_space<vmem>>, vector<1x96x2xbf16>
      %805 = vector.shape_cast %804 : vector<1x96x2xbf16> to vector<96x2xbf16>
      %806 = arith.truncf %802 : vector<2x96xf32> to vector<2x96xbf16>
      %cst_274 = arith.constant dense<0.000000e+00> : vector<2x2xf32>
      %807 = tpu.matmul %806, %805, %cst_274 {dimension_numbers = #tpu.dot_dimension_numbers<[1], [0], [0], [1], [0, 0, 1, 1], [], []>} : vector<2x96xbf16>, vector<96x2xbf16>, vector<2x2xf32> -> vector<2x2xf32>
      %808 = arith.addf %arg24, %807 : vector<2x2xf32>
      scf.yield %783, %808 : vector<32x96xf32>, vector<2x2xf32>
    }
    %c7_i32_9 = arith.constant 7 : i32
    %c7 = arith.constant 7 : index
    %c0_10 = arith.constant 0 : index
    %c0_11 = arith.constant 0 : index
    %12 = vector.load %arg1[%c7, %c0_10, %c0_11] : memref<8x32x96xf32, #tpu.memory_space<vmem>>, vector<1x32x96xf32>
    %13 = vector.shape_cast %12 : vector<1x32x96xf32> to vector<32x96xf32>
    %c7_12 = arith.constant 7 : index
    %c0_13 = arith.constant 0 : index
    %c0_14 = arith.constant 0 : index
    %14 = vector.load %arg18[%c7_12, %c0_13, %c0_14] : memref<8x2x96xf32, #tpu.memory_space<vmem>>, vector<1x2x96xf32>
    %15 = vector.shape_cast %14 : vector<1x2x96xf32> to vector<2x96xf32>
    %16 = vector.extract_strided_slice %15 {offsets = [0, 0], sizes = [1, 96], strides = [1, 1]} : vector<2x96xf32> to vector<1x96xf32>
    %17 = vector.shape_cast %16 : vector<1x96xf32> to vector<96xf32>
    %18 = vector.shape_cast %17 : vector<96xf32> to vector<1x96xf32>
    %19 = vector.broadcast %18 : vector<1x96xf32> to vector<32x96xf32>
    %20 = arith.mulf %13, %19 : vector<32x96xf32>
    %21 = vector.extract_strided_slice %15 {offsets = [1, 0], sizes = [1, 96], strides = [1, 1]} : vector<2x96xf32> to vector<1x96xf32>
    %22 = vector.shape_cast %21 : vector<1x96xf32> to vector<96xf32>
    %23 = vector.shape_cast %22 : vector<96xf32> to vector<1x96xf32>
    %24 = vector.broadcast %23 : vector<1x96xf32> to vector<32x96xf32>
    %25 = arith.addf %20, %24 : vector<32x96xf32>
    %cst_15 = arith.constant 0.000000e+00 : f32
    %26 = vector.broadcast %cst_15 : f32 to vector<32x96xf32>
    %27 = arith.maximumf %25, %26 : vector<32x96xf32>
    %28 = vector.shape_cast %27 : vector<32x96xf32> to vector<2x16x96xf32>
    %cst_16 = arith.constant dense<0.000000e+00> : vector<2x96xf32>
    %29 = vector.multi_reduction <add>, %28, %cst_16 [1] : vector<2x16x96xf32> to vector<2x96xf32>
    %cst_17 = arith.constant 1.600000e+01 : f32
    %30 = vector.broadcast %cst_17 : f32 to vector<2x96xf32>
    %31 = arith.divf %29, %30 : vector<2x96xf32>
    %c7_18 = arith.constant 7 : index
    %c0_19 = arith.constant 0 : index
    %c0_20 = arith.constant 0 : index
    %32 = vector.load %arg19[%c7_18, %c0_19, %c0_20] : memref<8x96x2xbf16, #tpu.memory_space<vmem>>, vector<1x96x2xbf16>
    %33 = vector.shape_cast %32 : vector<1x96x2xbf16> to vector<96x2xbf16>
    %34 = arith.truncf %31 : vector<2x96xf32> to vector<2x96xbf16>
    %cst_21 = arith.constant dense<0.000000e+00> : vector<2x2xf32>
    %35 = tpu.matmul %34, %33, %cst_21 {dimension_numbers = #tpu.dot_dimension_numbers<[1], [0], [0], [1], [0, 0, 1, 1], [], []>} : vector<2x96xbf16>, vector<96x2xbf16>, vector<2x2xf32> -> vector<2x2xf32>
    %36 = arith.addf %11#1, %35 : vector<2x2xf32>
    %c0_22 = arith.constant 0 : index
    %c0_23 = arith.constant 0 : index
    %37 = vector.load %arg20[%c0_22, %c0_23] : memref<1x2xf32, #tpu.memory_space<vmem>>, vector<1x2xf32>
    %38 = vector.broadcast %37 : vector<1x2xf32> to vector<2x2xf32>
    %39 = arith.addf %36, %38 : vector<2x2xf32>
    %c0_24 = arith.constant 0 : index
    %c0_25 = arith.constant 0 : index
    %c0_26 = arith.constant 0 : index
    %40 = vector.load %arg21[%c0_24, %c0_25, %c0_26] : memref<1x2x2xf32, #tpu.memory_space<vmem>>, vector<1x2x2xf32>
    %41 = vector.shape_cast %40 : vector<1x2x2xf32> to vector<2x2xf32>
    %42 = vector.shape_cast %39 : vector<2x2xf32> to vector<1x2x2xf32>
    tpu.vector_store %arg21[%c0_24, %c0_25, %c0_26], %42 {strides = array<i32>} : memref<1x2x2xf32, #tpu.memory_space<vmem>>, vector<1x2x2xf32>,
    return
  }
  func.func @transform_0(%arg0: i32) -> (i32, i32, i32) {
    %c0_i32 = arith.constant 0 : i32
    %c0_i32_0 = arith.constant 0 : i32
    %c0_i32_1 = arith.constant 0 : i32
    return %c0_i32, %arg0, %c0_i32_0 : i32, i32, i32
  }
  func.func @transform_1(%arg0: i32) -> (i32, i32, i32) {
    %c0_i32 = arith.constant 0 : i32
    %c0_i32_0 = arith.constant 0 : i32
    %c0_i32_1 = arith.constant 0 : i32
    %c0_i32_2 = arith.constant 0 : i32
    return %c0_i32, %c0_i32_0, %c0_i32_1 : i32, i32, i32
  }
  func.func @transform_2(%arg0: i32) -> (i32, i32, i32) {
    %c0_i32 = arith.constant 0 : i32
    %c0_i32_0 = arith.constant 0 : i32
    %c0_i32_1 = arith.constant 0 : i32
    %c0_i32_2 = arith.constant 0 : i32
    return %c0_i32, %c0_i32_0, %c0_i32_1 : i32, i32, i32
  }
  func.func @transform_3(%arg0: i32) -> (i32, i32) {
    %c0_i32 = arith.constant 0 : i32
    %c0_i32_0 = arith.constant 0 : i32
    %c0_i32_1 = arith.constant 0 : i32
    return %c0_i32, %c0_i32_0 : i32, i32
  }
  func.func @transform_4(%arg0: i32) -> (i32, i32, i32) {
    %c0_i32 = arith.constant 0 : i32
    %c0_i32_0 = arith.constant 0 : i32
    %c0_i32_1 = arith.constant 0 : i32
    %c0_i32_2 = arith.constant 0 : i32
    return %c0_i32, %c0_i32_0, %c0_i32_1 : i32, i32, i32
  }
  func.func @transform_5(%arg0: i32) -> (i32, i32, i32, i32) {
    %c0_i32 = arith.constant 0 : i32
    %c0_i32_0 = arith.constant 0 : i32
    %c0_i32_1 = arith.constant 0 : i32
    %c0_i32_2 = arith.constant 0 : i32
    %c0_i32_3 = arith.constant 0 : i32
    return %c0_i32, %c0_i32_0, %c0_i32_1, %c0_i32_2 : i32, i32, i32, i32
  }
  func.func @transform_6(%arg0: i32) -> (i32, i32) {
    %c0_i32 = arith.constant 0 : i32
    %c0_i32_0 = arith.constant 0 : i32
    %c0_i32_1 = arith.constant 0 : i32
    return %c0_i32, %c0_i32_0 : i32, i32
  }
  func.func @transform_7(%arg0: i32) -> (i32, i32, i32) {
    %c0_i32 = arith.constant 0 : i32
    %c0_i32_0 = arith.constant 0 : i32
    %c0_i32_1 = arith.constant 0 : i32
    %c0_i32_2 = arith.constant 0 : i32
    return %c0_i32, %c0_i32_0, %c0_i32_1 : i32, i32, i32
  }
  func.func @transform_8(%arg0: i32) -> (i32, i32, i32) {
    %c0_i32 = arith.constant 0 : i32
    %c0_i32_0 = arith.constant 0 : i32
    %c0_i32_1 = arith.constant 0 : i32
    %c0_i32_2 = arith.constant 0 : i32
    return %c0_i32, %c0_i32_0, %c0_i32_1 : i32, i32, i32
  }
  func.func @transform_9(%arg0: i32) -> (i32, i32, i32) {
    %c0_i32 = arith.constant 0 : i32
    %c0_i32_0 = arith.constant 0 : i32
    %c0_i32_1 = arith.constant 0 : i32
    %c0_i32_2 = arith.constant 0 : i32
    return %c0_i32, %c0_i32_0, %c0_i32_1 : i32, i32, i32
  }
  func.func @transform_10(%arg0: i32) -> (i32, i32) {
    %c0_i32 = arith.constant 0 : i32
    %c0_i32_0 = arith.constant 0 : i32
    %c0_i32_1 = arith.constant 0 : i32
    return %c0_i32, %c0_i32_0 : i32, i32
  }
  func.func @transform_11(%arg0: i32) -> (i32, i32, i32) {
    %c0_i32 = arith.constant 0 : i32
    %c0_i32_0 = arith.constant 0 : i32
    %c0_i32_1 = arith.constant 0 : i32
    %c0_i32_2 = arith.constant 0 : i32
    return %c0_i32, %c0_i32_0, %c0_i32_1 : i32, i32, i32
  }
  func.func @transform_12(%arg0: i32) -> (i32, i32, i32) {
    %c0_i32 = arith.constant 0 : i32
    %c0_i32_0 = arith.constant 0 : i32
    %c0_i32_1 = arith.constant 0 : i32
    %c0_i32_2 = arith.constant 0 : i32
    return %c0_i32, %c0_i32_0, %c0_i32_1 : i32, i32, i32
  }
  func.func @transform_13(%arg0: i32) -> (i32, i32) {
    %c0_i32 = arith.constant 0 : i32
    %c0_i32_0 = arith.constant 0 : i32
    %c0_i32_1 = arith.constant 0 : i32
    return %c0_i32, %c0_i32_0 : i32, i32
  }
  func.func @transform_14(%arg0: i32) -> (i32, i32, i32) {
    %c0_i32 = arith.constant 0 : i32
    %c0_i32_0 = arith.constant 0 : i32
    %c0_i32_1 = arith.constant 0 : i32
    %c0_i32_2 = arith.constant 0 : i32
    return %c0_i32, %c0_i32_0, %c0_i32_1 : i32, i32, i32
  }
  func.func @transform_15(%arg0: i32) -> (i32, i32) {
    %c0_i32 = arith.constant 0 : i32
    %c0_i32_0 = arith.constant 0 : i32
    %c0_i32_1 = arith.constant 0 : i32
    return %c0_i32, %c0_i32_0 : i32, i32
  }
  func.func @transform_16(%arg0: i32) -> (i32, i32, i32) {
    %c0_i32 = arith.constant 0 : i32
    %c0_i32_0 = arith.constant 0 : i32
    %c0_i32_1 = arith.constant 0 : i32
    %c0_i32_2 = arith.constant 0 : i32
    return %c0_i32, %c0_i32_0, %c0_i32_1 : i32, i32, i32
  }
  func.func @transform_17(%arg0: i32) -> (i32, i32, i32) {
    %c0_i32 = arith.constant 0 : i32
    %c0_i32_0 = arith.constant 0 : i32
    %c0_i32_1 = arith.constant 0 : i32
    %c0_i32_2 = arith.constant 0 : i32
    return %c0_i32, %c0_i32_0, %c0_i32_1 : i32, i32, i32
  }
  func.func @transform_18(%arg0: i32) -> (i32, i32, i32) {
    %c0_i32 = arith.constant 0 : i32
    %c0_i32_0 = arith.constant 0 : i32
    %c0_i32_1 = arith.constant 0 : i32
    %c0_i32_2 = arith.constant 0 : i32
    return %c0_i32, %c0_i32_0, %c0_i32_1 : i32, i32, i32
  }
  func.func @transform_19(%arg0: i32) -> (i32, i32) {
    %c0_i32 = arith.constant 0 : i32
    %c0_i32_0 = arith.constant 0 : i32
    %c0_i32_1 = arith.constant 0 : i32
    return %c0_i32, %c0_i32_0 : i32, i32
  }
  func.func @transform_20(%arg0: i32) -> (i32, i32, i32) {
    %c0_i32 = arith.constant 0 : i32
    %c0_i32_0 = arith.constant 0 : i32
    %c0_i32_1 = arith.constant 0 : i32
    return %arg0, %c0_i32, %c0_i32_0 : i32, i32, i32
  }
}

</mosaic_0001>

<bundles_post_ra>
// kernel: tpu_custom_call.1
= control target key start
LH: loop header
LB: loop body
LE: loop exit
PB: predicated region body
PF: predicated region fallthrough
CT: control target
= control target key end

     0   :  { %s10732_s0 = inlined_call_operand.vmem [shape: f32[8,32,96], index: 0, kind: input, shape index: {}]   ;;  %s10733_s1 = inlined_call_operand.vmem [shape: f32[4,32,1], index: 1, kind: input, shape index: {}]   ;;  %s10734_s2 = inlined_call_operand.vmem [shape: bf16[7,96,32], index: 2, kind: input, shape index: {}]   ;;  %s10735_s3 = inlined_call_operand.vmem [shape: f32[7,32], index: 3, kind: input, shape index: {}]   ;;  %s10736_s4 = inlined_call_operand.vmem [shape: f32[7,2,96], index: 4, kind: input, shape index: {}]   ;;  %s10737_s5 = inlined_call_operand.vmem [shape: bf16[49,3,108,32], index: 5, kind: input, shape index: {}]   ;;  %s10738_s6 = inlined_call_operand.vmem [shape: f32[49,32], index: 6, kind: input, shape index: {}]   ;;  %s10739_s7 = inlined_call_operand.vmem [shape: f32[49,2,96], index: 7, kind: input, shape index: {}]   ;;  %s10740_s8 = inlined_call_operand.vmem [shape: bf16[7,96,12], index: 8, kind: input, shape index: {}]   ;;  %s10741_s9 = inlined_call_operand.vmem [shape: bf16[7,96,32], index: 9, kind: input, shape index: {}]   ;;  %s10742_s10 = inlined_call_operand.vmem [shape: f32[7,32], index: 10, kind: input, shape index: {}]   ;;  %s10743_s11 = inlined_call_operand.vmem [shape: f32[7,2,96], index: 11, kind: input, shape index: {}]   ;;  %s10744_s12 = inlined_call_operand.vmem [shape: bf16[7,96,12], index: 12, kind: input, shape index: {}]   ;;  %s10745_s13 = inlined_call_operand.vmem [shape: f32[7,12], index: 13, kind: input, shape index: {}]   ;;  %s10746_s14 = inlined_call_operand.vmem [shape: bf16[7,12,96], index: 14, kind: input, shape index: {}]   ;;  %s10747_s15 = inlined_call_operand.vmem [shape: f32[7,96], index: 15, kind: input, shape index: {}]   ;;  %s10748_s16 = inlined_call_operand.vmem [shape: f32[7,2,96], index: 16, kind: input, shape index: {}]   ;;  %s10749_s17 = inlined_call_operand.vmem [shape: f32[8,2,96], index: 17, kind: input, shape index: {}]   ;;  %s10750_s18 = inlined_call_operand.vmem [shape: bf16[8,96,2], index: 18, kind: input, shape index: {}]   ;;  %s10751_s19 = inlined_call_operand.vmem [shape: f32[1,2], index: 19, kind: input, shape index: {}]   ;;  %s10752_s20 = inlined_call_operand.hbm [shape: f32[1,2,2], index: 20, kind: output, shape index: {}]  }
   0x1   :  { %10798 = sst [smem:[#allocation44_spill]] %s10732_s0 }
   0x2   :  { %10799 = sst [smem:[#allocation45_spill]] %s10733_s1 }
   0x3   :  { %10800 = sst [smem:[#allocation46_spill]] %s10734_s2 }
   0x4   :  { %10801 = sst [smem:[#allocation47_spill]] %s10735_s3 }
   0x5   :  { %10802 = sst [smem:[#allocation48_spill]] %s10736_s4 }
   0x6   :  { %25 = vsyncpa [#allocation3], 0  ;;  %s10803_s23 = sld [smem:[#allocation45_spill]]  ;;  %v8501_v16 = vmov 0.0   ;;  %v8503_v17 = vmov 0.0   ;;  %v8505_v18 = vmov 0.0  }
   0x7   :  { %v8507_v19 = vmov 0.0   ;;  %v8509_v20 = vmov 0.0   ;;  %s8511_s25 = smov 0  }
   0xc   :  { %v8424_v0 = vld [vmem:[%s10803_s23] sm:$0xff]  ;;  %v8429_v1 = vld [vmem:[%s10803_s23 + $0x8] sm:$0xff]  ;;  %v8434_v2 = vld [vmem:[%s10803_s23 + $0x10] sm:$0xff] }
   0xd   :  { %10804 = vst [vmem:[#allocation5_spill] sm:$0xff] %v8424_v0  ;;  %10805 = vst [vmem:[#allocation6_spill] sm:$0xff] %v8429_v1  ;;  %v8439_v3 = vld [vmem:[%s10803_s23 + $0x18] sm:$0xff]  ;;  %v8444_v4 = vld [vmem:[%s10803_s23 + $0x20] sm:$0xff] }
   0xe   :  { %10806 = vst [vmem:[#allocation7_spill] sm:$0xff] %v8434_v2  ;;  %10807 = vst [vmem:[#allocation8_spill] sm:$0xff] %v8439_v3  ;;  %v8449_v5 = vld [vmem:[%s10803_s23 + $0x28] sm:$0xff]  ;;  %v8454_v6 = vld [vmem:[%s10803_s23 + $0x30] sm:$0xff] }
   0xf   :  { %10808 = vst [vmem:[#allocation9_spill] sm:$0xff] %v8444_v4  ;;  %10809 = vst [vmem:[#allocation10_spill] sm:$0xff] %v8449_v5  ;;  %v8459_v7 = vld [vmem:[%s10803_s23 + $0x38] sm:$0xff]  ;;  %v8464_v8 = vld [vmem:[%s10803_s23 + $0x40] sm:$0xff] }
  0x10   :  { %10810 = vst [vmem:[#allocation11_spill] sm:$0xff] %v8454_v6  ;;  %10811 = vst [vmem:[#allocation12_spill] sm:$0xff] %v8459_v7  ;;  %v8469_v9 = vld [vmem:[%s10803_s23 + $0x48] sm:$0xff]  ;;  %v8474_v10 = vld [vmem:[%s10803_s23 + $0x50] sm:$0xff] }
  0x11   :  { %10812 = vst [vmem:[#allocation13_spill] sm:$0xff] %v8464_v8  ;;  %10813 = vst [vmem:[#allocation14_spill] sm:$0xff] %v8469_v9  ;;  %v8479_v11 = vld [vmem:[%s10803_s23 + $0x58] sm:$0xff]  ;;  %v8484_v12 = vld [vmem:[%s10803_s23 + $0x60] sm:$0xff] }
  0x12   :  { %10814 = vst [vmem:[#allocation15_spill] sm:$0xff] %v8474_v10  ;;  %10815 = vst [vmem:[#allocation16_spill] sm:$0xff] %v8479_v11  ;;  %v8489_v13 = vld [vmem:[%s10803_s23 + $0x68] sm:$0xff]  ;;  %v8494_v14 = vld [vmem:[%s10803_s23 + $0x70] sm:$0xff] }
  0x13   :  { %10816 = vst [vmem:[#allocation17_spill] sm:$0xff] %v8484_v12  ;;  %10817 = vst [vmem:[#allocation18_spill] sm:$0xff] %v8489_v13  ;;  %v8499_v15 = vld [vmem:[%s10803_s23 + $0x78] sm:$0xff] }
  0x14   :  { %10818 = vst [vmem:[#allocation19_spill] sm:$0xff] %v8494_v14  ;;  %10819 = vst [vmem:[#allocation20_spill] sm:$0xff] %v8499_v15 }
  0x15 LB: > { %10820 = vst [vmem:[#allocation21_spill] sm:$0xff] %v8276_v16  ;;  %s8524_s23 = smul.u32 48, %s8296_s25  ;;  %s6232_s3 = sshll.u32 %s8296_s25, 5  ;;  %v8298_v21 = vmov 0   ;;  %v10823_v0 = vld [vmem:[#allocation5_spill] sm:$0xff]  ;;  %v10824_v3 = vld [vmem:[#allocation8_spill] sm:$0xff]  ;;  %v226_v45 = vlaneseq  ;;  %s8296_s25 = sphi %s8511_s25, %s91_s25   ;;  %v8292_v20 = vphi %v8509_v20, %v5781_v20   ;;  %v8288_v19 = vphi %v8507_v19, %v5782_v19   ;;  %v8284_v18 = vphi %v8505_v18, %v5783_v18   ;;  %v8280_v17 = vphi %v8503_v17, %v5784_v17   ;;  %v8276_v16 = vphi %v8501_v16, %v10929_v16  }
  0x16   : > { %s10821_s28 = sld [smem:[#allocation44_spill]]  ;;  %7940 = vset.pattern.permute.xlu0 %v8298_v21  ;;  %7941 = vset.pattern.permute.xlu1 %v8298_v21  ;;  %s10822_s0 = sld [smem:[#allocation46_spill]]  ;;  %vm166_vm0 = vcmask 785408   ;;  %v10827_v1 = vld [vmem:[#allocation6_spill] sm:$0xff]  ;;  %v10828_v4 = vld [vmem:[#allocation9_spill] sm:$0xff]  ;;  %v10831_v2 = vld [vmem:[#allocation7_spill] sm:$0xff] }
  0x17   : > { %235 = vperm.xlu0 %7940, %v10823_v0   ;;  %250 = vperm.xlu1 %7941, %v10824_v3   ;;  %s6904_s1 = smul.u32 1176, %s8296_s25  ;;  %v10829_v5 = vld [vmem:[#allocation10_spill] sm:$0xff]  ;;  %v10830_v7 = vld [vmem:[#allocation12_spill] sm:$0xff]  ;;  %v10832_v6 = vld [vmem:[#allocation11_spill] sm:$0xff]  ;;  %s10845_s27 = sld [smem:[#allocation47_spill]]  ;;  %v8604_v47 = vshrl.u32 %v226_v45, 7 }
  0x18   : > { %v10833_v8 = vld [vmem:[#allocation13_spill] sm:$0xff]  ;;  %v10834_v9 = vld [vmem:[#allocation14_spill] sm:$0xff]  ;;  %s8300_s29 = smov 32   ;;  %s8729_s30 = sshll.u32 %s8296_s25, 1  ;;  %vm428_vm5 = vcmask 261120   ;;  %vm433_vm6 = vcmask 523264  }
  0x19   : > { %s8557_s2 = scalar_lea.vmem %s10737_s5, %s6904_s1  ;;  %v10837_v11 = vld [vmem:[#allocation16_spill] sm:$0xff]  ;;  %v10838_v10 = vld [vmem:[#allocation15_spill] sm:$0xff]  ;;  %vm261_vm1 = vcmp.lt.s32.totalorder %v8604_v47, 1  ;;  %vm294_vm2 = vcmp.lt.s32.totalorder %v8604_v47, 7  ;;  %vm228_vm3 = vcmp.lt.s32.totalorder %v8604_v47, 2  ;;  %vm327_vm4 = vcmp.lt.s32.totalorder %v8604_v47, 6 }
  0x1a   : > { %v10839_v12 = vld [vmem:[#allocation17_spill] sm:$0xff]  ;;  %v10840_v13 = vld [vmem:[#allocation18_spill] sm:$0xff]  ;;  %s10855_s1 = sld [smem:[#allocation48_spill]]  ;;  %s8301_s24 = smov 44   ;;  %vm608_vm7 = vcmask 1045504   ;;  %vm477_vm8 = vcmask 97280  }
  0x1b   : > { %240 = vperm.xlu0 %7940, %v10827_v1   ;;  %268 = vperm.xlu1 %7941, %v10828_v4   ;;  %v10841_v15 = vld [vmem:[#allocation20_spill] sm:$0xff]  ;;  %v10842_v14 = vld [vmem:[#allocation19_spill] sm:$0xff]  ;;  %vm601_vm9 = vcmask 883712   ;;  %s6274_s26 = smul.u32 14, %s8296_s25  ;;  %vm5231_vm10 = vcmask 195584   ;;  %vm5236_vm11 = vcmask 293888  }
  0x1c   : > { %s8530_s4 = scalar_lea.vmem %s10821_s28, %s6232_s3  ;;  %s8536_s21 = scalar_lea.vmem %s10822_s0, %s8524_s23  ;;  %vm5241_vm12 = vcmask 392192   ;;  %vm5246_vm13 = vcmask 490496   ;;  %vm5251_vm14 = vcmask 588800   ;;  %vm5256_vm15 = vcmask 687104  }
  0x1d   : > { %v99_v22 = vld [vmem:[%s8530_s4] sm:$0xff]  ;;  %v100_v23 = vld [vmem:[%s8530_s4 + $0x8] sm:$0xff]  ;;  %v8004_v29 = vld [vmem:[%s8536_s21 + $0x10] sm:$0xff]   ;;  %s124_s28 = scalar_lea.vmem %s10845_s27, %s8296_s25  ;;  %s8302_s3 = smov 96  }
  0x1e   : > { %v8002_v24 = vld [vmem:[%s8536_s21] sm:$0xff]   ;;  %v8543_v25 = vadd.f32 %v8292_v20, %v99_v22  ;;  %v8545_v26 = vadd.f32 %v8288_v19, %v100_v23  ;;  %v8003_v27 = vld [vmem:[%s8536_s21 + $0x8] sm:$0xff]   ;;  %v8005_v30 = vld [vmem:[%s8536_s21 + $0x18] sm:$0xff]   ;;  %s8979_s0 = scalar_lea.vmem %s10739_s7, %s6274_s26  ;;  %s10790_s27 = smov 72  }
  0x1f   : > { %7193 = vmatprep.subr.bf16.mxu0 %v8002_v24  ;;  %273 = vperm.xlu0 %7940, %v10829_v5   ;;  %v8006_v31 = vld [vmem:[%s8536_s21 + $0x20] sm:$0xff]   ;;  %v101_v32 = vld [vmem:[%s8530_s4 + $0x10] sm:$0xff]  ;;  %v102_v33 = vld [vmem:[%s8530_s4 + $0x18] sm:$0xff]  ;;  %s8299_s4 = smov 64   ;;  %s8309_s26 = smov 12  }
  0x20   : > { %10825 = vst [vmem:[#allocation22_spill] sm:$0xff] %v8543_v25  ;;  %10826 = vst [vmem:[#allocation23_spill] sm:$0xff] %v8545_v26  ;;  %v122_v28 = vpack.c.bf16 %v8545_v26, %v8543_v25  ;;  %7194 = vmatpush3.bf16.msra.mxu0 %v8002_v24  ;;  %283 = vperm.xlu1 %7941, %v10830_v7   ;;  %v8007_v34 = vld [vmem:[%s8536_s21 + $0x28] sm:$0xff]   ;;  %v8571_v35 = vadd.f32 %v8284_v18, %v101_v32  ;;  %v6234_v49 = vld [vmem:[%s124_s28] ss:$0 sm:$0xff]  ;;  %s443_s22 = scalar_lea.vmem %s10855_s1, %s8729_s30  ;;  %s482_s28 = smul.u32 7, %s8296_s25 }
  0x21   : > { %7195 = vmatprep.subr.bf16.mxu0 %v8003_v27  ;;  %v8573_v36 = vadd.f32 %v8280_v17, %v102_v33 }
  0x22   : > { %7205 = vmatprep.mubr.msk.bf16.mxu0 %vm166_vm0, %v122_v28  ;;  %10835 = vst [vmem:[#allocation24_spill] sm:$0xff] %v8571_v35  ;;  %s8856_s1 = scalar_lea.vmem %s10738_s6, %s482_s28  ;;  %s8305_s28 = smov 60  }
  0x23   : > { %245 = vperm.xlu0 %7940, %v10831_v2   ;;  %10836 = vst [vmem:[#allocation25_spill] sm:$0xff] %v8573_v36  ;;  %v123_v37 = vpack.c.bf16 %v8573_v36, %v8571_v35 }
  0x24   : > { %7196 = vmatpush3.bf16.msra.mxu0 %v8003_v27  ;;  %278 = vperm.xlu1 %7941, %v10832_v6  }
  0x25   : > { %7197 = vmatprep.subr.bf16.mxu0 %v8004_v29 }
  0x27   : > { %301 = vperm.xlu0 %7940, %v10833_v8  }
  0x28   : > { %7198 = vmatpush3.bf16.msra.mxu0 %v8004_v29  ;;  %306 = vperm.xlu1 %7941, %v10834_v9  }
  0x29   : > { %7199 = vmatprep.subr.bf16.mxu0 %v8005_v30 }
  0x2b   : > { %316 = vperm.xlu0 %7940, %v10837_v11  }
  0x2c   : > { %7200 = vmatpush3.bf16.msra.mxu0 %v8005_v30  ;;  %311 = vperm.xlu1 %7941, %v10838_v10  }
  0x2d   : > { %7201 = vmatprep.subr.bf16.mxu0 %v8006_v31 }
  0x2f   : > { %334 = vperm.xlu0 %7940, %v10839_v12  }
  0x30   : > { %7202 = vmatpush3.bf16.msra.mxu0 %v8006_v31  ;;  %339 = vperm.xlu1 %7941, %v10840_v13  }
  0x31   : > { %7203 = vmatprep.subr.bf16.mxu0 %v8007_v34 }
  0x33   : > { %349 = vperm.xlu0 %7940, %v10841_v15  }
  0x34   : > { %7204 = vmatpush3.bf16.msra.mxu0 %v8007_v34  ;;  %344 = vperm.xlu1 %7941, %v10842_v14  }
  0x37   : > { %7206 = vmatmul.mubr.msk.bf16.vlgmr.msra.gmra.mrb[0].mxu0 %vm166_vm0, %v123_v37 }
  0x96   : > { %v8584_v38 = vpop.permute.xlu0 %235  ;;  %v8586_v39 = vpop.permute.xlu1 %250 }
  0x97   : > { %10843 = vst [vmem:[#allocation26_spill] sm:$0xff] %v8584_v38  ;;  %10844 = vst [vmem:[#allocation27_spill] sm:$0xff] %v8586_v39 }
  0x9a   : > { %v8588_v40 = vpop.permute.xlu0 %240  ;;  %v8590_v41 = vpop.permute.xlu1 %268 }
  0x9e   : > { %v8592_v42 = vpop.permute.xlu0 %273 }
  0x9f   : > { %v8594_v43 = vpop.permute.xlu1 %283 }
  0xa2   : > { %v8596_v44 = vpop.permute.xlu0 %245 }
  0xa3   : > { %v8598_v46 = vpop.permute.xlu1 %278 }
  0xa6   : > { %v8606_v48 = vpop.permute.xlu0 %301 }
  0xa7   : > { %v8608_v50 = vpop.permute.xlu1 %306 }
  0xa8   : > { %10846 = vst [vmem:[#allocation28_spill] sm:$0xff] %v8608_v50 }
  0xaa   : > { %v8623_v61 = vpop.permute.xlu0 %316 }
  0xab   : > { %v8634_v23 = vpop.permute.xlu1 %311 }
 0x10a   : > { %v7207_v51 = vpop.f32.mrb[0].mxu0 }
 0x10b   : > { %v8610_v52 = vadd.f32 %v7207_v51, %v6234_v49  ;;  %v207_v53 = vpop.f32.mrb[1].mxu0 }
 0x10c   : > { %v8613_v54 = vadd.f32 %v6234_v49, %v207_v53  ;;  %v7208_v55 = vpop.f32.mrb[2].mxu0 }
 0x10d   : > { %v10755_v56 = vrot.slane %v8610_v52, 6  ;;  %v10756_v58 = vrot.slane %v8610_v52, 1  ;;  %v8621_v59 = vadd.f32 %v7208_v55, %v6234_v49  ;;  %v210_v60 = vpop.f32.mrb[3].mxu0  ;;  %v10847_v0 = vrot.slane %v8610_v52, 2 }
 0x10e   : > { %v222_v62 = vrot.slane %v8613_v54, 6  ;;  %v257_v63 = vrot.slane %v8613_v54, 7  ;;  %v290_v17 = vrot.slane %v8613_v54, 1  ;;  %v8628_v18 = vadd.f32 %v6234_v49, %v210_v60 }
 0x10f   : > { %v225_v19 = vrot.slane %v8621_v59, 6  ;;  %v260_v20 = vrot.slane %v8621_v59, 7  ;;  %v323_v22 = vrot.slane %v8613_v54, 2 }
 0x110   : > { %v223_v24 = vrot.slane %v8628_v18, 6  ;;  %v258_v27 = vrot.slane %v8628_v18, 7  ;;  %v291_v28 = vrot.slane %v8628_v18, 1  ;;  %v324_v29 = vrot.slane %v8628_v18, 2 }
 0x111   : > { %v265_v30 = vsel %vm261_vm1, %v260_v20, %v257_v63  ;;  %v232_v31 = vsel %vm228_vm3, %v225_v19, %v222_v62  ;;  %v229_v33 = vsel %vm228_vm3, %v10755_v56, %v225_v19  ;;  %v8662_v19 = vpop.permute.xlu0 %334 }
 0x112   : > { %v286_v34 = vmul.f32 %v8590_v41, %v265_v30  ;;  %v297_v37 = vsel %vm294_vm2, %v290_v17, %v291_v28  ;;  %v264_v45 = vsel %vm261_vm1, %v257_v63, %v258_v27  ;;  %v296_v49 = vsel %vm294_vm2, %v291_v28, %v10756_v58 }
 0x113   : > { %v319_v51 = vmul.f32 %v8606_v48, %v297_v37  ;;  %v287_v53 = vmul.f32 %v8592_v42, %v264_v45  ;;  %v320_v55 = vmul.f32 %v8608_v50, %v296_v49  ;;  %v253_v60 = vmul.f32 %v8584_v38, %v232_v31  ;;  %v8669_v45 = vpop.permute.xlu1 %339 }
 0x114   : > { %v384_v30 = vmul.f32 -0.5, %v286_v34  ;;  %v330_v56 = vsel %vm327_vm4, %v323_v22, %v324_v29  ;;  %v360_v63 = vmul.f32 -0.1, %v286_v34  ;;  %v231_v21 = vsel %vm228_vm3, %v222_v62, %v223_v24 }
 0x115   : > { %v388_v57 = vmul.f32 0.5, %v319_v51  ;;  %v385_v28 = vmul.f32 -0.5, %v287_v53  ;;  %v389_v58 = vmul.f32 0.5, %v320_v55  ;;  %v352_v37 = vmul.f32 %v8662_v19, %v330_v56 }
 0x116   : > { %v356_v49 = vmul.f32 -0.2, %v253_v60  ;;  %v368_v32 = vmul.f32 0.1, %v319_v51  ;;  %v254_v31 = vmul.f32 %v8588_v40, %v231_v21  ;;  %v329_v1 = vsel %vm327_vm4, %v324_v29, %v10847_v0 }
 0x117   : > { %v392_v34 = vadd.f32 %v388_v57, %v384_v30  ;;  %v393_v2 = vadd.f32 %v389_v58, %v385_v28  ;;  %v376_v3 = vmul.f32 0.2, %v352_v37  ;;  %v353_v62 = vmul.f32 %v8669_v45, %v329_v1 }
 0x118   : > { %v364_v4 = vadd.f32 %v360_v63, %v356_v49  ;;  %v357_v5 = vmul.f32 -0.2, %v254_v31  ;;  %v361_v6 = vmul.f32 -0.1, %v287_v53  ;;  %v369_v56 = vmul.f32 0.1, %v320_v55 }
 0x119   : > { %416 = vrot.lane.b32.xlu0 %v392_v34, %s8299_s4  ;;  %418 = vrot.lane.b32.xlu1 %v393_v2, %s8299_s4  ;;  %v377_v21 = vmul.f32 0.2, %v353_v62  ;;  %v256_v51 = vmul.f32 %v8586_v39, %v229_v33  ;;  %v10848_v60 = vrot.slane %v8610_v52, 7  ;;  %v10849_v57 = vrot.slane %v8621_v59, 1 }
 0x11a   : > { %v372_v58 = vadd.f32 %v368_v32, %v364_v4  ;;  %v365_v29 = vadd.f32 %v361_v6, %v357_v5  ;;  %v326_v2 = vrot.slane %v8621_v59, 2  ;;  %v10850_v33 = vrot.slane %v8610_v52, 6  ;;  %v8699_v32 = vpop.permute.xlu0 %349 }
 0x11b   : > { %v262_v0 = vsel %vm261_vm1, %v10848_v60, %v260_v20  ;;  %v298_v1 = vsel %vm294_vm2, %v10849_v57, %v290_v17  ;;  %v359_v30 = vmul.f32 -0.2, %v256_v51  ;;  %v10851_v20 = vmov %v10848_v60  ;;  %v8714_v51 = vpop.permute.xlu1 %344 }
 0x11c   : > { %v289_v53 = vmul.f32 %v8594_v43, %v262_v0  ;;  %v322_v55 = vmul.f32 %v8623_v61, %v298_v1  ;;  %v230_v63 = vsel %vm228_vm3, %v223_v24, %v10850_v33  ;;  %v263_v28 = vsel %vm261_vm1, %v258_v27, %v10851_v20 }
 0x11d   : > { %v380_v17 = vadd.f32 %v376_v3, %v372_v58  ;;  %v373_v4 = vadd.f32 %v369_v56, %v365_v29  ;;  %v331_v37 = vsel %vm327_vm4, %v326_v2, %v323_v22  ;;  %v255_v49 = vmul.f32 %v8596_v44, %v230_v63 }
 0x11e   : > { %v363_v5 = vmul.f32 -0.1, %v289_v53  ;;  %v371_v6 = vmul.f32 0.1, %v322_v55  ;;  %v288_v31 = vmul.f32 %v8598_v46, %v263_v28  ;;  %v10852_v24 = vmov %v10849_v57 }
 0x11f   : > { %v10853_v34 = vrot.slane %v8610_v52, 1  ;;  %400 = vrot.lane.b32.xlu0 %v380_v17, %s8300_s29  ;;  %v381_v3 = vadd.f32 %v377_v21, %v373_v4  ;;  %v355_v62 = vmul.f32 %v8699_v32, %v331_v37  ;;  %v10854_v60 = vrot.slane %v8610_v52, 2 }
 0x120   : > { %v367_v56 = vadd.f32 %v363_v5, %v359_v30  ;;  %v358_v57 = vmul.f32 -0.2, %v255_v49  ;;  %v362_v1 = vmul.f32 -0.1, %v288_v31  ;;  %v387_v20 = vmul.f32 -0.5, %v289_v53  ;;  %v8009_v53 = vld [vmem:[%s8557_s2 + $0x8] sm:$0xff]  }
 0x121   : > { %v295_v27 = vsel %vm294_vm2, %v10853_v34, %v10852_v24  ;;  %v328_v0 = vsel %vm327_vm4, %v10854_v60, %v326_v2  ;;  %402 = vrot.lane.b32.xlu1 %v381_v3, %s8300_s29  ;;  %v379_v29 = vmul.f32 0.2, %v355_v62  ;;  %v391_v28 = vmul.f32 0.5, %v322_v55  ;;  %v8008_v24 = vld [vmem:[%s8557_s2] sm:$0xff]   ;;  %v8010_v3 = vld [vmem:[%s8557_s2 + $0x10] sm:$0xff]  }
 0x122   : > { %v321_v22 = vmul.f32 %v8634_v23, %v295_v27  ;;  %v375_v58 = vadd.f32 %v371_v6, %v367_v56  ;;  %v354_v21 = vmul.f32 %v8714_v51, %v328_v0  ;;  %v366_v33 = vadd.f32 %v362_v1, %v358_v57  ;;  %7209 = vmatprep.subr.bf16.mxu1 %v8008_v24  ;;  %v444_v27 = vld [vmem:[%s443_s22] sm:$0x3]  ;;  %s8308_s22 = smov 24  }
 0x123   : > { %v386_v5 = vmul.f32 -0.5, %v288_v31  ;;  %v395_v49 = vadd.f32 %v391_v28, %v387_v20  ;;  %7210 = vmatpush3.bf16.msra.mxu1 %v8008_v24  ;;  %v8736_v34 = vsub.s32 0, %v8604_v47  ;;  %v8740_v62 = vsub.s32 1, %v8604_v47 }
 0x124   : > { %v370_v30 = vmul.f32 0.1, %v321_v22  ;;  %v383_v63 = vadd.f32 %v379_v29, %v375_v58  ;;  %v378_v4 = vmul.f32 0.2, %v354_v21  ;;  %v390_v37 = vmul.f32 0.5, %v321_v22  ;;  %7211 = vmatprep.subr.bf16.mxu1 %v8009_v53 }
 0x125   : > { %v448_v22 = vrot.slane %v444_v27, %v8736_v34  ;;  %v456_v1 = vrot.slane %v444_v27, %v8740_v62 }
 0x126   : > { %v374_v17 = vadd.f32 %v370_v30, %v366_v33  ;;  %406 = vrot.lane.b32.xlu0 %v383_v63, %s8300_s29  ;;  %v394_v6 = vadd.f32 %v390_v37, %v386_v5 }
 0x127   : > { %7212 = vmatpush3.bf16.msra.mxu1 %v8009_v53 }
 0x128   : > { %v382_v2 = vadd.f32 %v378_v4, %v374_v17  ;;  %7213 = vmatprep.subr.bf16.mxu1 %v8010_v3  ;;  %v8011_v17 = vld [vmem:[%s8557_s2 + $0x18] sm:$0xff]  }
 0x12a   : > { %404 = vrot.lane.b32.xlu1 %v382_v2, %s8300_s29  ;;  %422 = vrot.lane.b32.xlu0 %v395_v49, %s8299_s4 }
 0x12b   : > { %7214 = vmatpush3.bf16.msra.mxu1 %v8010_v3 }
 0x12c   : > { %7215 = vmatprep.subr.bf16.mxu1 %v8011_v17 }
 0x12e   : > { %420 = vrot.lane.b32.xlu1 %v394_v6, %s8299_s4 }
 0x12f   : > { %7216 = vmatpush3.bf16.msra.mxu1 %v8011_v17 }
 0x18b   : > { %v417_v55 = vpop.permute.xlu0 %416  ;;  %v419_v31 = vpop.permute.xlu1 %418 }
 0x191   : > { %v401_v56 = vpop.permute.xlu0 %400 }
 0x192   : > { %v429_v60 = vsel %vm428_vm5, %v8613_v54, %v401_v56  ;;  %v8014_v56 = vld [vmem:[%s8557_s2 + $0x30] sm:$0x3f]  }
 0x193   : > { %v434_v0 = vsel %vm433_vm6, %v429_v60, %v417_v55  ;;  %v403_v57 = vpop.permute.xlu1 %402  ;;  %v8015_v60 = vld [vmem:[%s8557_s2 + $0x38] sm:$0xff]  }
 0x194   : > { %v438_v58 = vmax.f32 %v434_v0, 0.0  ;;  %v430_v29 = vsel %vm428_vm5, %v8628_v18, %v403_v57 }
 0x195   : > { %v435_v21 = vsel %vm433_vm6, %v430_v29, %v419_v31  ;;  %v8012_v31 = vld [vmem:[%s8557_s2 + $0x20] sm:$0xff]  }
 0x196   : > { %v449_v33 = vmul.f32 %v448_v22, %v438_v58  ;;  %v439_v30 = vmax.f32 %v435_v21, 0.0  ;;  %7217 = vmatprep.subr.bf16.mxu1 %v8012_v31 }
 0x197   : > { %7218 = vmatpush3.bf16.msra.mxu1 %v8012_v31 }
 0x198   : > { %v407_v63 = vpop.permute.xlu0 %406  ;;  %v8750_v20 = vadd.f32 %v456_v1, %v449_v33  ;;  %v450_v28 = vmul.f32 %v448_v22, %v439_v30 }
 0x199   : > { %v432_v2 = vsel %vm428_vm5, %v8621_v59, %v407_v63 }
 0x19a   : > { %v8753_v54 = vadd.f32 %v456_v1, %v450_v28  ;;  %465 = vrot.lane.b32.xlu0 %v8750_v20, %s8301_s24 }
 0x19c   : > { %v405_v4 = vpop.permute.xlu1 %404  ;;  %v423_v18 = vpop.permute.xlu0 %422  ;;  %467 = vrot.lane.b32.xlu1 %v8753_v54, %s8301_s24 }
 0x19d   : > { %v437_v5 = vsel %vm433_vm6, %v432_v2, %v423_v18  ;;  %v431_v49 = vsel %vm428_vm5, %v8610_v52, %v405_v4  ;;  %v8013_v52 = vld [vmem:[%s8557_s2 + $0x28] sm:$0xff]  }
 0x19e   : > { %v441_v37 = vmax.f32 %v437_v5, 0.0  ;;  %7219 = vmatprep.subr.bf16.mxu1 %v8013_v52 }
 0x19f   : > { %7220 = vmatpush3.bf16.msra.mxu1 %v8013_v52 }
 0x1a0   : > { %v421_v6 = vpop.permute.xlu1 %420  ;;  %v452_v24 = vmul.f32 %v448_v22, %v441_v37  ;;  %7853 = vmatprep.subr.msk.bf16.mxu1 %vm608_vm7, %v8014_v56 }
 0x1a1   : > { %v436_v53 = vsel %vm433_vm6, %v431_v49, %v421_v6 }
 0x1a2   : > { %v440_v55 = vmax.f32 %v436_v53, 0.0  ;;  %v8764_v59 = vadd.f32 %v456_v1, %v452_v24 }
 0x1a4   : > { %v451_v27 = vmul.f32 %v448_v22, %v440_v55  ;;  %471 = vrot.lane.b32.xlu0 %v8764_v59, %s8301_s24  ;;  %v610_v22 = vsel %vm608_vm7, %v8014_v56, 0 }
 0x1a5   : > { %7222 = vmatpush3.bf16.msra.mxu1 %v610_v22 }
 0x1a6   : > { %v8767_v3 = vadd.f32 %v456_v1, %v451_v27  ;;  %7227 = vmatprep.subr.bf16.mxu1 %v8015_v60 }
 0x1a8   : > { %469 = vrot.lane.b32.xlu1 %v8767_v3, %s8301_s24  ;;  %483 = vrot.lane.b32.xlu0 %v8750_v20, %s8302_s3  ;;  %s8306_s24 = smov 48  }
 0x1ac   : > { %485 = vrot.lane.b32.xlu1 %v8753_v54, %s8302_s3  ;;  %489 = vrot.lane.b32.xlu0 %v8764_v59, %s8302_s3 }
 0x1b0   : > { %487 = vrot.lane.b32.xlu1 %v8767_v3, %s8302_s3  ;;  %s8303_s3 = smov 84  }
 0x20c   : > { %v466_v0 = vpop.permute.xlu0 %465 }
 0x20d   : > { %v478_v29 = vsel %vm477_vm8, %v466_v0, 0.0 }
 0x20e   : > { %v468_v57 = vpop.permute.xlu1 %467 }
 0x20f   : > { %v479_v30 = vsel %vm477_vm8, %v468_v57, 0.0 }
 0x216   : > { %v472_v1 = vpop.permute.xlu0 %471 }
 0x217   : > { %v481_v17 = vsel %vm477_vm8, %v472_v1, 0.0 }
 0x21a   : > { %v470_v58 = vpop.permute.xlu1 %469  ;;  %v484_v21 = vpop.permute.xlu0 %483 }
 0x21b   : > { %v8781_v33 = vsel %vm166_vm0, %v478_v29, %v484_v21  ;;  %v480_v49 = vsel %vm477_vm8, %v470_v58, 0.0  ;;  %v8016_v29 = vld [vmem:[%s8557_s2 + $0x40] sm:$0xff]  }
 0x21c   : > { %v546_v63 = vrot.slane %v8781_v33, 7 }
 0x21e   : > { %v486_v28 = vpop.permute.xlu1 %485  ;;  %v490_v2 = vpop.permute.xlu0 %489 }
 0x21f   : > { %v496_v4 = vsel %vm166_vm0, %v479_v30, %v486_v28  ;;  %v8788_v5 = vsel %vm166_vm0, %v481_v17, %v490_v2  ;;  %v8017_v30 = vld [vmem:[%s8557_s2 + $0x48] sm:$0xff]   ;;  %v8019_v28 = vld [vmem:[%s8557_s2 + $0x58] sm:$0xff]   ;;  %v8020_v17 = vld [vmem:[%s8557_s2 + $0x60] sm:$0xff]  }
 0x220   : > { %v547_v18 = vrot.slane %v496_v4, 7  ;;  %v549_v37 = vrot.slane %v8788_v5, 7  ;;  %v669_v21 = vpack.c.bf16 %v496_v4, %v8781_v33 }
 0x222   : > { %v488_v6 = vpop.permute.xlu1 %487  ;;  %v552_v24 = vsel %vm261_vm1, %v546_v63, %v547_v18  ;;  %v553_v55 = vsel %vm261_vm1, %v549_v37, %v546_v63  ;;  %v8018_v63 = vld [vmem:[%s8557_s2 + $0x50] sm:$0xff]  }
 0x223   : > { %v8795_v53 = vsel %vm166_vm0, %v480_v49, %v488_v6  ;;  %v554_v27 = vmul.f32 %v553_v55, %v8590_v41  ;;  %v555_v52 = vmul.f32 %v552_v24, %v8592_v42  ;;  %v8022_v55 = vld [vmem:[%s8557_s2 + $0x70] sm:$0xff]  }
 0x224   : > { %v548_v31 = vrot.slane %v8795_v53, 7  ;;  %v776_v2 = vrot.slane %v8795_v53, 1 }
 0x225   : > { %v558_v0 = vpack.c.bf16 %v555_v52, %v554_v27  ;;  %v8023_v27 = vld [vmem:[%s8557_s2 + $0x78] sm:$0xff]  }
 0x226   : > { %v550_v56 = vsel %vm261_vm1, %v548_v31, %v549_v37  ;;  %v551_v22 = vsel %vm261_vm1, %v547_v18, %v548_v31  ;;  %v775_v18 = vrot.slane %v496_v4, 1  ;;  %v8021_v37 = vld [vmem:[%s8557_s2 + $0x68] sm:$0x3f]   ;;  %v670_v4 = vpack.c.bf16 %v8788_v5, %v8795_v53  ;;  %v8027_v53 = vld [vmem:[%s8557_s2 + $0x98] sm:$0xff]  }
 0x227   : > { %v556_v57 = vmul.f32 %v551_v22, %v8598_v46  ;;  %v557_v1 = vmul.f32 %v550_v56, %v8594_v43  ;;  %7223 = vmatprep.mubr.msk.bf16.mxu1 %vm601_vm9, %v558_v0  ;;  %v719_v24 = vsel %vm608_vm7, %v8021_v37, 0  ;;  %v8024_v56 = vld [vmem:[%s8557_s2 + $0x80] sm:$0xff]   ;;  %v8025_v22 = vld [vmem:[%s8557_s2 + $0x88] sm:$0xff]   ;;  %v8026_v0 = vld [vmem:[%s8557_s2 + $0x90] sm:$0xff]  }
 0x228   : > { %v779_v49 = vsel %vm294_vm2, %v775_v18, %v776_v2 }
 0x229   : > { %v559_v58 = vpack.c.bf16 %v557_v1, %v556_v57  ;;  %v783_v31 = vmul.f32 %v779_v49, %v8608_v50  ;;  %v777_v57 = vrot.slane %v8788_v5, 1  ;;  %v8028_v1 = vld [vmem:[%s8557_s2 + $0xa0] sm:$0x3f]  }
 0x22b   : > { %7224 = vmatmul.mubr.msk.bf16.vlgmr.msra.gmra.mrb[0].mxu1 %vm601_vm9, %v559_v58 }
 0x22c   : > { %7228 = vmatpush3.bf16.msra.mxu1 %v8015_v60  ;;  %7241 = vmatprep.mubr.msk.bf16.mxu1 %vm601_vm9, %v669_v21  ;;  %v774_v60 = vrot.slane %v8781_v33, 1 }
 0x22d   : > { %7229 = vmatprep.subr.bf16.mxu1 %v8016_v29 }
 0x22e   : > { %v780_v6 = vsel %vm294_vm2, %v774_v60, %v775_v18  ;;  %v781_v58 = vsel %vm294_vm2, %v777_v57, %v774_v60 }
 0x22f   : > { %v782_v33 = vmul.f32 %v780_v6, %v8606_v48  ;;  %v785_v21 = vmul.f32 %v781_v58, %v8623_v61 }
 0x230   : > { %7230 = vmatpush3.bf16.msra.mxu1 %v8016_v29  ;;  %v778_v29 = vsel %vm294_vm2, %v776_v2, %v777_v57 }
 0x231   : > { %7231 = vmatprep.subr.bf16.mxu1 %v8017_v30  ;;  %v786_v52 = vpack.c.bf16 %v783_v31, %v782_v33 }
 0x234   : > { %7232 = vmatpush3.bf16.msra.mxu1 %v8017_v30  ;;  %v784_v30 = vmul.f32 %v778_v29, %v8634_v23 }
 0x235   : > { %7233 = vmatprep.subr.bf16.mxu1 %v8018_v63 }
 0x236   : > { %v787_v5 = vpack.c.bf16 %v785_v21, %v784_v30 }
 0x238   : > { %7234 = vmatpush3.bf16.msra.mxu1 %v8018_v63  ;;  %v836_v63 = vsel %vm608_vm7, %v8028_v1, 0 }
 0x239   : > { %7235 = vmatprep.subr.bf16.mxu1 %v8019_v28 }
 0x23c   : > { %7236 = vmatpush3.bf16.msra.mxu1 %v8019_v28  ;;  %v8029_v28 = vld [vmem:[%s10740_s8] sm:$0xff]  }
 0x23d   : > { %7237 = vmatprep.subr.bf16.mxu1 %v8020_v17  ;;  %7263 = vmatprep.subr.bf16.mxu0 %v8029_v28 }
 0x23e   : > { %7264 = vmatpush3.bf16.msra.mxu0 %v8029_v28 }
 0x240   : > { %7238 = vmatpush3.bf16.msra.mxu1 %v8020_v17  ;;  %v6255_v17 = vld [vmem:[%s8856_s1] ss:$0 sm:$0xff] }
 0x241   : > { %7854 = vmatprep.subr.msk.bf16.mxu1 %vm608_vm7, %v8021_v37  ;;  %v8030_v37 = vld [vmem:[%s10740_s8 + $0x8] sm:$0xff]  }
 0x242   : > { %7265 = vmatprep.subr.bf16.mxu0 %v8030_v37 }
 0x243   : > { %7266 = vmatpush3.bf16.msra.mxu0 %v8030_v37 }
 0x244   : > { %7240 = vmatpush3.bf16.msra.mxu1 %v719_v24 }
 0x245   : > { %7245 = vmatprep.subr.bf16.mxu1 %v8022_v55 }
 0x247   : > { %7242 = vmatmul.mubr.msk.bf16.vlgmr.msra.gmra.mrb[0].mxu1 %vm601_vm9, %v670_v4 }
 0x248   : > { %7246 = vmatpush3.bf16.msra.mxu1 %v8022_v55  ;;  %7259 = vmatprep.mubr.msk.bf16.mxu1 %vm601_vm9, %v786_v52 }
 0x249   : > { %7247 = vmatprep.subr.bf16.mxu1 %v8023_v27 }
 0x24c   : > { %7248 = vmatpush3.bf16.msra.mxu1 %v8023_v27 }
 0x24d   : > { %7249 = vmatprep.subr.bf16.mxu1 %v8024_v56 }
 0x250   : > { %7250 = vmatpush3.bf16.msra.mxu1 %v8024_v56 }
 0x251   : > { %7251 = vmatprep.subr.bf16.mxu1 %v8025_v22 }
 0x254   : > { %7252 = vmatpush3.bf16.msra.mxu1 %v8025_v22 }
 0x255   : > { %7253 = vmatprep.subr.bf16.mxu1 %v8026_v0 }
 0x258   : > { %7254 = vmatpush3.bf16.msra.mxu1 %v8026_v0 }
 0x259   : > { %7255 = vmatprep.subr.bf16.mxu1 %v8027_v53 }
 0x25c   : > { %7256 = vmatpush3.bf16.msra.mxu1 %v8027_v53 }
 0x25d   : > { %7855 = vmatprep.subr.msk.bf16.mxu1 %vm608_vm7, %v8028_v1 }
 0x260   : > { %7258 = vmatpush3.bf16.msra.mxu1 %v836_v63 }
 0x263   : > { %7260 = vmatmul.mubr.msk.bf16.vlgmr.msra.gmra.mrb[0].mxu1 %vm601_vm9, %v787_v5 }
 0x336   : > { %v7261_v2 = vpop.f32.mrb[0].mxu1 }
 0x337   : > { %v8859_v60 = vadd.f32 %v7261_v2, %v6255_v17  ;;  %v872_v18 = vpop.f32.mrb[1].mxu1 }
 0x338   : > { %v8864_v49 = vadd.f32 %v6255_v17, %v872_v18  ;;  %v7262_v6 = vpop.f32.mrb[2].mxu1 }
 0x339   : > { %v10757_v24 = vrot.slane %v8859_v60, 6  ;;  %v10758_v55 = vrot.slane %v8859_v60, 7  ;;  %v10759_v31 = vrot.slane %v8859_v60, 1  ;;  %v8869_v33 = vadd.f32 %v7262_v6, %v6255_v17  ;;  %v875_v4 = vpop.f32.mrb[3].mxu1 }
 0x33a   : > { %v891_v27 = vrot.slane %v8864_v49, 6  ;;  %v903_v52 = vrot.slane %v8864_v49, 7  ;;  %v915_v56 = vrot.slane %v8864_v49, 1  ;;  %v8874_v22 = vadd.f32 %v6255_v17, %v875_v4 }
 0x33b   : > { %v894_v0 = vrot.slane %v8869_v33, 6  ;;  %v906_v53 = vrot.slane %v8869_v33, 7  ;;  %v927_v1 = vrot.slane %v8864_v49, 2  ;;  %v930_v13 = vrot.slane %v8869_v33, 2 }
 0x33c   : > { %v892_v58 = vrot.slane %v8874_v22, 6  ;;  %v904_v29 = vrot.slane %v8874_v22, 7  ;;  %v916_v21 = vrot.slane %v8874_v22, 1  ;;  %v928_v30 = vrot.slane %v8874_v22, 2 }
 0x33d   : > { %v910_v63 = vsel %vm261_vm1, %v906_v53, %v903_v52  ;;  %v898_v5 = vsel %vm228_vm3, %v894_v0, %v891_v27  ;;  %v895_v28 = vsel %vm228_vm3, %v10757_v24, %v894_v0  ;;  %v907_v17 = vsel %vm261_vm1, %v10758_v55, %v906_v53 }
 0x33e   : > { %v911_v2 = vmul.f32 %v910_v63, %v8590_v41  ;;  %v921_v18 = vsel %vm294_vm2, %v915_v56, %v916_v21  ;;  %v909_v37 = vsel %vm261_vm1, %v903_v52, %v904_v29  ;;  %v920_v6 = vsel %vm294_vm2, %v916_v21, %v10759_v31 }
 0x33f   : > { %v923_v4 = vmul.f32 %v921_v18, %v8606_v48  ;;  %v912_v0 = vmul.f32 %v909_v37, %v8592_v42  ;;  %v924_v24 = vmul.f32 %v920_v6, %v8608_v50  ;;  %v899_v53 = vmul.f32 %v898_v5, %v8584_v38  ;;  %v8031_v18 = vld [vmem:[%s10740_s8 + $0x10] sm:$0xff]  }
 0x340   : > { %v967_v63 = vmul.f32 -0.5, %v911_v2  ;;  %v933_v55 = vsel %vm327_vm4, %v927_v1, %v928_v30  ;;  %v943_v57 = vmul.f32 -0.1, %v911_v2  ;;  %v902_v52 = vmul.f32 %v895_v28, %v8586_v39  ;;  %7267 = vmatprep.subr.bf16.mxu0 %v8031_v18 }
 0x341   : > { %v971_v7 = vmul.f32 0.5, %v923_v4  ;;  %v968_v8 = vmul.f32 -0.5, %v912_v0  ;;  %v972_v9 = vmul.f32 0.5, %v924_v24  ;;  %v935_v21 = vmul.f32 %v933_v55, %v8662_v19  ;;  %7268 = vmatpush3.bf16.msra.mxu0 %v8031_v18 }
 0x342   : > { %v939_v37 = vmul.f32 -0.2, %v899_v53  ;;  %v951_v6 = vmul.f32 0.1, %v923_v4  ;;  %v914_v5 = vmul.f32 %v907_v17, %v8594_v43  ;;  %v10856_v31 = vrot.slane %v8869_v33, 1 }
 0x343   : > { %v975_v10 = vadd.f32 %v971_v7, %v967_v63  ;;  %v976_v28 = vadd.f32 %v972_v9, %v968_v8  ;;  %v959_v11 = vmul.f32 0.2, %v935_v21  ;;  %v942_v14 = vmul.f32 -0.2, %v902_v52 }
 0x344   : > { %v922_v2 = vsel %vm294_vm2, %v10856_v31, %v915_v56  ;;  %v947_v55 = vadd.f32 %v943_v57, %v939_v37  ;;  %v946_v15 = vmul.f32 -0.1, %v914_v5  ;;  %v897_v31 = vsel %vm228_vm3, %v891_v27, %v892_v58 }
 0x345   : > { %v926_v12 = vmul.f32 %v922_v2, %v8623_v61  ;;  %999 = vrot.lane.b32.xlu0 %v975_v10, %s8299_s4  ;;  %1001 = vrot.lane.b32.xlu1 %v976_v28, %s8299_s4  ;;  %v929_v7 = vrot.slane %v8859_v60, 2  ;;  %v944_v8 = vmul.f32 -0.1, %v912_v0  ;;  %v934_v56 = vsel %vm327_vm4, %v930_v13, %v927_v1 }
 0x346   : > { %v955_v9 = vadd.f32 %v951_v6, %v947_v55  ;;  %v950_v57 = vadd.f32 %v946_v15, %v942_v14  ;;  %v900_v4 = vmul.f32 %v897_v31, %v8588_v40  ;;  %v938_v53 = vmul.f32 %v934_v56, %v8699_v32  ;;  %v8032_v14 = vld [vmem:[%s10740_s8 + $0x18] sm:$0xff]  }
 0x347   : > { %v954_v17 = vmul.f32 0.1, %v926_v12  ;;  %v932_v10 = vsel %vm327_vm4, %v928_v30, %v929_v7  ;;  %v10857_v63 = vrot.slane %v8859_v60, 6  ;;  %v10858_v37 = vrot.slane %v8859_v60, 7  ;;  %7269 = vmatprep.subr.bf16.mxu0 %v8032_v14 }
 0x348   : > { %v963_v52 = vadd.f32 %v959_v11, %v955_v9  ;;  %v936_v0 = vmul.f32 %v932_v10, %v8669_v45  ;;  %v940_v18 = vmul.f32 -0.2, %v900_v4  ;;  %v962_v15 = vmul.f32 0.2, %v938_v53  ;;  %7270 = vmatpush3.bf16.msra.mxu0 %v8032_v14 }
 0x349   : > { %v896_v27 = vsel %vm228_vm3, %v892_v58, %v10857_v63  ;;  %v958_v21 = vadd.f32 %v954_v17, %v950_v57  ;;  %v908_v30 = vsel %vm261_vm1, %v904_v29, %v10858_v37  ;;  %v10859_v6 = vrot.slane %v8869_v33, 1 }
 0x34a   : > { %v901_v1 = vmul.f32 %v896_v27, %v8596_v44  ;;  %v10860_v11 = vrot.slane %v8859_v60, 1  ;;  %983 = vrot.lane.b32.xlu0 %v963_v52, %s8300_s29  ;;  %v948_v2 = vadd.f32 %v944_v8, %v940_v18  ;;  %v952_v28 = vmul.f32 0.1, %v924_v24 }
 0x34b   : > { %v913_v55 = vmul.f32 %v908_v30, %v8598_v46  ;;  %v966_v31 = vadd.f32 %v962_v15, %v958_v21  ;;  %v931_v29 = vsel %vm327_vm4, %v929_v7, %v930_v13  ;;  %v960_v53 = vmul.f32 0.2, %v936_v0  ;;  %v8033_v13 = vld [vmem:[%s10740_s8 + $0x20] sm:$0xff]   ;;  %v8034_v0 = vld [vmem:[%s10740_s8 + $0x28] sm:$0xff]  }
 0x34c   : > { %v919_v58 = vsel %vm294_vm2, %v10860_v11, %v10859_v6  ;;  %v941_v9 = vmul.f32 -0.2, %v901_v1  ;;  %v956_v56 = vadd.f32 %v952_v28, %v948_v2  ;;  %v937_v57 = vmul.f32 %v931_v29, %v8714_v51  ;;  %7271 = vmatprep.subr.bf16.mxu0 %v8033_v13  ;;  %v1025_v11 = vld [vmem:[%s8979_s0] sm:$0x3] }
 0x34d   : > { %v925_v17 = vmul.f32 %v919_v58, %v8634_v23  ;;  %v945_v4 = vmul.f32 -0.1, %v913_v55  ;;  %989 = vrot.lane.b32.xlu1 %v966_v31, %s8300_s29  ;;  %v970_v63 = vmul.f32 -0.5, %v914_v5  ;;  %v974_v27 = vmul.f32 0.5, %v926_v12  ;;  %7272 = vmatpush3.bf16.msra.mxu0 %v8033_v13  ;;  %v8035_v5 = vld [vmem:[%s8557_s2 + $0xa8] sm:$0xff]  }
 0x34e   : > { %v964_v10 = vadd.f32 %v960_v53, %v956_v56  ;;  %v961_v18 = vmul.f32 0.2, %v937_v57  ;;  %v969_v21 = vmul.f32 -0.5, %v913_v55  ;;  %7273 = vmatprep.subr.bf16.mxu0 %v8034_v0  ;;  %v1029_v28 = vrot.slane %v1025_v11, %v8736_v34 }
 0x34f   : > { %v949_v8 = vadd.f32 %v945_v4, %v941_v9  ;;  %v953_v24 = vmul.f32 0.1, %v925_v17  ;;  %v973_v14 = vmul.f32 0.5, %v925_v17  ;;  %v978_v15 = vadd.f32 %v974_v27, %v970_v63 }
 0x350   : > { %v1037_v4 = vrot.slane %v1025_v11, %v8740_v62 }
 0x351   : > { %v957_v52 = vadd.f32 %v953_v24, %v949_v8  ;;  %985 = vrot.lane.b32.xlu1 %v964_v10, %s8300_s29  ;;  %v977_v12 = vadd.f32 %v973_v14, %v969_v21  ;;  %7274 = vmatpush3.bf16.msra.mxu0 %v8034_v0 }
 0x352   : > { %7279 = vmatprep.subr.bf16.mxu0 %v8035_v5 }
 0x353   : > { %v965_v7 = vadd.f32 %v961_v18, %v957_v52 }
 0x355   : > { %987 = vrot.lane.b32.xlu0 %v965_v7, %s8300_s29  ;;  %1005 = vrot.lane.b32.xlu1 %v978_v15, %s8299_s4 }
 0x359   : > { %1003 = vrot.lane.b32.xlu0 %v977_v12, %s8299_s4  ;;  %1150 = vrot.lane.b32.xlu1 %v8753_v54, %s8303_s3 }
 0x35d   : > { %1148 = vrot.lane.b32.xlu0 %v8750_v20, %s8303_s3  ;;  %1152 = vrot.lane.b32.xlu1 %v8767_v3, %s8303_s3 }
 0x361   : > { %1154 = vrot.lane.b32.xlu0 %v8764_v59, %s8303_s3  ;;  %s8307_s3 = smov 36  }
 0x3b7   : > { %v1000_v1 = vpop.permute.xlu0 %999  ;;  %v1002_v37 = vpop.permute.xlu1 %1001 }
 0x3bc   : > { %v984_v30 = vpop.permute.xlu0 %983 }
 0x3bd   : > { %v1011_v6 = vsel %vm428_vm5, %v8864_v49, %v984_v30 }
 0x3be   : > { %v1015_v58 = vsel %vm433_vm6, %v1011_v6, %v1000_v1 }
 0x3bf   : > { %v990_v2 = vpop.permute.xlu1 %989  ;;  %v1019_v55 = vmax.f32 %v1015_v58, 0.0  ;;  %v8036_v58 = vld [vmem:[%s8557_s2 + $0xb0] sm:$0xff]  }
 0x3c0   : > { %v1014_v49 = vsel %vm428_vm5, %v8869_v33, %v990_v2 }
 0x3c1   : > { %v1030_v9 = vmul.f32 %v1029_v28, %v1019_v55 }
 0x3c3   : > { %v986_v17 = vpop.permute.xlu1 %985  ;;  %v1038_v52 = vadd.f32 %v1037_v4, %v1030_v9 }
 0x3c4   : > { %v1012_v31 = vsel %vm428_vm5, %v8874_v22, %v986_v17 }
 0x3c5   : > { %v1016_v29 = vsel %vm433_vm6, %v1012_v31, %v1002_v37  ;;  %v8037_v31 = vld [vmem:[%s8557_s2 + $0xb8] sm:$0xff]  }
 0x3c6   : > { %v1020_v56 = vmax.f32 %v1016_v29, 0.0 }
 0x3c7   : > { %v988_v57 = vpop.permute.xlu0 %987  ;;  %v1006_v53 = vpop.permute.xlu1 %1005 }
 0x3c8   : > { %v1031_v8 = vmul.f32 %v1029_v28, %v1020_v56  ;;  %v1018_v24 = vsel %vm433_vm6, %v1014_v49, %v1006_v53  ;;  %v1013_v63 = vsel %vm428_vm5, %v8859_v60, %v988_v57  ;;  %v8038_v57 = vld [vmem:[%s8557_s2 + $0xc0] sm:$0xff]   ;;  %v8040_v53 = vld [vmem:[%s8557_s2 + $0xd0] sm:$0xff]  }
 0x3c9   : > { %v1022_v10 = vmax.f32 %v1018_v24, 0.0  ;;  %v8041_v24 = vld [vmem:[%s8557_s2 + $0xd8] sm:$0x3f]  }
 0x3ca   : > { %v1039_v22 = vadd.f32 %v1037_v4, %v1031_v8 }
 0x3cb   : > { %v1004_v27 = vpop.permute.xlu0 %1003  ;;  %v1033_v18 = vmul.f32 %v1029_v28, %v1022_v10  ;;  %v1151_v7 = vpop.permute.xlu1 %1150 }
 0x3cc   : > { %v1017_v13 = vsel %vm433_vm6, %v1013_v63, %v1004_v27  ;;  %v1054_v14 = vpack.c.bf16 %v1039_v22, %v1038_v52  ;;  %v8997_v33 = vsel %vm166_vm0, %v1039_v22, %v1151_v7  ;;  %v8043_v7 = vld [vmem:[%s8557_s2 + $0xe8] sm:$0xff]  }
 0x3cd   : > { %v1021_v21 = vmax.f32 %v1017_v13, 0.0  ;;  %v1041_v0 = vadd.f32 %v1037_v4, %v1033_v18  ;;  %v1212_v37 = vrot.slane %v8997_v33, 7  ;;  %v8042_v18 = vld [vmem:[%s8557_s2 + $0xe0] sm:$0xff]  }
 0x3ce   : > { %7275 = vmatprep.mubr.msk.bf16.mxu0 %vm166_vm0, %v1054_v14  ;;  %v8044_v14 = vld [vmem:[%s8557_s2 + $0xf0] sm:$0xff]  }
 0x3cf   : > { %v1032_v15 = vmul.f32 %v1029_v28, %v1021_v21  ;;  %v1149_v12 = vpop.permute.xlu0 %1148 }
 0x3d0   : > { %v9001_v60 = vsel %vm166_vm0, %v1038_v52, %v1149_v12  ;;  %v1273_v52 = vsel %vm608_vm7, %v8041_v24, 0  ;;  %v8047_v12 = vld [vmem:[%s8557_s2 + $0x108] sm:$0xff]  }
 0x3d1   : > { %v1040_v1 = vadd.f32 %v1037_v4, %v1032_v15  ;;  %v1211_v30 = vrot.slane %v9001_v60, 7  ;;  %v1153_v4 = vpop.permute.xlu1 %1152  ;;  %v1332_v21 = vpack.c.bf16 %v8997_v33, %v9001_v60  ;;  %v8046_v15 = vld [vmem:[%s8557_s2 + $0x100] sm:$0xff]  }
 0x3d3   : > { %v1055_v6 = vpack.c.bf16 %v1041_v0, %v1040_v1  ;;  %v1155_v11 = vpop.permute.xlu0 %1154  ;;  %v1217_v28 = vsel %vm261_vm1, %v1211_v30, %v1212_v37  ;;  %v9022_v49 = vsel %vm166_vm0, %v1040_v1, %v1153_v4  ;;  %v8054_v4 = vld [vmem:[%s8557_s2 + $0x140] sm:$0xff]  }
 0x3d4   : > { %v9007_v2 = vsel %vm166_vm0, %v1041_v0, %v1155_v11  ;;  %v1220_v9 = vmul.f32 %v1217_v28, %v8592_v42  ;;  %v1213_v8 = vrot.slane %v9022_v49, 7  ;;  %v8045_v0 = vld [vmem:[%s8557_s2 + $0xf8] sm:$0xff]   ;;  %v1439_v1 = vrot.slane %v9022_v49, 1 }
 0x3d5   : > { %v1214_v55 = vrot.slane %v9007_v2, 7  ;;  %7276 = vmatmul.mubr.msk.bf16.vlgmr.msra.gmra.mrb[4].mxu0 %vm166_vm0, %v1055_v6  ;;  %v8048_v6 = vld [vmem:[%s8557_s2 + $0x110] sm:$0x3f]  }
 0x3d6   : > { %7280 = vmatpush3.bf16.msra.mxu0 %v8035_v5  ;;  %v8039_v5 = vld [vmem:[%s8557_s2 + $0xc8] sm:$0xff]   ;;  %v1216_v10 = vsel %vm261_vm1, %v1212_v37, %v1213_v8  ;;  %v1438_v37 = vrot.slane %v8997_v33, 1  ;;  %v1382_v28 = vsel %vm608_vm7, %v8048_v6, 0 }
 0x3d7   : > { %v1218_v17 = vsel %vm261_vm1, %v1214_v55, %v1211_v30  ;;  %7281 = vmatprep.subr.bf16.mxu0 %v8036_v58  ;;  %v1215_v63 = vsel %vm261_vm1, %v1213_v8, %v1214_v55  ;;  %v1221_v27 = vmul.f32 %v1216_v10, %v8598_v46  ;;  %v1437_v30 = vrot.slane %v9001_v60, 1  ;;  %v8049_v55 = vld [vmem:[%s8557_s2 + $0x118] sm:$0xff]  }
 0x3d8   : > { %v1219_v29 = vmul.f32 %v1218_v17, %v8590_v41  ;;  %v1222_v22 = vmul.f32 %v1215_v63, %v8594_v43  ;;  %v1442_v11 = vsel %vm294_vm2, %v1438_v37, %v1439_v1  ;;  %v1333_v17 = vpack.c.bf16 %v9007_v2, %v9022_v49  ;;  %v8055_v49 = vld [vmem:[%s8557_s2 + $0x148] sm:$0x3f]  }
 0x3d9   : > { %v1446_v33 = vmul.f32 %v1442_v11, %v8608_v50  ;;  %v1499_v63 = vsel %vm608_vm7, %v8055_v49, 0 }
 0x3da   : > { %7282 = vmatpush3.bf16.msra.mxu0 %v8036_v58  ;;  %v1223_v56 = vpack.c.bf16 %v1220_v9, %v1219_v29  ;;  %v1224_v13 = vpack.c.bf16 %v1222_v22, %v1221_v27  ;;  %v1443_v58 = vsel %vm294_vm2, %v1437_v30, %v1438_v37  ;;  %v8051_v9 = vld [vmem:[%s8557_s2 + $0x128] sm:$0xff]   ;;  %v8056_v27 = vld [vmem:[%s10740_s8 + $0x30] sm:$0xff]  }
 0x3db   : > { %7283 = vmatprep.subr.bf16.mxu0 %v8037_v31  ;;  %v1445_v60 = vmul.f32 %v1443_v58, %v8606_v48  ;;  %7333 = vmatprep.subr.bf16.mxu1 %v8056_v27 }
 0x3dc   : > { %7293 = vmatprep.mubr.msk.bf16.mxu0 %vm601_vm9, %v1223_v56  ;;  %v8052_v56 = vld [vmem:[%s8557_s2 + $0x130] sm:$0xff]   ;;  %7334 = vmatpush3.bf16.msra.mxu1 %v8056_v27 }
 0x3dd   : > { %v1449_v29 = vpack.c.bf16 %v1446_v33, %v1445_v60 }
 0x3de   : > { %7284 = vmatpush3.bf16.msra.mxu0 %v8037_v31  ;;  %v8050_v31 = vld [vmem:[%s8557_s2 + $0x120] sm:$0xff]  }
 0x3df   : > { %7285 = vmatprep.subr.bf16.mxu0 %v8038_v57 }
 0x3e2   : > { %7286 = vmatpush3.bf16.msra.mxu0 %v8038_v57  ;;  %v8053_v57 = vld [vmem:[%s8557_s2 + $0x138] sm:$0xff]  }
 0x3e3   : > { %7287 = vmatprep.subr.bf16.mxu0 %v8039_v5 }
 0x3e6   : > { %7288 = vmatpush3.bf16.msra.mxu0 %v8039_v5  ;;  %v1440_v5 = vrot.slane %v9007_v2, 1 }
 0x3e7   : > { %7289 = vmatprep.subr.bf16.mxu0 %v8040_v53 }
 0x3e8   : > { %v1444_v8 = vsel %vm294_vm2, %v1440_v5, %v1437_v30 }
 0x3e9   : > { %v1448_v10 = vmul.f32 %v1444_v8, %v8623_v61 }
 0x3ea   : > { %7290 = vmatpush3.bf16.msra.mxu0 %v8040_v53  ;;  %v1441_v53 = vsel %vm294_vm2, %v1439_v1, %v1440_v5 }
 0x3eb   : > { %7856 = vmatprep.subr.msk.bf16.mxu0 %vm608_vm7, %v8041_v24  ;;  %v1447_v24 = vmul.f32 %v1441_v53, %v8634_v23 }
 0x3ed   : > { %v1450_v2 = vpack.c.bf16 %v1448_v10, %v1447_v24 }
 0x3ee   : > { %7292 = vmatpush3.bf16.msra.mxu0 %v1273_v52 }
 0x3ef   : > { %7297 = vmatprep.subr.bf16.mxu0 %v8042_v18 }
 0x3f1   : > { %7294 = vmatmul.mubr.msk.bf16.vlgmr.msra.gmra.mrb[8].mxu0 %vm601_vm9, %v1224_v13 }
 0x3f2   : > { %7298 = vmatpush3.bf16.msra.mxu0 %v8042_v18  ;;  %7311 = vmatprep.mubr.msk.bf16.mxu0 %vm601_vm9, %v1332_v21 }
 0x3f3   : > { %7299 = vmatprep.subr.bf16.mxu0 %v8043_v7 }
 0x3f6   : > { %7300 = vmatpush3.bf16.msra.mxu0 %v8043_v7  ;;  %v6336_v7 = vld [vmem:[%s8856_s1 + $0x1] ss:$0 sm:$0xff] }
 0x3f7   : > { %7301 = vmatprep.subr.bf16.mxu0 %v8044_v14 }
 0x3fa   : > { %7302 = vmatpush3.bf16.msra.mxu0 %v8044_v14 }
 0x3fb   : > { %7303 = vmatprep.subr.bf16.mxu0 %v8045_v0 }
 0x3fe   : > { %7304 = vmatpush3.bf16.msra.mxu0 %v8045_v0 }
 0x3ff   : > { %7305 = vmatprep.subr.bf16.mxu0 %v8046_v15 }
 0x402   : > { %7306 = vmatpush3.bf16.msra.mxu0 %v8046_v15  ;;  %v8057_v15 = vld [vmem:[%s10740_s8 + $0x38] sm:$0xff]  }
 0x403   : > { %7307 = vmatprep.subr.bf16.mxu0 %v8047_v12  ;;  %7335 = vmatprep.subr.bf16.mxu1 %v8057_v15 }
 0x404   : > { %7336 = vmatpush3.bf16.msra.mxu1 %v8057_v15 }
 0x406   : > { %7308 = vmatpush3.bf16.msra.mxu0 %v8047_v12 }
 0x407   : > { %7857 = vmatprep.subr.msk.bf16.mxu0 %vm608_vm7, %v8048_v6 }
 0x40a   : > { %7310 = vmatpush3.bf16.msra.mxu0 %v1382_v28 }
 0x40b   : > { %7315 = vmatprep.subr.bf16.mxu0 %v8049_v55 }
 0x40d   : > { %7312 = vmatmul.mubr.msk.bf16.vlgmr.msra.gmra.mrb[8].mxu0 %vm601_vm9, %v1333_v17 }
 0x40e   : > { %7316 = vmatpush3.bf16.msra.mxu0 %v8049_v55  ;;  %7329 = vmatprep.mubr.msk.bf16.mxu0 %vm601_vm9, %v1449_v29 }
 0x40f   : > { %7317 = vmatprep.subr.bf16.mxu0 %v8050_v31 }
 0x412   : > { %7318 = vmatpush3.bf16.msra.mxu0 %v8050_v31 }
 0x413   : > { %7319 = vmatprep.subr.bf16.mxu0 %v8051_v9 }
 0x416   : > { %7320 = vmatpush3.bf16.msra.mxu0 %v8051_v9 }
 0x417   : > { %7321 = vmatprep.subr.bf16.mxu0 %v8052_v56 }
 0x41a   : > { %7322 = vmatpush3.bf16.msra.mxu0 %v8052_v56 }
 0x41b   : > { %7323 = vmatprep.subr.bf16.mxu0 %v8053_v57 }
 0x41e   : > { %7324 = vmatpush3.bf16.msra.mxu0 %v8053_v57 }
 0x41f   : > { %7325 = vmatprep.subr.bf16.mxu0 %v8054_v4 }
 0x422   : > { %7326 = vmatpush3.bf16.msra.mxu0 %v8054_v4 }
 0x423   : > { %7858 = vmatprep.subr.msk.bf16.mxu0 %vm608_vm7, %v8055_v49 }
 0x426   : > { %7328 = vmatpush3.bf16.msra.mxu0 %v1499_v63 }
 0x429   : > { %7330 = vmatmul.mubr.msk.bf16.vlgmr.msra.gmra.mrb[8].mxu0 %vm601_vm9, %v1450_v2 }
 0x4a8   : > { %v9081_v22 = vpop.f32.mrb[4].mxu0 }
 0x4a9   : > { %10861 = vst [vmem:[#allocation29_spill] sm:$0xff] %v9081_v22  ;;  %v9083_v52 = vpop.f32.mrb[5].mxu0 }
 0x4aa   : > { %10862 = vst [vmem:[#allocation30_spill] sm:$0xff] %v9083_v52  ;;  %v9085_v18 = vpop.f32.mrb[6].mxu0 }
 0x4ab   : > { %10863 = vst [vmem:[#allocation31_spill] sm:$0xff] %v9085_v18  ;;  %v9087_v13 = vpop.f32.mrb[7].mxu0 }
 0x4ac   : > { %10864 = vst [vmem:[#allocation32_spill] sm:$0xff] %v9087_v13 }
 0x4fc   : > { %v7331_v21 = vpop.f32.mrb[8].mxu0 }
 0x4fd   : > { %v9090_v14 = vadd.f32 %v7331_v21, %v6336_v7  ;;  %v1535_v0 = vpop.f32.mrb[9].mxu0 }
 0x4fe   : > { %v9095_v12 = vadd.f32 %v6336_v7, %v1535_v0  ;;  %v7332_v1 = vpop.f32.mrb[10].mxu0 }
 0x4ff   : > { %v10762_v37 = vrot.slane %v9090_v14, 6  ;;  %v10760_v30 = vrot.slane %v9090_v14, 7  ;;  %v10761_v6 = vrot.slane %v9090_v14, 1  ;;  %v9100_v11 = vadd.f32 %v7332_v1, %v6336_v7  ;;  %v1538_v58 = vpop.f32.mrb[11].mxu0 }
 0x500   : > { %v1554_v28 = vrot.slane %v9095_v12, 6  ;;  %v1566_v55 = vrot.slane %v9095_v12, 7  ;;  %v1578_v33 = vrot.slane %v9095_v12, 1  ;;  %v9105_v60 = vadd.f32 %v6336_v7, %v1538_v58 }
 0x501   : > { %v1557_v17 = vrot.slane %v9100_v11, 6  ;;  %v1569_v31 = vrot.slane %v9100_v11, 7  ;;  %v1581_v29 = vrot.slane %v9100_v11, 1  ;;  %v1590_v9 = vrot.slane %v9095_v12, 2 }
 0x502   : > { %v1555_v56 = vrot.slane %v9105_v60, 6  ;;  %v1567_v57 = vrot.slane %v9105_v60, 7  ;;  %v1579_v4 = vrot.slane %v9105_v60, 1  ;;  %v1591_v5 = vrot.slane %v9105_v60, 2 }
 0x503   : > { %v1573_v49 = vsel %vm261_vm1, %v1569_v31, %v1566_v55  ;;  %v1561_v53 = vsel %vm228_vm3, %v1557_v17, %v1554_v28  ;;  %v1558_v8 = vsel %vm228_vm3, %v10762_v37, %v1557_v17  ;;  %v1570_v24 = vsel %vm261_vm1, %v10760_v30, %v1569_v31 }
 0x504   : > { %v1574_v10 = vmul.f32 %v1573_v49, %v8590_v41  ;;  %v1584_v63 = vsel %vm294_vm2, %v1578_v33, %v1579_v4  ;;  %v1572_v2 = vsel %vm261_vm1, %v1566_v55, %v1567_v57  ;;  %v1583_v27 = vsel %vm294_vm2, %v1579_v4, %v10761_v6 }
 0x505   : > { %v1586_v7 = vmul.f32 %v1584_v63, %v8606_v48  ;;  %v1575_v21 = vmul.f32 %v1572_v2, %v8592_v42  ;;  %v1587_v0 = vmul.f32 %v1583_v27, %v8608_v50  ;;  %v1562_v15 = vmul.f32 %v1561_v53, %v8584_v38  ;;  %v8058_v63 = vld [vmem:[%s10740_s8 + $0x40] sm:$0xff]  }
 0x506   : > { %v1630_v1 = vmul.f32 -0.5, %v1574_v10  ;;  %v1596_v58 = vsel %vm327_vm4, %v1590_v9, %v1591_v5  ;;  %v1606_v17 = vmul.f32 -0.1, %v1574_v10  ;;  %v1565_v55 = vmul.f32 %v1558_v8, %v8586_v39  ;;  %7337 = vmatprep.subr.bf16.mxu1 %v8058_v63 }
 0x507   : > { %v1634_v31 = vmul.f32 0.5, %v1586_v7  ;;  %v1631_v49 = vmul.f32 -0.5, %v1575_v21  ;;  %v1635_v30 = vmul.f32 0.5, %v1587_v0  ;;  %v1598_v4 = vmul.f32 %v1596_v58, %v8662_v19  ;;  %7338 = vmatpush3.bf16.msra.mxu1 %v8058_v63 }
 0x508   : > { %v1602_v2 = vmul.f32 -0.2, %v1562_v15  ;;  %v1614_v27 = vmul.f32 0.1, %v1586_v7  ;;  %v1577_v53 = vmul.f32 %v1570_v24, %v8594_v43  ;;  %v1585_v10 = vsel %vm294_vm2, %v1581_v29, %v1578_v33 }
 0x509   : > { %v1638_v6 = vadd.f32 %v1634_v31, %v1630_v1  ;;  %v1639_v8 = vadd.f32 %v1635_v30, %v1631_v49  ;;  %v1622_v37 = vmul.f32 0.2, %v1598_v4  ;;  %v1589_v16 = vmul.f32 %v1585_v10, %v8623_v61 }
 0x50a   : > { %v1610_v58 = vadd.f32 %v1606_v17, %v1602_v2  ;;  %v1593_v36 = vrot.slane %v9100_v11, 2  ;;  %v1605_v35 = vmul.f32 -0.2, %v1565_v55  ;;  %v1609_v26 = vmul.f32 -0.1, %v1577_v53 }
 0x50b   : > { %1662 = vrot.lane.b32.xlu0 %v1638_v6, %s8299_s4  ;;  %1664 = vrot.lane.b32.xlu1 %v1639_v8, %s8299_s4  ;;  %v1617_v24 = vmul.f32 0.1, %v1589_v16  ;;  %v1560_v33 = vsel %vm228_vm3, %v1554_v28, %v1555_v56  ;;  %v1592_v30 = vrot.slane %v9090_v14, 2  ;;  %v1607_v7 = vmul.f32 -0.1, %v1575_v21 }
 0x50c   : > { %v1618_v15 = vadd.f32 %v1614_v27, %v1610_v58  ;;  %v1597_v1 = vsel %vm327_vm4, %v1593_v36, %v1590_v9  ;;  %v1613_v17 = vadd.f32 %v1609_v26, %v1605_v35  ;;  %v1563_v55 = vmul.f32 %v1560_v33, %v8588_v40  ;;  %v8059_v26 = vld [vmem:[%s10740_s8 + $0x48] sm:$0xff]  }
 0x50d   : > { %v1601_v31 = vmul.f32 %v1597_v1, %v8699_v32  ;;  %v1595_v6 = vsel %vm327_vm4, %v1591_v5, %v1592_v30  ;;  %v10865_v49 = vrot.slane %v9090_v14, 6  ;;  %v10866_v27 = vrot.slane %v9090_v14, 7  ;;  %7339 = vmatprep.subr.bf16.mxu1 %v8059_v26 }
 0x50e   : > { %v1626_v4 = vadd.f32 %v1622_v37, %v1618_v15  ;;  %v1621_v63 = vadd.f32 %v1617_v24, %v1613_v17  ;;  %v1599_v21 = vmul.f32 %v1595_v6, %v8669_v45  ;;  %v1603_v2 = vmul.f32 -0.2, %v1563_v55  ;;  %7340 = vmatpush3.bf16.msra.mxu1 %v8059_v26 }
 0x50f   : > { %v1559_v28 = vsel %vm228_vm3, %v1555_v56, %v10865_v49  ;;  %v1625_v35 = vmul.f32 0.2, %v1601_v31  ;;  %v1571_v5 = vsel %vm261_vm1, %v1567_v57, %v10866_v27  ;;  %v10867_v37 = vrot.slane %v9090_v14, 1 }
 0x510   : > { %v1564_v9 = vmul.f32 %v1559_v28, %v8596_v44  ;;  %1646 = vrot.lane.b32.xlu0 %v1626_v4, %s8300_s29  ;;  %v1611_v10 = vadd.f32 %v1607_v7, %v1603_v2  ;;  %v1615_v8 = vmul.f32 0.1, %v1587_v0  ;;  %v1576_v58 = vmul.f32 %v1571_v5, %v8598_v46 }
 0x511   : > { %v1582_v56 = vsel %vm294_vm2, %v10867_v37, %v1581_v29  ;;  %v1629_v33 = vadd.f32 %v1625_v35, %v1621_v63  ;;  %v1594_v57 = vsel %vm327_vm4, %v1592_v30, %v1593_v36  ;;  %v1623_v29 = vmul.f32 0.2, %v1599_v21  ;;  %v8060_v36 = vld [vmem:[%s10740_s8 + $0x50] sm:$0xff]   ;;  %v8061_v21 = vld [vmem:[%s10740_s8 + $0x58] sm:$0xff]   ;;  %v6356_v37 = vld [vmem:[%s8979_s0 + $0x2] sm:$0x3] }
 0x512   : > { %v1588_v24 = vmul.f32 %v1582_v56, %v8634_v23  ;;  %v1604_v15 = vmul.f32 -0.2, %v1564_v9  ;;  %v1619_v1 = vadd.f32 %v1615_v8, %v1611_v10  ;;  %v1600_v17 = vmul.f32 %v1594_v57, %v8714_v51  ;;  %7341 = vmatprep.subr.bf16.mxu1 %v8060_v36 }
 0x513   : > { %v1608_v55 = vmul.f32 -0.1, %v1576_v58  ;;  %1652 = vrot.lane.b32.xlu1 %v1629_v33, %s8300_s29  ;;  %v1633_v6 = vmul.f32 -0.5, %v1577_v53  ;;  %v1637_v49 = vmul.f32 0.5, %v1589_v16  ;;  %v1632_v63 = vmul.f32 -0.5, %v1576_v58  ;;  %7342 = vmatpush3.bf16.msra.mxu1 %v8060_v36  ;;  %v8062_v53 = vld [vmem:[%s8557_s2 + $0x150] sm:$0xff]  }
 0x514   : > { %v1616_v0 = vmul.f32 0.1, %v1588_v24  ;;  %v1627_v31 = vadd.f32 %v1623_v29, %v1619_v1  ;;  %v1624_v4 = vmul.f32 0.2, %v1600_v17  ;;  %v1636_v2 = vmul.f32 0.5, %v1588_v24  ;;  %7343 = vmatprep.subr.bf16.mxu1 %v8061_v21 }
 0x515   : > { %v1612_v7 = vadd.f32 %v1608_v55, %v1604_v15  ;;  %v1641_v26 = vadd.f32 %v1637_v49, %v1633_v6  ;;  %v1692_v8 = vrot.slane %v6356_v37, %v8736_v34  ;;  %v1700_v55 = vrot.slane %v6356_v37, %v8740_v62 }
 0x516   : > { %v1640_v16 = vadd.f32 %v1636_v2, %v1632_v63 }
 0x517   : > { %v1620_v28 = vadd.f32 %v1616_v0, %v1612_v7  ;;  %1648 = vrot.lane.b32.xlu1 %v1627_v31, %s8300_s29  ;;  %7344 = vmatpush3.bf16.msra.mxu1 %v8061_v21 }
 0x518   : > { %7349 = vmatprep.subr.bf16.mxu1 %v8062_v53 }
 0x519   : > { %v1628_v30 = vadd.f32 %v1624_v4, %v1620_v28 }
 0x51b   : > { %1650 = vrot.lane.b32.xlu0 %v1628_v30, %s8300_s29  ;;  %1668 = vrot.lane.b32.xlu1 %v1641_v26, %s8299_s4 }
 0x51f   : > { %1666 = vrot.lane.b32.xlu0 %v1640_v16, %s8299_s4  ;;  %1814 = vrot.lane.b32.xlu1 %v8753_v54, %s10790_s27 }
 0x523   : > { %1812 = vrot.lane.b32.xlu0 %v8750_v20, %s10790_s27  ;;  %1816 = vrot.lane.b32.xlu1 %v8767_v3, %s10790_s27 }
 0x527   : > { %1818 = vrot.lane.b32.xlu0 %v8764_v59, %s10790_s27 }
 0x57d   : > { %v1663_v35 = vpop.permute.xlu0 %1662  ;;  %v1665_v9 = vpop.permute.xlu1 %1664 }
 0x582   : > { %v1647_v27 = vpop.permute.xlu0 %1646 }
 0x583   : > { %v1674_v5 = vsel %vm428_vm5, %v9095_v12, %v1647_v27 }
 0x584   : > { %v1678_v56 = vsel %vm433_vm6, %v1674_v5, %v1663_v35 }
 0x585   : > { %v1653_v10 = vpop.permute.xlu1 %1652  ;;  %v1682_v58 = vmax.f32 %v1678_v56, 0.0  ;;  %v8063_v56 = vld [vmem:[%s8557_s2 + $0x158] sm:$0xff]  }
 0x586   : > { %v1677_v12 = vsel %vm428_vm5, %v9100_v11, %v1653_v10 }
 0x587   : > { %v1693_v15 = vmul.f32 %v1692_v8, %v1682_v58 }
 0x589   : > { %v1649_v24 = vpop.permute.xlu1 %1648  ;;  %v1701_v28 = vadd.f32 %v1700_v55, %v1693_v15 }
 0x58a   : > { %v1675_v33 = vsel %vm428_vm5, %v9105_v60, %v1649_v24 }
 0x58b   : > { %v1679_v57 = vsel %vm433_vm6, %v1675_v33, %v1665_v9  ;;  %v8064_v33 = vld [vmem:[%s8557_s2 + $0x160] sm:$0xff]  }
 0x58c   : > { %v1683_v1 = vmax.f32 %v1679_v57, 0.0 }
 0x58d   : > { %v1651_v17 = vpop.permute.xlu0 %1650  ;;  %v1669_v29 = vpop.permute.xlu1 %1668 }
 0x58e   : > { %v1694_v7 = vmul.f32 %v1692_v8, %v1683_v1  ;;  %v1681_v0 = vsel %vm433_vm6, %v1677_v12, %v1669_v29  ;;  %v1676_v6 = vsel %vm428_vm5, %v9090_v14, %v1651_v17  ;;  %v8065_v17 = vld [vmem:[%s8557_s2 + $0x168] sm:$0xff]   ;;  %v8067_v29 = vld [vmem:[%s8557_s2 + $0x178] sm:$0xff]  }
 0x58f   : > { %v1685_v31 = vmax.f32 %v1681_v0, 0.0  ;;  %v8068_v0 = vld [vmem:[%s8557_s2 + $0x180] sm:$0x3f]  }
 0x590   : > { %v1702_v60 = vadd.f32 %v1700_v55, %v1694_v7 }
 0x591   : > { %v1667_v49 = vpop.permute.xlu0 %1666  ;;  %v1696_v4 = vmul.f32 %v1692_v8, %v1685_v31  ;;  %v1815_v30 = vpop.permute.xlu1 %1814 }
 0x592   : > { %v1680_v36 = vsel %vm433_vm6, %v1676_v6, %v1667_v49  ;;  %v1718_v2 = vpack.c.bf16 %v1702_v60, %v1701_v28  ;;  %v9226_v11 = vsel %vm166_vm0, %v1702_v60, %v1815_v30  ;;  %v8070_v30 = vld [vmem:[%s8557_s2 + $0x190] sm:$0xff]  }
 0x593   : > { %v1684_v63 = vmax.f32 %v1680_v36, 0.0  ;;  %v1704_v21 = vadd.f32 %v1700_v55, %v1696_v4  ;;  %v1876_v9 = vrot.slane %v9226_v11, 7  ;;  %v8069_v4 = vld [vmem:[%s8557_s2 + $0x188] sm:$0xff]  }
 0x594   : > { %7345 = vmatprep.mubr.msk.bf16.mxu1 %vm166_vm0, %v1718_v2  ;;  %v8071_v2 = vld [vmem:[%s8557_s2 + $0x198] sm:$0xff]  }
 0x595   : > { %v1695_v26 = vmul.f32 %v1692_v8, %v1684_v63  ;;  %v1813_v16 = vpop.permute.xlu0 %1812 }
 0x596   : > { %v9230_v14 = vsel %vm166_vm0, %v1701_v28, %v1813_v16  ;;  %v1937_v28 = vsel %vm608_vm7, %v8068_v0, 0  ;;  %v8074_v16 = vld [vmem:[%s8557_s2 + $0x1b0] sm:$0xff]  }
 0x597   : > { %v1703_v35 = vadd.f32 %v1700_v55, %v1695_v26  ;;  %v1875_v27 = vrot.slane %v9230_v14, 7  ;;  %v1817_v55 = vpop.permute.xlu1 %1816  ;;  %v1996_v63 = vpack.c.bf16 %v9226_v11, %v9230_v14  ;;  %v8073_v26 = vld [vmem:[%s8557_s2 + $0x1a8] sm:$0xff]  }
 0x599   : > { %v1719_v5 = vpack.c.bf16 %v1704_v21, %v1703_v35  ;;  %v1819_v37 = vpop.permute.xlu0 %1818  ;;  %v1881_v8 = vsel %vm261_vm1, %v1875_v27, %v1876_v9  ;;  %v9251_v12 = vsel %vm166_vm0, %v1703_v35, %v1817_v55  ;;  %v8081_v55 = vld [vmem:[%s8557_s2 + $0x1e8] sm:$0xff]  }
 0x59a   : > { %v9236_v10 = vsel %vm166_vm0, %v1704_v21, %v1819_v37  ;;  %v1884_v15 = vmul.f32 %v1881_v8, %v8592_v42  ;;  %v1877_v7 = vrot.slane %v9251_v12, 7  ;;  %v8072_v21 = vld [vmem:[%s8557_s2 + $0x1a0] sm:$0xff]   ;;  %v2103_v35 = vrot.slane %v9251_v12, 1 }
 0x59b   : > { %v1878_v58 = vrot.slane %v9236_v10, 7  ;;  %7346 = vmatmul.mubr.msk.bf16.vlgmr.msra.gmra.mrb[4].mxu1 %vm166_vm0, %v1719_v5  ;;  %v8075_v5 = vld [vmem:[%s8557_s2 + $0x1b8] sm:$0x3f]  }
 0x59c   : > { %7350 = vmatpush3.bf16.msra.mxu1 %v8062_v53  ;;  %v8066_v53 = vld [vmem:[%s8557_s2 + $0x170] sm:$0xff]   ;;  %v1880_v31 = vsel %vm261_vm1, %v1876_v9, %v1877_v7  ;;  %v2102_v9 = vrot.slane %v9226_v11, 1  ;;  %v2046_v8 = vsel %vm608_vm7, %v8075_v5, 0 }
 0x59d   : > { %v1882_v24 = vsel %vm261_vm1, %v1878_v58, %v1875_v27  ;;  %7351 = vmatprep.subr.bf16.mxu1 %v8063_v56  ;;  %v1879_v6 = vsel %vm261_vm1, %v1877_v7, %v1878_v58  ;;  %v1885_v49 = vmul.f32 %v1880_v31, %v8598_v46  ;;  %v2101_v27 = vrot.slane %v9230_v14, 1  ;;  %v8076_v58 = vld [vmem:[%s8557_s2 + $0x1c0] sm:$0xff]  }
 0x59e   : > { %v1883_v57 = vmul.f32 %v1882_v24, %v8590_v41  ;;  %v1886_v60 = vmul.f32 %v1879_v6, %v8594_v43  ;;  %v2106_v37 = vsel %vm294_vm2, %v2102_v9, %v2103_v35  ;;  %v1997_v24 = vpack.c.bf16 %v9236_v10, %v9251_v12  ;;  %v8082_v12 = vld [vmem:[%s8557_s2 + $0x1f0] sm:$0x3f]  }
 0x59f   : > { %v2110_v11 = vmul.f32 %v2106_v37, %v8608_v50  ;;  %v2163_v6 = vsel %vm608_vm7, %v8082_v12, 0 }
 0x5a0   : > { %7352 = vmatpush3.bf16.msra.mxu1 %v8063_v56  ;;  %v1887_v1 = vpack.c.bf16 %v1884_v15, %v1883_v57  ;;  %v1888_v36 = vpack.c.bf16 %v1886_v60, %v1885_v49  ;;  %v2107_v56 = vsel %vm294_vm2, %v2101_v27, %v2102_v9  ;;  %v8078_v15 = vld [vmem:[%s8557_s2 + $0x1d0] sm:$0xff]   ;;  %v8083_v49 = vld [vmem:[%s10740_s8 + $0x60] sm:$0xff]  }
 0x5a1   : > { %7353 = vmatprep.subr.bf16.mxu1 %v8064_v33  ;;  %v2109_v14 = vmul.f32 %v2107_v56, %v8606_v48  ;;  %7403 = vmatprep.subr.bf16.mxu0 %v8083_v49 }
 0x5a2   : > { %7363 = vmatprep.mubr.msk.bf16.mxu1 %vm601_vm9, %v1887_v1  ;;  %v8079_v1 = vld [vmem:[%s8557_s2 + $0x1d8] sm:$0xff]   ;;  %7404 = vmatpush3.bf16.msra.mxu0 %v8083_v49 }
 0x5a3   : > { %v2113_v57 = vpack.c.bf16 %v2110_v11, %v2109_v14 }
 0x5a4   : > { %7354 = vmatpush3.bf16.msra.mxu1 %v8064_v33  ;;  %v8077_v33 = vld [vmem:[%s8557_s2 + $0x1c8] sm:$0xff]  }
 0x5a5   : > { %7355 = vmatprep.subr.bf16.mxu1 %v8065_v17 }
 0x5a8   : > { %7356 = vmatpush3.bf16.msra.mxu1 %v8065_v17  ;;  %v8080_v17 = vld [vmem:[%s8557_s2 + $0x1e0] sm:$0xff]  }
 0x5a9   : > { %7357 = vmatprep.subr.bf16.mxu1 %v8066_v53 }
 0x5ac   : > { %7358 = vmatpush3.bf16.msra.mxu1 %v8066_v53  ;;  %v2104_v53 = vrot.slane %v9236_v10, 1 }
 0x5ad   : > { %7359 = vmatprep.subr.bf16.mxu1 %v8067_v29 }
 0x5ae   : > { %v2108_v7 = vsel %vm294_vm2, %v2104_v53, %v2101_v27 }
 0x5af   : > { %v2112_v31 = vmul.f32 %v2108_v7, %v8623_v61 }
 0x5b0   : > { %7360 = vmatpush3.bf16.msra.mxu1 %v8067_v29  ;;  %v2105_v29 = vsel %vm294_vm2, %v2103_v35, %v2104_v53  ;;  %v8084_v35 = vld [vmem:[%s10740_s8 + $0x68] sm:$0xff]  }
 0x5b1   : > { %7859 = vmatprep.subr.msk.bf16.mxu1 %vm608_vm7, %v8068_v0  ;;  %v2111_v0 = vmul.f32 %v2105_v29, %v8634_v23  ;;  %7405 = vmatprep.subr.bf16.mxu0 %v8084_v35 }
 0x5b2   : > { %7406 = vmatpush3.bf16.msra.mxu0 %v8084_v35 }
 0x5b3   : > { %v2114_v10 = vpack.c.bf16 %v2112_v31, %v2111_v0 }
 0x5b4   : > { %7362 = vmatpush3.bf16.msra.mxu1 %v1937_v28 }
 0x5b5   : > { %7367 = vmatprep.subr.bf16.mxu1 %v8069_v4 }
 0x5b7   : > { %7364 = vmatmul.mubr.msk.bf16.vlgmr.msra.gmra.mrb[8].mxu1 %vm601_vm9, %v1888_v36 }
 0x5b8   : > { %7368 = vmatpush3.bf16.msra.mxu1 %v8069_v4  ;;  %7381 = vmatprep.mubr.msk.bf16.mxu1 %vm601_vm9, %v1996_v63 }
 0x5b9   : > { %7369 = vmatprep.subr.bf16.mxu1 %v8070_v30 }
 0x5bc   : > { %7370 = vmatpush3.bf16.msra.mxu1 %v8070_v30 }
 0x5bd   : > { %7371 = vmatprep.subr.bf16.mxu1 %v8071_v2 }
 0x5c0   : > { %7372 = vmatpush3.bf16.msra.mxu1 %v8071_v2  ;;  %v6430_v2 = vld [vmem:[%s8856_s1 + $0x2] ss:$0 sm:$0xff] }
 0x5c1   : > { %7373 = vmatprep.subr.bf16.mxu1 %v8072_v21 }
 0x5c4   : > { %7374 = vmatpush3.bf16.msra.mxu1 %v8072_v21 }
 0x5c5   : > { %7375 = vmatprep.subr.bf16.mxu1 %v8073_v26 }
 0x5c8   : > { %7376 = vmatpush3.bf16.msra.mxu1 %v8073_v26 }
 0x5c9   : > { %7377 = vmatprep.subr.bf16.mxu1 %v8074_v16 }
 0x5cc   : > { %7378 = vmatpush3.bf16.msra.mxu1 %v8074_v16 }
 0x5cd   : > { %7860 = vmatprep.subr.msk.bf16.mxu1 %vm608_vm7, %v8075_v5 }
 0x5d0   : > { %7380 = vmatpush3.bf16.msra.mxu1 %v2046_v8 }
 0x5d1   : > { %7385 = vmatprep.subr.bf16.mxu1 %v8076_v58 }
 0x5d3   : > { %7382 = vmatmul.mubr.msk.bf16.vlgmr.msra.gmra.mrb[8].mxu1 %vm601_vm9, %v1997_v24 }
 0x5d4   : > { %7386 = vmatpush3.bf16.msra.mxu1 %v8076_v58  ;;  %7399 = vmatprep.mubr.msk.bf16.mxu1 %vm601_vm9, %v2113_v57 }
 0x5d5   : > { %7387 = vmatprep.subr.bf16.mxu1 %v8077_v33 }
 0x5d8   : > { %7388 = vmatpush3.bf16.msra.mxu1 %v8077_v33 }
 0x5d9   : > { %7389 = vmatprep.subr.bf16.mxu1 %v8078_v15 }
 0x5dc   : > { %7390 = vmatpush3.bf16.msra.mxu1 %v8078_v15 }
 0x5dd   : > { %7391 = vmatprep.subr.bf16.mxu1 %v8079_v1 }
 0x5e0   : > { %7392 = vmatpush3.bf16.msra.mxu1 %v8079_v1 }
 0x5e1   : > { %7393 = vmatprep.subr.bf16.mxu1 %v8080_v17 }
 0x5e4   : > { %7394 = vmatpush3.bf16.msra.mxu1 %v8080_v17 }
 0x5e5   : > { %7395 = vmatprep.subr.bf16.mxu1 %v8081_v55 }
 0x5e8   : > { %7396 = vmatpush3.bf16.msra.mxu1 %v8081_v55 }
 0x5e9   : > { %7861 = vmatprep.subr.msk.bf16.mxu1 %vm608_vm7, %v8082_v12 }
 0x5ec   : > { %7398 = vmatpush3.bf16.msra.mxu1 %v2163_v6 }
 0x5ef   : > { %7400 = vmatmul.mubr.msk.bf16.vlgmr.msra.gmra.mrb[8].mxu1 %vm601_vm9, %v2114_v10 }
 0x66e   : > { %v9310_v60 = vpop.f32.mrb[4].mxu1 }
 0x66f   : > { %v9312_v28 = vpop.f32.mrb[5].mxu1 }
 0x670   : > { %v9314_v4 = vpop.f32.mrb[6].mxu1 }
 0x671   : > { %v9318_v30 = vpop.f32.mrb[7].mxu1 }
 0x6c2   : > { %v7401_v21 = vpop.f32.mrb[8].mxu1 }
 0x6c3   : > { %v9323_v26 = vadd.f32 %v7401_v21, %v6430_v2  ;;  %v2199_v16 = vpop.f32.mrb[9].mxu1 }
 0x6c4   : > { %v9328_v9 = vadd.f32 %v6430_v2, %v2199_v16  ;;  %v7402_v27 = vpop.f32.mrb[10].mxu1 }
 0x6c5   : > { %v10768_v5 = vrot.slane %v9323_v26, 6  ;;  %v10766_v37 = vrot.slane %v9323_v26, 7  ;;  %v10767_v56 = vrot.slane %v9323_v26, 1  ;;  %v9333_v8 = vadd.f32 %v7402_v27, %v6430_v2  ;;  %v2202_v58 = vpop.f32.mrb[11].mxu1 }
 0x6c6   : > { %v2218_v11 = vrot.slane %v9328_v9, 6  ;;  %v2230_v14 = vrot.slane %v9328_v9, 7  ;;  %v2242_v24 = vrot.slane %v9328_v9, 1  ;;  %v9338_v33 = vadd.f32 %v6430_v2, %v2202_v58 }
 0x6c7   : > { %v2221_v57 = vrot.slane %v9333_v8, 6  ;;  %v2233_v15 = vrot.slane %v9333_v8, 7  ;;  %v2245_v1 = vrot.slane %v9333_v8, 1  ;;  %v2254_v17 = vrot.slane %v9328_v9, 2 }
 0x6c8   : > { %v2219_v55 = vrot.slane %v9338_v33, 6  ;;  %v2231_v53 = vrot.slane %v9338_v33, 7  ;;  %v2243_v12 = vrot.slane %v9338_v33, 1  ;;  %v2255_v29 = vrot.slane %v9338_v33, 2 }
 0x6c9   : > { %v2237_v7 = vsel %vm261_vm1, %v2233_v15, %v2230_v14  ;;  %v2225_v0 = vsel %vm228_vm3, %v2221_v57, %v2218_v11  ;;  %v2222_v31 = vsel %vm228_vm3, %v10768_v5, %v2221_v57  ;;  %v2234_v6 = vsel %vm261_vm1, %v10766_v37, %v2233_v15 }
 0x6ca   : > { %v2238_v10 = vmul.f32 %v2237_v7, %v8590_v41  ;;  %v2248_v49 = vsel %vm294_vm2, %v2242_v24, %v2243_v12  ;;  %v2236_v2 = vsel %vm261_vm1, %v2230_v14, %v2231_v53  ;;  %v2247_v21 = vsel %vm294_vm2, %v2243_v12, %v10767_v56 }
 0x6cb   : > { %v2250_v16 = vmul.f32 %v2248_v49, %v8606_v48  ;;  %v2239_v35 = vmul.f32 %v2236_v2, %v8592_v42  ;;  %v2251_v27 = vmul.f32 %v2247_v21, %v8608_v50  ;;  %v2226_v58 = vmul.f32 %v2225_v0, %v8584_v38  ;;  %v8085_v49 = vld [vmem:[%s10740_s8 + $0x70] sm:$0xff]  }
 0x6cc   : > { %v2294_v57 = vmul.f32 -0.5, %v2238_v10  ;;  %v2260_v15 = vsel %vm327_vm4, %v2254_v17, %v2255_v29  ;;  %v2270_v7 = vmul.f32 -0.1, %v2238_v10  ;;  %v2229_v14 = vmul.f32 %v2222_v31, %v8586_v39  ;;  %7407 = vmatprep.subr.bf16.mxu0 %v8085_v49 }
 0x6cd   : > { %v2298_v63 = vmul.f32 0.5, %v2250_v16  ;;  %v2295_v36 = vmul.f32 -0.5, %v2239_v35  ;;  %v2299_v37 = vmul.f32 0.5, %v2251_v27  ;;  %v2262_v12 = vmul.f32 %v2260_v15, %v8662_v19  ;;  %7408 = vmatpush3.bf16.msra.mxu0 %v8085_v49 }
 0x6ce   : > { %v2266_v2 = vmul.f32 -0.2, %v2226_v58  ;;  %v2278_v21 = vmul.f32 0.1, %v2250_v16  ;;  %v2241_v0 = vmul.f32 %v2234_v6, %v8594_v43  ;;  %v2249_v10 = vsel %vm294_vm2, %v2245_v1, %v2242_v24 }
 0x6cf   : > { %v2302_v56 = vadd.f32 %v2298_v63, %v2294_v57  ;;  %v2303_v31 = vadd.f32 %v2299_v37, %v2295_v36  ;;  %v2286_v5 = vmul.f32 0.2, %v2262_v12  ;;  %v2253_v25 = vmul.f32 %v2249_v10, %v8623_v61 }
 0x6d0   : > { %v2274_v15 = vadd.f32 %v2270_v7, %v2266_v2  ;;  %v2257_v52 = vrot.slane %v9333_v8, 2  ;;  %v2269_v13 = vmul.f32 -0.2, %v2229_v14  ;;  %v2273_v22 = vmul.f32 -0.1, %v2241_v0 }
 0x6d1   : > { %2326 = vrot.lane.b32.xlu0 %v2302_v56, %s8299_s4  ;;  %2328 = vrot.lane.b32.xlu1 %v2303_v31, %s8299_s4  ;;  %v2281_v6 = vmul.f32 0.1, %v2253_v25  ;;  %v2224_v24 = vsel %vm228_vm3, %v2218_v11, %v2219_v55  ;;  %v2256_v36 = vrot.slane %v9323_v26, 2  ;;  %v2271_v63 = vmul.f32 -0.1, %v2239_v35 }
 0x6d2   : > { %v2282_v37 = vadd.f32 %v2278_v21, %v2274_v15  ;;  %v2261_v16 = vsel %vm327_vm4, %v2257_v52, %v2254_v17  ;;  %v2277_v58 = vadd.f32 %v2273_v22, %v2269_v13  ;;  %v2227_v57 = vmul.f32 %v2224_v24, %v8588_v40  ;;  %v8086_v22 = vld [vmem:[%s10740_s8 + $0x78] sm:$0xff]  }
 0x6d3   : > { %v2265_v7 = vmul.f32 %v2261_v16, %v8699_v32  ;;  %v2259_v56 = vsel %vm327_vm4, %v2255_v29, %v2256_v36  ;;  %v10868_v14 = vrot.slane %v9323_v26, 6  ;;  %v10869_v21 = vrot.slane %v9323_v26, 7  ;;  %7409 = vmatprep.subr.bf16.mxu0 %v8086_v22 }
 0x6d4   : > { %v2290_v12 = vadd.f32 %v2286_v5, %v2282_v37  ;;  %v2285_v49 = vadd.f32 %v2281_v6, %v2277_v58  ;;  %v2263_v35 = vmul.f32 %v2259_v56, %v8669_v45  ;;  %v2267_v2 = vmul.f32 -0.2, %v2227_v57  ;;  %7410 = vmatpush3.bf16.msra.mxu0 %v8086_v22 }
 0x6d5   : > { %v2223_v11 = vsel %vm228_vm3, %v2219_v55, %v10868_v14  ;;  %v2289_v13 = vmul.f32 0.2, %v2265_v7  ;;  %v2235_v29 = vsel %vm261_vm1, %v2231_v53, %v10869_v21  ;;  %v10870_v5 = vrot.slane %v9323_v26, 1 }
 0x6d6   : > { %v2228_v17 = vmul.f32 %v2223_v11, %v8596_v44  ;;  %2310 = vrot.lane.b32.xlu0 %v2290_v12, %s8300_s29  ;;  %v2275_v10 = vadd.f32 %v2271_v63, %v2267_v2  ;;  %v2279_v31 = vmul.f32 0.1, %v2251_v27  ;;  %v2240_v15 = vmul.f32 %v2235_v29, %v8598_v46 }
 0x6d7   : > { %v2246_v55 = vsel %vm294_vm2, %v10870_v5, %v2245_v1  ;;  %v2293_v24 = vadd.f32 %v2289_v13, %v2285_v49  ;;  %v2258_v53 = vsel %vm327_vm4, %v2256_v36, %v2257_v52  ;;  %v2287_v1 = vmul.f32 0.2, %v2263_v35  ;;  %v8087_v52 = vld [vmem:[%s10740_s8 + $0x80] sm:$0xff]   ;;  %v8088_v35 = vld [vmem:[%s10740_s8 + $0x88] sm:$0xff]  }
 0x6d8   : > { %v2252_v6 = vmul.f32 %v2246_v55, %v8634_v23  ;;  %v2268_v37 = vmul.f32 -0.2, %v2228_v17  ;;  %v2283_v16 = vadd.f32 %v2279_v31, %v2275_v10  ;;  %v2264_v58 = vmul.f32 %v2258_v53, %v8714_v51  ;;  %7411 = vmatprep.subr.bf16.mxu0 %v8087_v52  ;;  %v6450_v5 = vld [vmem:[%s8979_s0 + $0x4] sm:$0x3] }
 0x6d9   : > { %v2272_v57 = vmul.f32 -0.1, %v2240_v15  ;;  %2316 = vrot.lane.b32.xlu1 %v2293_v24, %s8300_s29  ;;  %v2297_v56 = vmul.f32 -0.5, %v2241_v0  ;;  %v2301_v14 = vmul.f32 0.5, %v2253_v25  ;;  %v2296_v49 = vmul.f32 -0.5, %v2240_v15  ;;  %7412 = vmatpush3.bf16.msra.mxu0 %v8087_v52  ;;  %v8089_v0 = vld [vmem:[%s8557_s2 + $0x1f8] sm:$0xff]  }
 0x6da   : > { %v2280_v27 = vmul.f32 0.1, %v2252_v6  ;;  %v2291_v7 = vadd.f32 %v2287_v1, %v2283_v16  ;;  %v2288_v12 = vmul.f32 0.2, %v2264_v58  ;;  %v2300_v2 = vmul.f32 0.5, %v2252_v6  ;;  %7413 = vmatprep.subr.bf16.mxu0 %v8088_v35 }
 0x6db   : > { %v2276_v63 = vadd.f32 %v2272_v57, %v2268_v37  ;;  %v2305_v22 = vadd.f32 %v2301_v14, %v2297_v56  ;;  %v2356_v31 = vrot.slane %v6450_v5, %v8736_v34  ;;  %v2364_v57 = vrot.slane %v6450_v5, %v8740_v62 }
 0x6dc   : > { %v2304_v25 = vadd.f32 %v2300_v2, %v2296_v49 }
 0x6dd   : > { %v2284_v11 = vadd.f32 %v2280_v27, %v2276_v63  ;;  %2312 = vrot.lane.b32.xlu1 %v2291_v7, %s8300_s29  ;;  %7414 = vmatpush3.bf16.msra.mxu0 %v8088_v35 }
 0x6de   : > { %7419 = vmatprep.subr.bf16.mxu0 %v8089_v0 }
 0x6df   : > { %v2292_v36 = vadd.f32 %v2288_v12, %v2284_v11 }
 0x6e1   : > { %2314 = vrot.lane.b32.xlu0 %v2292_v36, %s8300_s29  ;;  %2332 = vrot.lane.b32.xlu1 %v2305_v22, %s8299_s4 }
 0x6e5   : > { %2330 = vrot.lane.b32.xlu0 %v2304_v25, %s8299_s4  ;;  %2478 = vrot.lane.b32.xlu1 %v8753_v54, %s8305_s28 }
 0x6e9   : > { %2476 = vrot.lane.b32.xlu0 %v8750_v20, %s8305_s28  ;;  %2480 = vrot.lane.b32.xlu1 %v8767_v3, %s8305_s28 }
 0x6ed   : > { %2482 = vrot.lane.b32.xlu0 %v8764_v59, %s8305_s28 }
 0x743   : > { %v2327_v13 = vpop.permute.xlu0 %2326  ;;  %v2329_v17 = vpop.permute.xlu1 %2328 }
 0x748   : > { %v2311_v21 = vpop.permute.xlu0 %2310 }
 0x749   : > { %v2338_v29 = vsel %vm428_vm5, %v9328_v9, %v2311_v21 }
 0x74a   : > { %v2342_v55 = vsel %vm433_vm6, %v2338_v29, %v2327_v13 }
 0x74b   : > { %v2317_v10 = vpop.permute.xlu1 %2316  ;;  %v2346_v15 = vmax.f32 %v2342_v55, 0.0  ;;  %v8090_v55 = vld [vmem:[%s8557_s2 + $0x200] sm:$0xff]  }
 0x74c   : > { %v2341_v9 = vsel %vm428_vm5, %v9333_v8, %v2317_v10 }
 0x74d   : > { %v2357_v37 = vmul.f32 %v2356_v31, %v2346_v15 }
 0x74f   : > { %v2313_v6 = vpop.permute.xlu1 %2312  ;;  %v2365_v11 = vadd.f32 %v2364_v57, %v2357_v37 }
 0x750   : > { %v2339_v24 = vsel %vm428_vm5, %v9338_v33, %v2313_v6 }
 0x751   : > { %v2343_v53 = vsel %vm433_vm6, %v2339_v24, %v2329_v17  ;;  %v8091_v24 = vld [vmem:[%s8557_s2 + $0x208] sm:$0xff]  }
 0x752   : > { %v2347_v16 = vmax.f32 %v2343_v53, 0.0 }
 0x753   : > { %v2315_v58 = vpop.permute.xlu0 %2314  ;;  %v2333_v1 = vpop.permute.xlu1 %2332 }
 0x754   : > { %v2358_v63 = vmul.f32 %v2356_v31, %v2347_v16  ;;  %v2345_v27 = vsel %vm433_vm6, %v2341_v9, %v2333_v1  ;;  %v2340_v56 = vsel %vm428_vm5, %v9323_v26, %v2315_v58  ;;  %v8092_v58 = vld [vmem:[%s8557_s2 + $0x210] sm:$0xff]   ;;  %v8094_v1 = vld [vmem:[%s8557_s2 + $0x220] sm:$0xff]  }
 0x755   : > { %v2349_v7 = vmax.f32 %v2345_v27, 0.0  ;;  %v8095_v27 = vld [vmem:[%s8557_s2 + $0x228] sm:$0x3f]  }
 0x756   : > { %v2366_v33 = vadd.f32 %v2364_v57, %v2358_v63 }
 0x757   : > { %v2331_v14 = vpop.permute.xlu0 %2330  ;;  %v2360_v12 = vmul.f32 %v2356_v31, %v2349_v7  ;;  %v2479_v36 = vpop.permute.xlu1 %2478 }
 0x758   : > { %v2344_v52 = vsel %vm433_vm6, %v2340_v56, %v2331_v14  ;;  %v2382_v2 = vpack.c.bf16 %v2366_v33, %v2365_v11  ;;  %v9459_v8 = vsel %vm166_vm0, %v2366_v33, %v2479_v36  ;;  %v8097_v36 = vld [vmem:[%s8557_s2 + $0x238] sm:$0xff]  }
 0x759   : > { %v2348_v49 = vmax.f32 %v2344_v52, 0.0  ;;  %v2368_v35 = vadd.f32 %v2364_v57, %v2360_v12  ;;  %v2540_v17 = vrot.slane %v9459_v8, 7  ;;  %v8096_v12 = vld [vmem:[%s8557_s2 + $0x230] sm:$0xff]  }
 0x75a   : > { %7415 = vmatprep.mubr.msk.bf16.mxu0 %vm166_vm0, %v2382_v2  ;;  %v8098_v2 = vld [vmem:[%s8557_s2 + $0x240] sm:$0xff]  }
 0x75b   : > { %v2359_v22 = vmul.f32 %v2356_v31, %v2348_v49  ;;  %v2477_v25 = vpop.permute.xlu0 %2476 }
 0x75c   : > { %v9463_v26 = vsel %vm166_vm0, %v2365_v11, %v2477_v25  ;;  %v2601_v11 = vsel %vm608_vm7, %v8095_v27, 0  ;;  %v8101_v25 = vld [vmem:[%s8557_s2 + $0x258] sm:$0xff]  }
 0x75d   : > { %v2367_v13 = vadd.f32 %v2364_v57, %v2359_v22  ;;  %v2539_v21 = vrot.slane %v9463_v26, 7  ;;  %v2481_v57 = vpop.permute.xlu1 %2480  ;;  %v2660_v49 = vpack.c.bf16 %v9459_v8, %v9463_v26  ;;  %v8100_v22 = vld [vmem:[%s8557_s2 + $0x250] sm:$0xff]  }
 0x75f   : > { %v2383_v29 = vpack.c.bf16 %v2368_v35, %v2367_v13  ;;  %v2483_v5 = vpop.permute.xlu0 %2482  ;;  %v2545_v31 = vsel %vm261_vm1, %v2539_v21, %v2540_v17  ;;  %v9484_v9 = vsel %vm166_vm0, %v2367_v13, %v2481_v57  ;;  %v8108_v57 = vld [vmem:[%s8557_s2 + $0x290] sm:$0xff]  }
 0x760   : > { %v9469_v10 = vsel %vm166_vm0, %v2368_v35, %v2483_v5  ;;  %v2548_v37 = vmul.f32 %v2545_v31, %v8592_v42  ;;  %v2541_v63 = vrot.slane %v9484_v9, 7  ;;  %v8099_v35 = vld [vmem:[%s8557_s2 + $0x248] sm:$0xff]   ;;  %v2767_v13 = vrot.slane %v9484_v9, 1 }
 0x761   : > { %v2542_v15 = vrot.slane %v9469_v10, 7  ;;  %7416 = vmatmul.mubr.msk.bf16.vlgmr.msra.gmra.mrb[12].mxu0 %vm166_vm0, %v2383_v29  ;;  %v8102_v29 = vld [vmem:[%s8557_s2 + $0x260] sm:$0x3f]  }
 0x762   : > { %7420 = vmatpush3.bf16.msra.mxu0 %v8089_v0  ;;  %v8093_v0 = vld [vmem:[%s8557_s2 + $0x218] sm:$0xff]   ;;  %v2544_v7 = vsel %vm261_vm1, %v2540_v17, %v2541_v63  ;;  %v2766_v17 = vrot.slane %v9459_v8, 1  ;;  %v2710_v31 = vsel %vm608_vm7, %v8102_v29, 0 }
 0x763   : > { %v2546_v6 = vsel %vm261_vm1, %v2542_v15, %v2539_v21  ;;  %7421 = vmatprep.subr.bf16.mxu0 %v8090_v55  ;;  %v2543_v56 = vsel %vm261_vm1, %v2541_v63, %v2542_v15  ;;  %v2549_v14 = vmul.f32 %v2544_v7, %v8598_v46  ;;  %v2765_v21 = vrot.slane %v9463_v26, 1  ;;  %v8103_v15 = vld [vmem:[%s8557_s2 + $0x268] sm:$0xff]  }
 0x764   : > { %v2547_v53 = vmul.f32 %v2546_v6, %v8590_v41  ;;  %v2550_v33 = vmul.f32 %v2543_v56, %v8594_v43  ;;  %v2770_v5 = vsel %vm294_vm2, %v2766_v17, %v2767_v13  ;;  %v2661_v6 = vpack.c.bf16 %v9469_v10, %v9484_v9  ;;  %v8109_v9 = vld [vmem:[%s8557_s2 + $0x298] sm:$0x3f]  }
 0x765   : > { %v2774_v8 = vmul.f32 %v2770_v5, %v8608_v50  ;;  %v2827_v56 = vsel %vm608_vm7, %v8109_v9, 0 }
 0x766   : > { %7422 = vmatpush3.bf16.msra.mxu0 %v8090_v55  ;;  %v2551_v16 = vpack.c.bf16 %v2548_v37, %v2547_v53  ;;  %v2552_v52 = vpack.c.bf16 %v2550_v33, %v2549_v14  ;;  %v2771_v55 = vsel %vm294_vm2, %v2765_v21, %v2766_v17  ;;  %v8105_v37 = vld [vmem:[%s8557_s2 + $0x278] sm:$0xff]   ;;  %v8110_v14 = vld [vmem:[%s10740_s8 + $0x90] sm:$0xff]  }
 0x767   : > { %7423 = vmatprep.subr.bf16.mxu0 %v8091_v24  ;;  %v2773_v26 = vmul.f32 %v2771_v55, %v8606_v48  ;;  %7473 = vmatprep.subr.bf16.mxu1 %v8110_v14 }
 0x768   : > { %7433 = vmatprep.mubr.msk.bf16.mxu0 %vm601_vm9, %v2551_v16  ;;  %v8106_v16 = vld [vmem:[%s8557_s2 + $0x280] sm:$0xff]   ;;  %7474 = vmatpush3.bf16.msra.mxu1 %v8110_v14 }
 0x769   : > { %v2777_v53 = vpack.c.bf16 %v2774_v8, %v2773_v26 }
 0x76a   : > { %7424 = vmatpush3.bf16.msra.mxu0 %v8091_v24  ;;  %v8104_v24 = vld [vmem:[%s8557_s2 + $0x270] sm:$0xff]  }
 0x76b   : > { %7425 = vmatprep.subr.bf16.mxu0 %v8092_v58 }
 0x76e   : > { %7426 = vmatpush3.bf16.msra.mxu0 %v8092_v58  ;;  %v8107_v58 = vld [vmem:[%s8557_s2 + $0x288] sm:$0xff]  }
 0x76f   : > { %7427 = vmatprep.subr.bf16.mxu0 %v8093_v0 }
 0x772   : > { %7428 = vmatpush3.bf16.msra.mxu0 %v8093_v0  ;;  %v2768_v0 = vrot.slane %v9469_v10, 1 }
 0x773   : > { %7429 = vmatprep.subr.bf16.mxu0 %v8094_v1 }
 0x774   : > { %v2772_v63 = vsel %vm294_vm2, %v2768_v0, %v2765_v21 }
 0x775   : > { %v2776_v7 = vmul.f32 %v2772_v63, %v8623_v61 }
 0x776   : > { %7430 = vmatpush3.bf16.msra.mxu0 %v8094_v1  ;;  %v2769_v1 = vsel %vm294_vm2, %v2767_v13, %v2768_v0  ;;  %v8111_v13 = vld [vmem:[%s10740_s8 + $0x98] sm:$0xff]  }
 0x777   : > { %7862 = vmatprep.subr.msk.bf16.mxu0 %vm608_vm7, %v8095_v27  ;;  %v2775_v27 = vmul.f32 %v2769_v1, %v8634_v23  ;;  %7475 = vmatprep.subr.bf16.mxu1 %v8111_v13 }
 0x778   : > { %7476 = vmatpush3.bf16.msra.mxu1 %v8111_v13 }
 0x779   : > { %v2778_v10 = vpack.c.bf16 %v2776_v7, %v2775_v27 }
 0x77a   : > { %7432 = vmatpush3.bf16.msra.mxu0 %v2601_v11 }
 0x77b   : > { %7437 = vmatprep.subr.bf16.mxu0 %v8096_v12 }
 0x77d   : > { %7434 = vmatmul.mubr.msk.bf16.vlgmr.msra.gmra.mrb[16].mxu0 %vm601_vm9, %v2552_v52 }
 0x77e   : > { %7438 = vmatpush3.bf16.msra.mxu0 %v8096_v12  ;;  %7451 = vmatprep.mubr.msk.bf16.mxu0 %vm601_vm9, %v2660_v49 }
 0x77f   : > { %7439 = vmatprep.subr.bf16.mxu0 %v8097_v36 }
 0x782   : > { %7440 = vmatpush3.bf16.msra.mxu0 %v8097_v36 }
 0x783   : > { %7441 = vmatprep.subr.bf16.mxu0 %v8098_v2 }
 0x786   : > { %7442 = vmatpush3.bf16.msra.mxu0 %v8098_v2  ;;  %v6524_v2 = vld [vmem:[%s8856_s1 + $0x3] ss:$0 sm:$0xff] }
 0x787   : > { %7443 = vmatprep.subr.bf16.mxu0 %v8099_v35 }
 0x78a   : > { %7444 = vmatpush3.bf16.msra.mxu0 %v8099_v35 }
 0x78b   : > { %7445 = vmatprep.subr.bf16.mxu0 %v8100_v22 }
 0x78e   : > { %7446 = vmatpush3.bf16.msra.mxu0 %v8100_v22 }
 0x78f   : > { %7447 = vmatprep.subr.bf16.mxu0 %v8101_v25 }
 0x792   : > { %7448 = vmatpush3.bf16.msra.mxu0 %v8101_v25 }
 0x793   : > { %7863 = vmatprep.subr.msk.bf16.mxu0 %vm608_vm7, %v8102_v29 }
 0x796   : > { %7450 = vmatpush3.bf16.msra.mxu0 %v2710_v31 }
 0x797   : > { %7455 = vmatprep.subr.bf16.mxu0 %v8103_v15 }
 0x799   : > { %7452 = vmatmul.mubr.msk.bf16.vlgmr.msra.gmra.mrb[16].mxu0 %vm601_vm9, %v2661_v6 }
 0x79a   : > { %7456 = vmatpush3.bf16.msra.mxu0 %v8103_v15  ;;  %7469 = vmatprep.mubr.msk.bf16.mxu0 %vm601_vm9, %v2777_v53 }
 0x79b   : > { %7457 = vmatprep.subr.bf16.mxu0 %v8104_v24 }
 0x79e   : > { %7458 = vmatpush3.bf16.msra.mxu0 %v8104_v24 }
 0x79f   : > { %7459 = vmatprep.subr.bf16.mxu0 %v8105_v37 }
 0x7a2   : > { %7460 = vmatpush3.bf16.msra.mxu0 %v8105_v37 }
 0x7a3   : > { %7461 = vmatprep.subr.bf16.mxu0 %v8106_v16 }
 0x7a6   : > { %7462 = vmatpush3.bf16.msra.mxu0 %v8106_v16 }
 0x7a7   : > { %7463 = vmatprep.subr.bf16.mxu0 %v8107_v58 }
 0x7aa   : > { %7464 = vmatpush3.bf16.msra.mxu0 %v8107_v58 }
 0x7ab   : > { %7465 = vmatprep.subr.bf16.mxu0 %v8108_v57 }
 0x7ae   : > { %7466 = vmatpush3.bf16.msra.mxu0 %v8108_v57 }
 0x7af   : > { %7864 = vmatprep.subr.msk.bf16.mxu0 %vm608_vm7, %v8109_v9 }
 0x7b2   : > { %7468 = vmatpush3.bf16.msra.mxu0 %v2827_v56 }
 0x7b5   : > { %7470 = vmatmul.mubr.msk.bf16.vlgmr.msra.gmra.mrb[16].mxu0 %vm601_vm9, %v2778_v10 }
 0x834   : > { %v9543_v33 = vpop.f32.mrb[12].mxu0 }
 0x835   : > { %10871 = vst [vmem:[#allocation33_spill] sm:$0xff] %v9543_v33  ;;  %v9545_v11 = vpop.f32.mrb[13].mxu0 }
 0x836   : > { %10872 = vst [vmem:[#allocation34_spill] sm:$0xff] %v9545_v11  ;;  %v9547_v12 = vpop.f32.mrb[14].mxu0 }
 0x837   : > { %v9551_v36 = vpop.f32.mrb[15].mxu0 }
 0x838   : > { %10873 = vst [vmem:[#allocation35_spill] sm:$0xff] %v9551_v36 }
 0x888   : > { %v7471_v35 = vpop.f32.mrb[16].mxu0 }
 0x889   : > { %v9556_v22 = vadd.f32 %v7471_v35, %v6524_v2  ;;  %v2863_v25 = vpop.f32.mrb[17].mxu0 }
 0x88a   : > { %v9561_v17 = vadd.f32 %v6524_v2, %v2863_v25  ;;  %v7472_v21 = vpop.f32.mrb[18].mxu0 }
 0x88b   : > { %v10772_v29 = vrot.slane %v9556_v22, 6  ;;  %v10770_v5 = vrot.slane %v9556_v22, 7  ;;  %v10771_v55 = vrot.slane %v9556_v22, 1  ;;  %v9566_v31 = vadd.f32 %v7472_v21, %v6524_v2  ;;  %v2866_v15 = vpop.f32.mrb[19].mxu0 }
 0x88c   : > { %v2882_v8 = vrot.slane %v9561_v17, 6  ;;  %v2894_v26 = vrot.slane %v9561_v17, 7  ;;  %v2906_v6 = vrot.slane %v9561_v17, 1  ;;  %v9571_v24 = vadd.f32 %v6524_v2, %v2866_v15 }
 0x88d   : > { %v2885_v53 = vrot.slane %v9566_v31, 6  ;;  %v2897_v37 = vrot.slane %v9566_v31, 7  ;;  %v2909_v16 = vrot.slane %v9566_v31, 1  ;;  %v2918_v58 = vrot.slane %v9561_v17, 2 }
 0x88e   : > { %v2883_v57 = vrot.slane %v9571_v24, 6  ;;  %v2895_v0 = vrot.slane %v9571_v24, 7  ;;  %v2907_v9 = vrot.slane %v9571_v24, 1  ;;  %v2919_v1 = vrot.slane %v9571_v24, 2 }
 0x88f   : > { %v2901_v63 = vsel %vm261_vm1, %v2897_v37, %v2894_v26  ;;  %v2889_v27 = vsel %vm228_vm3, %v2885_v53, %v2882_v8  ;;  %v2886_v7 = vsel %vm228_vm3, %v10772_v29, %v2885_v53  ;;  %v2898_v56 = vsel %vm261_vm1, %v10770_v5, %v2897_v37 }
 0x890   : > { %v2902_v10 = vmul.f32 %v2901_v63, %v8590_v41  ;;  %v2912_v14 = vsel %vm294_vm2, %v2906_v6, %v2907_v9  ;;  %v2900_v2 = vsel %vm261_vm1, %v2894_v26, %v2895_v0  ;;  %v2911_v35 = vsel %vm294_vm2, %v2907_v9, %v10771_v55 }
 0x891   : > { %v2914_v25 = vmul.f32 %v2912_v14, %v8606_v48  ;;  %v2903_v13 = vmul.f32 %v2900_v2, %v8592_v42  ;;  %v2915_v21 = vmul.f32 %v2911_v35, %v8608_v50  ;;  %v2890_v15 = vmul.f32 %v2889_v27, %v8584_v38  ;;  %v8112_v14 = vld [vmem:[%s10740_s8 + $0xa0] sm:$0xff]  }
 0x892   : > { %v2958_v53 = vmul.f32 -0.5, %v2902_v10  ;;  %v2924_v37 = vsel %vm327_vm4, %v2918_v58, %v2919_v1  ;;  %v2934_v63 = vmul.f32 -0.1, %v2902_v10  ;;  %v2893_v26 = vmul.f32 %v2886_v7, %v8586_v39  ;;  %7477 = vmatprep.subr.bf16.mxu1 %v8112_v14 }
 0x893   : > { %v2962_v49 = vmul.f32 0.5, %v2914_v25  ;;  %v2959_v52 = vmul.f32 -0.5, %v2903_v13  ;;  %v2963_v5 = vmul.f32 0.5, %v2915_v21  ;;  %v2926_v9 = vmul.f32 %v2924_v37, %v8662_v19  ;;  %7478 = vmatpush3.bf16.msra.mxu1 %v8112_v14 }
 0x894   : > { %v2930_v2 = vmul.f32 -0.2, %v2890_v15  ;;  %v2942_v35 = vmul.f32 0.1, %v2914_v25  ;;  %v2905_v27 = vmul.f32 %v2898_v56, %v8594_v43  ;;  %v2913_v10 = vsel %vm294_vm2, %v2909_v16, %v2906_v6 }
 0x895   : > { %v2966_v55 = vadd.f32 %v2962_v49, %v2958_v53  ;;  %v2967_v7 = vadd.f32 %v2963_v5, %v2959_v52  ;;  %v2950_v29 = vmul.f32 0.2, %v2926_v9  ;;  %v2917_v18 = vmul.f32 %v2913_v10, %v8623_v61 }
 0x896   : > { %v2938_v37 = vadd.f32 %v2934_v63, %v2930_v2  ;;  %v2921_v11 = vrot.slane %v9566_v31, 2  ;;  %v2933_v36 = vmul.f32 -0.2, %v2893_v26  ;;  %v2937_v33 = vmul.f32 -0.1, %v2905_v27 }
 0x897   : > { %2990 = vrot.lane.b32.xlu0 %v2966_v55, %s8299_s4  ;;  %2992 = vrot.lane.b32.xlu1 %v2967_v7, %s8299_s4  ;;  %v2945_v56 = vmul.f32 0.1, %v2917_v18  ;;  %v2888_v6 = vsel %vm228_vm3, %v2882_v8, %v2883_v57  ;;  %v2920_v52 = vrot.slane %v9556_v22, 2  ;;  %v2935_v49 = vmul.f32 -0.1, %v2903_v13 }
 0x898   : > { %v2946_v5 = vadd.f32 %v2942_v35, %v2938_v37  ;;  %v2925_v25 = vsel %vm327_vm4, %v2921_v11, %v2918_v58  ;;  %v2941_v15 = vadd.f32 %v2937_v33, %v2933_v36  ;;  %v2891_v53 = vmul.f32 %v2888_v6, %v8588_v40  ;;  %v8113_v33 = vld [vmem:[%s10740_s8 + $0xa8] sm:$0xff]  }
 0x899   : > { %v2929_v63 = vmul.f32 %v2925_v25, %v8699_v32  ;;  %v2923_v55 = vsel %vm327_vm4, %v2919_v1, %v2920_v52  ;;  %v10874_v26 = vrot.slane %v9556_v22, 6  ;;  %v10875_v35 = vrot.slane %v9556_v22, 7  ;;  %7479 = vmatprep.subr.bf16.mxu1 %v8113_v33 }
 0x89a   : > { %v2954_v9 = vadd.f32 %v2950_v29, %v2946_v5  ;;  %v2949_v14 = vadd.f32 %v2945_v56, %v2941_v15  ;;  %v2927_v13 = vmul.f32 %v2923_v55, %v8669_v45  ;;  %v2931_v2 = vmul.f32 -0.2, %v2891_v53  ;;  %7480 = vmatpush3.bf16.msra.mxu1 %v8113_v33 }
 0x89b   : > { %v2887_v8 = vsel %vm228_vm3, %v2883_v57, %v10874_v26  ;;  %v2953_v36 = vmul.f32 0.2, %v2929_v63  ;;  %v2899_v1 = vsel %vm261_vm1, %v2895_v0, %v10875_v35  ;;  %v10876_v29 = vrot.slane %v9556_v22, 1 }
 0x89c   : > { %v2892_v58 = vmul.f32 %v2887_v8, %v8596_v44  ;;  %2974 = vrot.lane.b32.xlu0 %v2954_v9, %s8300_s29  ;;  %v2939_v10 = vadd.f32 %v2935_v49, %v2931_v2  ;;  %v2943_v7 = vmul.f32 0.1, %v2915_v21  ;;  %v2904_v37 = vmul.f32 %v2899_v1, %v8598_v46 }
 0x89d   : > { %v2910_v57 = vsel %vm294_vm2, %v10876_v29, %v2909_v16  ;;  %v2957_v6 = vadd.f32 %v2953_v36, %v2949_v14  ;;  %v2922_v0 = vsel %vm327_vm4, %v2920_v52, %v2921_v11  ;;  %v2951_v16 = vmul.f32 0.2, %v2927_v13  ;;  %v8114_v11 = vld [vmem:[%s10740_s8 + $0xb0] sm:$0xff]   ;;  %v8115_v13 = vld [vmem:[%s10740_s8 + $0xb8] sm:$0xff]   ;;  %v6544_v29 = vld [vmem:[%s8979_s0 + $0x6] sm:$0x3] }
 0x89e   : > { %v2916_v56 = vmul.f32 %v2910_v57, %v8634_v23  ;;  %v2932_v5 = vmul.f32 -0.2, %v2892_v58  ;;  %v2947_v25 = vadd.f32 %v2943_v7, %v2939_v10  ;;  %v2928_v15 = vmul.f32 %v2922_v0, %v8714_v51  ;;  %7481 = vmatprep.subr.bf16.mxu1 %v8114_v11 }
 0x89f   : > { %v2936_v53 = vmul.f32 -0.1, %v2904_v37  ;;  %2980 = vrot.lane.b32.xlu1 %v2957_v6, %s8300_s29  ;;  %v2961_v55 = vmul.f32 -0.5, %v2905_v27  ;;  %v2965_v26 = vmul.f32 0.5, %v2917_v18  ;;  %v2960_v14 = vmul.f32 -0.5, %v2904_v37  ;;  %7482 = vmatpush3.bf16.msra.mxu1 %v8114_v11  ;;  %v8116_v27 = vld [vmem:[%s8557_s2 + $0x2a0] sm:$0xff]  }
 0x8a0   : > { %v2944_v21 = vmul.f32 0.1, %v2916_v56  ;;  %v2955_v63 = vadd.f32 %v2951_v16, %v2947_v25  ;;  %v2952_v9 = vmul.f32 0.2, %v2928_v15  ;;  %v2964_v2 = vmul.f32 0.5, %v2916_v56  ;;  %7483 = vmatprep.subr.bf16.mxu1 %v8115_v13 }
 0x8a1   : > { %v2940_v49 = vadd.f32 %v2936_v53, %v2932_v5  ;;  %v2969_v33 = vadd.f32 %v2965_v26, %v2961_v55  ;;  %v3020_v7 = vrot.slane %v6544_v29, %v8736_v34  ;;  %v3028_v53 = vrot.slane %v6544_v29, %v8740_v62 }
 0x8a2   : > { %v2968_v18 = vadd.f32 %v2964_v2, %v2960_v14 }
 0x8a3   : > { %v2948_v8 = vadd.f32 %v2944_v21, %v2940_v49  ;;  %2976 = vrot.lane.b32.xlu1 %v2955_v63, %s8300_s29  ;;  %7484 = vmatpush3.bf16.msra.mxu1 %v8115_v13 }
 0x8a4   : > { %7489 = vmatprep.subr.bf16.mxu1 %v8116_v27 }
 0x8a5   : > { %v2956_v52 = vadd.f32 %v2952_v9, %v2948_v8 }
 0x8a7   : > { %2978 = vrot.lane.b32.xlu0 %v2956_v52, %s8300_s29  ;;  %2996 = vrot.lane.b32.xlu1 %v2969_v33, %s8299_s4 }
 0x8ab   : > { %2994 = vrot.lane.b32.xlu0 %v2968_v18, %s8299_s4  ;;  %3142 = vrot.lane.b32.xlu1 %v8753_v54, %s8306_s24 }
 0x8af   : > { %3140 = vrot.lane.b32.xlu0 %v8750_v20, %s8306_s24  ;;  %3144 = vrot.lane.b32.xlu1 %v8767_v3, %s8306_s24 }
 0x8b3   : > { %3146 = vrot.lane.b32.xlu0 %v8764_v59, %s8306_s24 }
 0x909   : > { %v2991_v36 = vpop.permute.xlu0 %2990  ;;  %v2993_v58 = vpop.permute.xlu1 %2992 }
 0x90e   : > { %v2975_v35 = vpop.permute.xlu0 %2974 }
 0x90f   : > { %v3002_v1 = vsel %vm428_vm5, %v9561_v17, %v2975_v35 }
 0x910   : > { %v3006_v57 = vsel %vm433_vm6, %v3002_v1, %v2991_v36 }
 0x911   : > { %v2981_v10 = vpop.permute.xlu1 %2980  ;;  %v3010_v37 = vmax.f32 %v3006_v57, 0.0  ;;  %v8117_v57 = vld [vmem:[%s8557_s2 + $0x2a8] sm:$0xff]  }
 0x912   : > { %v3005_v17 = vsel %vm428_vm5, %v9566_v31, %v2981_v10 }
 0x913   : > { %v3021_v5 = vmul.f32 %v3020_v7, %v3010_v37 }
 0x915   : > { %v2977_v56 = vpop.permute.xlu1 %2976  ;;  %v3029_v8 = vadd.f32 %v3028_v53, %v3021_v5 }
 0x916   : > { %v3003_v6 = vsel %vm428_vm5, %v9571_v24, %v2977_v56 }
 0x917   : > { %v3007_v0 = vsel %vm433_vm6, %v3003_v6, %v2993_v58  ;;  %v8118_v6 = vld [vmem:[%s8557_s2 + $0x2b0] sm:$0xff]  }
 0x918   : > { %v3011_v25 = vmax.f32 %v3007_v0, 0.0 }
 0x919   : > { %v2979_v15 = vpop.permute.xlu0 %2978  ;;  %v2997_v16 = vpop.permute.xlu1 %2996 }
 0x91a   : > { %v3022_v49 = vmul.f32 %v3020_v7, %v3011_v25  ;;  %v3009_v21 = vsel %vm433_vm6, %v3005_v17, %v2997_v16  ;;  %v3004_v55 = vsel %vm428_vm5, %v9556_v22, %v2979_v15  ;;  %v8119_v15 = vld [vmem:[%s8557_s2 + $0x2b8] sm:$0xff]   ;;  %v8121_v16 = vld [vmem:[%s8557_s2 + $0x2c8] sm:$0xff]  }
 0x91b   : > { %v3013_v63 = vmax.f32 %v3009_v21, 0.0  ;;  %v8122_v21 = vld [vmem:[%s8557_s2 + $0x2d0] sm:$0x3f]  }
 0x91c   : > { %v3030_v24 = vadd.f32 %v3028_v53, %v3022_v49 }
 0x91d   : > { %v2995_v26 = vpop.permute.xlu0 %2994  ;;  %v3024_v9 = vmul.f32 %v3020_v7, %v3013_v63  ;;  %v3143_v52 = vpop.permute.xlu1 %3142 }
 0x91e   : > { %v3008_v11 = vsel %vm433_vm6, %v3004_v55, %v2995_v26  ;;  %v3046_v2 = vpack.c.bf16 %v3030_v24, %v3029_v8  ;;  %v9692_v31 = vsel %vm166_vm0, %v3030_v24, %v3143_v52  ;;  %v8124_v52 = vld [vmem:[%s8557_s2 + $0x2e0] sm:$0xff]  }
 0x91f   : > { %v3012_v14 = vmax.f32 %v3008_v11, 0.0  ;;  %v3032_v13 = vadd.f32 %v3028_v53, %v3024_v9  ;;  %v3204_v58 = vrot.slane %v9692_v31, 7  ;;  %v8123_v9 = vld [vmem:[%s8557_s2 + $0x2d8] sm:$0xff]  }
 0x920   : > { %7485 = vmatprep.mubr.msk.bf16.mxu1 %vm166_vm0, %v3046_v2  ;;  %v8125_v2 = vld [vmem:[%s8557_s2 + $0x2e8] sm:$0xff]  }
 0x921   : > { %v3023_v33 = vmul.f32 %v3020_v7, %v3012_v14  ;;  %v3141_v18 = vpop.permute.xlu0 %3140 }
 0x922   : > { %v9696_v22 = vsel %vm166_vm0, %v3029_v8, %v3141_v18  ;;  %v3265_v8 = vsel %vm608_vm7, %v8122_v21, 0  ;;  %v8128_v18 = vld [vmem:[%s8557_s2 + $0x300] sm:$0xff]  }
 0x923   : > { %v3031_v36 = vadd.f32 %v3028_v53, %v3023_v33  ;;  %v3203_v35 = vrot.slane %v9696_v22, 7  ;;  %v3145_v53 = vpop.permute.xlu1 %3144  ;;  %v3324_v14 = vpack.c.bf16 %v9692_v31, %v9696_v22  ;;  %v8127_v33 = vld [vmem:[%s8557_s2 + $0x2f8] sm:$0xff]  }
 0x925   : > { %v3047_v1 = vpack.c.bf16 %v3032_v13, %v3031_v36  ;;  %v3147_v29 = vpop.permute.xlu0 %3146  ;;  %v3209_v7 = vsel %vm261_vm1, %v3203_v35, %v3204_v58  ;;  %v9717_v17 = vsel %vm166_vm0, %v3031_v36, %v3145_v53  ;;  %v8135_v53 = vld [vmem:[%s8557_s2 + $0x338] sm:$0xff]  }
 0x926   : > { %v9702_v10 = vsel %vm166_vm0, %v3032_v13, %v3147_v29  ;;  %v3212_v5 = vmul.f32 %v3209_v7, %v8592_v42  ;;  %v3205_v49 = vrot.slane %v9717_v17, 7  ;;  %v8126_v13 = vld [vmem:[%s8557_s2 + $0x2f0] sm:$0xff]   ;;  %v3431_v36 = vrot.slane %v9717_v17, 1 }
 0x927   : > { %v3206_v37 = vrot.slane %v9702_v10, 7  ;;  %7486 = vmatmul.mubr.msk.bf16.vlgmr.msra.gmra.mrb[12].mxu1 %vm166_vm0, %v3047_v1  ;;  %v8129_v1 = vld [vmem:[%s8557_s2 + $0x308] sm:$0x3f]  }
 0x928   : > { %7490 = vmatpush3.bf16.msra.mxu1 %v8116_v27  ;;  %v8120_v27 = vld [vmem:[%s8557_s2 + $0x2c0] sm:$0xff]   ;;  %v3208_v63 = vsel %vm261_vm1, %v3204_v58, %v3205_v49  ;;  %v3430_v58 = vrot.slane %v9692_v31, 1  ;;  %v3374_v7 = vsel %vm608_vm7, %v8129_v1, 0 }
 0x929   : > { %v3210_v56 = vsel %vm261_vm1, %v3206_v37, %v3203_v35  ;;  %7491 = vmatprep.subr.bf16.mxu1 %v8117_v57  ;;  %v3207_v55 = vsel %vm261_vm1, %v3205_v49, %v3206_v37  ;;  %v3213_v26 = vmul.f32 %v3208_v63, %v8598_v46  ;;  %v3429_v35 = vrot.slane %v9696_v22, 1  ;;  %v8130_v37 = vld [vmem:[%s8557_s2 + $0x310] sm:$0xff]  }
 0x92a   : > { %v3211_v0 = vmul.f32 %v3210_v56, %v8590_v41  ;;  %v3214_v24 = vmul.f32 %v3207_v55, %v8594_v43  ;;  %v3434_v29 = vsel %vm294_vm2, %v3430_v58, %v3431_v36  ;;  %v3325_v56 = vpack.c.bf16 %v9702_v10, %v9717_v17  ;;  %v8136_v17 = vld [vmem:[%s8557_s2 + $0x340] sm:$0x3f]  }
 0x92b   : > { %v3438_v31 = vmul.f32 %v3434_v29, %v8608_v50  ;;  %v3491_v55 = vsel %vm608_vm7, %v8136_v17, 0 }
 0x92c   : > { %7492 = vmatpush3.bf16.msra.mxu1 %v8117_v57  ;;  %v3215_v25 = vpack.c.bf16 %v3212_v5, %v3211_v0  ;;  %v3216_v11 = vpack.c.bf16 %v3214_v24, %v3213_v26  ;;  %v3435_v57 = vsel %vm294_vm2, %v3429_v35, %v3430_v58  ;;  %v8132_v5 = vld [vmem:[%s8557_s2 + $0x320] sm:$0xff]  }
 0x92d   : > { %7493 = vmatprep.subr.bf16.mxu1 %v8118_v6  ;;  %v3437_v22 = vmul.f32 %v3435_v57, %v8606_v48  ;;  %v8137_v26 = vld [vmem:[%s10740_s8 + $0xc0] sm:$0xff]  }
 0x92e   : > { %7503 = vmatprep.mubr.msk.bf16.mxu1 %vm601_vm9, %v3215_v25  ;;  %v8133_v25 = vld [vmem:[%s8557_s2 + $0x328] sm:$0xff]   ;;  %7543 = vmatprep.subr.bf16.mxu0 %v8137_v26 }
 0x92f   : > { %v3441_v0 = vpack.c.bf16 %v3438_v31, %v3437_v22  ;;  %7544 = vmatpush3.bf16.msra.mxu0 %v8137_v26 }
 0x930   : > { %7494 = vmatpush3.bf16.msra.mxu1 %v8118_v6  ;;  %v8131_v6 = vld [vmem:[%s8557_s2 + $0x318] sm:$0xff]  }
 0x931   : > { %7495 = vmatprep.subr.bf16.mxu1 %v8119_v15 }
 0x934   : > { %7496 = vmatpush3.bf16.msra.mxu1 %v8119_v15  ;;  %v8134_v15 = vld [vmem:[%s8557_s2 + $0x330] sm:$0xff]  }
 0x935   : > { %7497 = vmatprep.subr.bf16.mxu1 %v8120_v27 }
 0x938   : > { %7498 = vmatpush3.bf16.msra.mxu1 %v8120_v27  ;;  %v3432_v27 = vrot.slane %v9702_v10, 1 }
 0x939   : > { %7499 = vmatprep.subr.bf16.mxu1 %v8121_v16 }
 0x93a   : > { %v3436_v49 = vsel %vm294_vm2, %v3432_v27, %v3429_v35 }
 0x93b   : > { %v3440_v63 = vmul.f32 %v3436_v49, %v8623_v61 }
 0x93c   : > { %7500 = vmatpush3.bf16.msra.mxu1 %v8121_v16  ;;  %v3433_v16 = vsel %vm294_vm2, %v3431_v36, %v3432_v27  ;;  %v8138_v36 = vld [vmem:[%s10740_s8 + $0xc8] sm:$0xff]  }
 0x93d   : > { %7865 = vmatprep.subr.msk.bf16.mxu1 %vm608_vm7, %v8122_v21  ;;  %v3439_v21 = vmul.f32 %v3433_v16, %v8634_v23  ;;  %7545 = vmatprep.subr.bf16.mxu0 %v8138_v36 }
 0x93e   : > { %7546 = vmatpush3.bf16.msra.mxu0 %v8138_v36 }
 0x93f   : > { %v3442_v10 = vpack.c.bf16 %v3440_v63, %v3439_v21 }
 0x940   : > { %7502 = vmatpush3.bf16.msra.mxu1 %v3265_v8 }
 0x941   : > { %7507 = vmatprep.subr.bf16.mxu1 %v8123_v9 }
 0x943   : > { %7504 = vmatmul.mubr.msk.bf16.vlgmr.msra.gmra.mrb[16].mxu1 %vm601_vm9, %v3216_v11 }
 0x944   : > { %7508 = vmatpush3.bf16.msra.mxu1 %v8123_v9  ;;  %7521 = vmatprep.mubr.msk.bf16.mxu1 %vm601_vm9, %v3324_v14 }
 0x945   : > { %7509 = vmatprep.subr.bf16.mxu1 %v8124_v52 }
 0x948   : > { %7510 = vmatpush3.bf16.msra.mxu1 %v8124_v52 }
 0x949   : > { %7511 = vmatprep.subr.bf16.mxu1 %v8125_v2 }
 0x94c   : > { %7512 = vmatpush3.bf16.msra.mxu1 %v8125_v2  ;;  %v6618_v2 = vld [vmem:[%s8856_s1 + $0x4] ss:$0 sm:$0xff] }
 0x94d   : > { %7513 = vmatprep.subr.bf16.mxu1 %v8126_v13 }
 0x950   : > { %7514 = vmatpush3.bf16.msra.mxu1 %v8126_v13 }
 0x951   : > { %7515 = vmatprep.subr.bf16.mxu1 %v8127_v33 }
 0x954   : > { %7516 = vmatpush3.bf16.msra.mxu1 %v8127_v33 }
 0x955   : > { %7517 = vmatprep.subr.bf16.mxu1 %v8128_v18 }
 0x958   : > { %7518 = vmatpush3.bf16.msra.mxu1 %v8128_v18 }
 0x959   : > { %7866 = vmatprep.subr.msk.bf16.mxu1 %vm608_vm7, %v8129_v1 }
 0x95c   : > { %7520 = vmatpush3.bf16.msra.mxu1 %v3374_v7 }
 0x95d   : > { %7525 = vmatprep.subr.bf16.mxu1 %v8130_v37 }
 0x95f   : > { %7522 = vmatmul.mubr.msk.bf16.vlgmr.msra.gmra.mrb[16].mxu1 %vm601_vm9, %v3325_v56 }
 0x960   : > { %7526 = vmatpush3.bf16.msra.mxu1 %v8130_v37  ;;  %7539 = vmatprep.mubr.msk.bf16.mxu1 %vm601_vm9, %v3441_v0 }
 0x961   : > { %7527 = vmatprep.subr.bf16.mxu1 %v8131_v6 }
 0x964   : > { %7528 = vmatpush3.bf16.msra.mxu1 %v8131_v6 }
 0x965   : > { %7529 = vmatprep.subr.bf16.mxu1 %v8132_v5 }
 0x968   : > { %7530 = vmatpush3.bf16.msra.mxu1 %v8132_v5 }
 0x969   : > { %7531 = vmatprep.subr.bf16.mxu1 %v8133_v25 }
 0x96c   : > { %7532 = vmatpush3.bf16.msra.mxu1 %v8133_v25 }
 0x96d   : > { %7533 = vmatprep.subr.bf16.mxu1 %v8134_v15 }
 0x970   : > { %7534 = vmatpush3.bf16.msra.mxu1 %v8134_v15 }
 0x971   : > { %7535 = vmatprep.subr.bf16.mxu1 %v8135_v53 }
 0x974   : > { %7536 = vmatpush3.bf16.msra.mxu1 %v8135_v53 }
 0x975   : > { %7867 = vmatprep.subr.msk.bf16.mxu1 %vm608_vm7, %v8136_v17 }
 0x978   : > { %7538 = vmatpush3.bf16.msra.mxu1 %v3491_v55 }
 0x97b   : > { %7540 = vmatmul.mubr.msk.bf16.vlgmr.msra.gmra.mrb[16].mxu1 %vm601_vm9, %v3442_v10 }
 0x9fa   : > { %v9776_v24 = vpop.f32.mrb[12].mxu1 }
 0x9fb   : > { %10877 = vst [vmem:[#allocation36_spill] sm:$0xff] %v9776_v24  ;;  %v9778_v8 = vpop.f32.mrb[13].mxu1 }
 0x9fc   : > { %10878 = vst [vmem:[#allocation37_spill] sm:$0xff] %v9778_v8  ;;  %v9780_v9 = vpop.f32.mrb[14].mxu1 }
 0x9fd   : > { %10879 = vst [vmem:[#allocation38_spill] sm:$0xff] %v9780_v9  ;;  %v9784_v52 = vpop.f32.mrb[15].mxu1 }
 0x9fe   : > { %10880 = vst [vmem:[#allocation39_spill] sm:$0xff] %v9784_v52 }
 0xa4e   : > { %v7541_v13 = vpop.f32.mrb[16].mxu1 }
 0xa4f   : > { %v9789_v33 = vadd.f32 %v7541_v13, %v6618_v2  ;;  %v3527_v18 = vpop.f32.mrb[17].mxu1 }
 0xa50   : > { %v9794_v58 = vadd.f32 %v6618_v2, %v3527_v18  ;;  %v7542_v35 = vpop.f32.mrb[18].mxu1 }
 0xa51   : > { %v10778_v1 = vrot.slane %v9789_v33, 6  ;;  %v10776_v29 = vrot.slane %v9789_v33, 7  ;;  %v10777_v57 = vrot.slane %v9789_v33, 1  ;;  %v9799_v7 = vadd.f32 %v7542_v35, %v6618_v2  ;;  %v3530_v37 = vpop.f32.mrb[19].mxu1 }
 0xa52   : > { %v3546_v31 = vrot.slane %v9794_v58, 6  ;;  %v3558_v22 = vrot.slane %v9794_v58, 7  ;;  %v3570_v56 = vrot.slane %v9794_v58, 1  ;;  %v9804_v6 = vadd.f32 %v6618_v2, %v3530_v37 }
 0xa53   : > { %v3549_v0 = vrot.slane %v9799_v7, 6  ;;  %v3561_v5 = vrot.slane %v9799_v7, 7  ;;  %v3573_v25 = vrot.slane %v9799_v7, 1  ;;  %v3582_v15 = vrot.slane %v9794_v58, 2 }
 0xa54   : > { %v3547_v53 = vrot.slane %v9804_v6, 6  ;;  %v3559_v27 = vrot.slane %v9804_v6, 7  ;;  %v3571_v17 = vrot.slane %v9804_v6, 1  ;;  %v3583_v16 = vrot.slane %v9804_v6, 2 }
 0xa55   : > { %v3565_v49 = vsel %vm261_vm1, %v3561_v5, %v3558_v22  ;;  %v3553_v21 = vsel %vm228_vm3, %v3549_v0, %v3546_v31  ;;  %v3550_v63 = vsel %vm228_vm3, %v10778_v1, %v3549_v0  ;;  %v3562_v55 = vsel %vm261_vm1, %v10776_v29, %v3561_v5 }
 0xa56   : > { %v3566_v10 = vmul.f32 %v3565_v49, %v8590_v41  ;;  %v3576_v26 = vsel %vm294_vm2, %v3570_v56, %v3571_v17  ;;  %v3564_v2 = vsel %vm261_vm1, %v3558_v22, %v3559_v27  ;;  %v3575_v13 = vsel %vm294_vm2, %v3571_v17, %v10777_v57 }
 0xa57   : > { %v3578_v18 = vmul.f32 %v3576_v26, %v8606_v48  ;;  %v3567_v36 = vmul.f32 %v3564_v2, %v8592_v42  ;;  %v3579_v35 = vmul.f32 %v3575_v13, %v8608_v50  ;;  %v3554_v37 = vmul.f32 %v3553_v21, %v8584_v38  ;;  %v8139_v26 = vld [vmem:[%s10740_s8 + $0xd0] sm:$0xff]  }
 0xa58   : > { %v3622_v0 = vmul.f32 -0.5, %v3566_v10  ;;  %v3588_v5 = vsel %vm327_vm4, %v3582_v15, %v3583_v16  ;;  %v3598_v49 = vmul.f32 -0.1, %v3566_v10  ;;  %v3557_v22 = vmul.f32 %v3550_v63, %v8586_v39  ;;  %7547 = vmatprep.subr.bf16.mxu0 %v8139_v26 }
 0xa59   : > { %v3626_v14 = vmul.f32 0.5, %v3578_v18  ;;  %v3623_v11 = vmul.f32 -0.5, %v3567_v36  ;;  %v3627_v29 = vmul.f32 0.5, %v3579_v35  ;;  %v3590_v17 = vmul.f32 %v3588_v5, %v8662_v19  ;;  %7548 = vmatpush3.bf16.msra.mxu0 %v8139_v26 }
 0xa5a   : > { %v3594_v2 = vmul.f32 -0.2, %v3554_v37  ;;  %v3606_v13 = vmul.f32 0.1, %v3578_v18  ;;  %v3569_v21 = vmul.f32 %v3562_v55, %v8594_v43  ;;  %v3577_v10 = vsel %vm294_vm2, %v3573_v25, %v3570_v56 }
 0xa5b   : > { %v3630_v57 = vadd.f32 %v3626_v14, %v3622_v0  ;;  %v3631_v63 = vadd.f32 %v3627_v29, %v3623_v11  ;;  %v3614_v1 = vmul.f32 0.2, %v3590_v17  ;;  %v3581_v8 = vmul.f32 %v3577_v10, %v8623_v61 }
 0xa5c   : > { %v3602_v5 = vadd.f32 %v3598_v49, %v3594_v2  ;;  %v3585_v52 = vrot.slane %v9799_v7, 2  ;;  %v3597_v24 = vmul.f32 -0.2, %v3557_v22  ;;  %v3601_v9 = vmul.f32 -0.1, %v3569_v21 }
 0xa5d   : > { %3654 = vrot.lane.b32.xlu0 %v3630_v57, %s8299_s4  ;;  %3656 = vrot.lane.b32.xlu1 %v3631_v63, %s8299_s4  ;;  %v3609_v55 = vmul.f32 0.1, %v3581_v8  ;;  %v3552_v56 = vsel %vm228_vm3, %v3546_v31, %v3547_v53  ;;  %v3584_v11 = vrot.slane %v9789_v33, 2  ;;  %v3599_v14 = vmul.f32 -0.1, %v3567_v36 }
 0xa5e   : > { %v3610_v29 = vadd.f32 %v3606_v13, %v3602_v5  ;;  %v3589_v18 = vsel %vm327_vm4, %v3585_v52, %v3582_v15  ;;  %v3605_v37 = vadd.f32 %v3601_v9, %v3597_v24  ;;  %v3555_v0 = vmul.f32 %v3552_v56, %v8588_v40  ;;  %v8140_v24 = vld [vmem:[%s10740_s8 + $0xd8] sm:$0xff]  }
 0xa5f   : > { %v3593_v49 = vmul.f32 %v3589_v18, %v8699_v32  ;;  %v3587_v57 = vsel %vm327_vm4, %v3583_v16, %v3584_v11  ;;  %v10881_v22 = vrot.slane %v9789_v33, 6  ;;  %v10882_v13 = vrot.slane %v9789_v33, 7  ;;  %7549 = vmatprep.subr.bf16.mxu0 %v8140_v24 }
 0xa60   : > { %v3618_v17 = vadd.f32 %v3614_v1, %v3610_v29  ;;  %v3613_v26 = vadd.f32 %v3609_v55, %v3605_v37  ;;  %v3591_v36 = vmul.f32 %v3587_v57, %v8669_v45  ;;  %v3595_v2 = vmul.f32 -0.2, %v3555_v0  ;;  %7550 = vmatpush3.bf16.msra.mxu0 %v8140_v24 }
 0xa61   : > { %v3551_v31 = vsel %vm228_vm3, %v3547_v53, %v10881_v22  ;;  %v3617_v9 = vmul.f32 0.2, %v3593_v49  ;;  %v3563_v16 = vsel %vm261_vm1, %v3559_v27, %v10882_v13  ;;  %v10883_v1 = vrot.slane %v9789_v33, 1 }
 0xa62   : > { %v3556_v15 = vmul.f32 %v3551_v31, %v8596_v44  ;;  %3638 = vrot.lane.b32.xlu0 %v3618_v17, %s8300_s29  ;;  %v3603_v10 = vadd.f32 %v3599_v14, %v3595_v2  ;;  %v3607_v63 = vmul.f32 0.1, %v3579_v35  ;;  %v3568_v5 = vmul.f32 %v3563_v16, %v8598_v46 }
 0xa63   : > { %v3574_v53 = vsel %vm294_vm2, %v10883_v1, %v3573_v25  ;;  %v3621_v56 = vadd.f32 %v3617_v9, %v3613_v26  ;;  %v3586_v27 = vsel %vm327_vm4, %v3584_v11, %v3585_v52  ;;  %v3615_v25 = vmul.f32 0.2, %v3591_v36  ;;  %v8141_v52 = vld [vmem:[%s10740_s8 + $0xe0] sm:$0xff]   ;;  %v8142_v36 = vld [vmem:[%s10740_s8 + $0xe8] sm:$0xff]  }
 0xa64   : > { %v3580_v55 = vmul.f32 %v3574_v53, %v8634_v23  ;;  %v3596_v29 = vmul.f32 -0.2, %v3556_v15  ;;  %v3611_v18 = vadd.f32 %v3607_v63, %v3603_v10  ;;  %v3592_v37 = vmul.f32 %v3586_v27, %v8714_v51  ;;  %7551 = vmatprep.subr.bf16.mxu0 %v8141_v52  ;;  %v6638_v1 = vld [vmem:[%s8979_s0 + $0x8] sm:$0x3] }
 0xa65   : > { %v3600_v0 = vmul.f32 -0.1, %v3568_v5  ;;  %3644 = vrot.lane.b32.xlu1 %v3621_v56, %s8300_s29  ;;  %v3625_v57 = vmul.f32 -0.5, %v3569_v21  ;;  %v3629_v22 = vmul.f32 0.5, %v3581_v8  ;;  %v3624_v26 = vmul.f32 -0.5, %v3568_v5  ;;  %7552 = vmatpush3.bf16.msra.mxu0 %v8141_v52  ;;  %v8143_v21 = vld [vmem:[%s8557_s2 + $0x348] sm:$0xff]  }
 0xa66   : > { %v3608_v35 = vmul.f32 0.1, %v3580_v55  ;;  %v3619_v49 = vadd.f32 %v3615_v25, %v3611_v18  ;;  %v3616_v17 = vmul.f32 0.2, %v3592_v37  ;;  %v3628_v2 = vmul.f32 0.5, %v3580_v55  ;;  %7553 = vmatprep.subr.bf16.mxu0 %v8142_v36 }
 0xa67   : > { %v3604_v14 = vadd.f32 %v3600_v0, %v3596_v29  ;;  %v3633_v24 = vadd.f32 %v3629_v22, %v3625_v57  ;;  %v3684_v63 = vrot.slane %v6638_v1, %v8736_v34  ;;  %v3692_v0 = vrot.slane %v6638_v1, %v8740_v62 }
 0xa68   : > { %v3632_v8 = vadd.f32 %v3628_v2, %v3624_v26 }
 0xa69   : > { %v3612_v31 = vadd.f32 %v3608_v35, %v3604_v14  ;;  %3640 = vrot.lane.b32.xlu1 %v3619_v49, %s8300_s29  ;;  %7554 = vmatpush3.bf16.msra.mxu0 %v8142_v36 }
 0xa6a   : > { %7559 = vmatprep.subr.bf16.mxu0 %v8143_v21 }
 0xa6b   : > { %v3620_v11 = vadd.f32 %v3616_v17, %v3612_v31 }
 0xa6d   : > { %3642 = vrot.lane.b32.xlu0 %v3620_v11, %s8300_s29  ;;  %3660 = vrot.lane.b32.xlu1 %v3633_v24, %s8299_s4 }
 0xa71   : > { %3658 = vrot.lane.b32.xlu0 %v3632_v8, %s8299_s4  ;;  %3806 = vrot.lane.b32.xlu1 %v8753_v54, %s8307_s3 }
 0xa75   : > { %3804 = vrot.lane.b32.xlu0 %v8750_v20, %s8307_s3  ;;  %3808 = vrot.lane.b32.xlu1 %v8767_v3, %s8307_s3 }
 0xa79   : > { %3810 = vrot.lane.b32.xlu0 %v8764_v59, %s8307_s3 }
 0xacf   : > { %v3655_v9 = vpop.permute.xlu0 %3654  ;;  %v3657_v15 = vpop.permute.xlu1 %3656 }
 0xad4   : > { %v3639_v13 = vpop.permute.xlu0 %3638 }
 0xad5   : > { %v3666_v16 = vsel %vm428_vm5, %v9794_v58, %v3639_v13 }
 0xad6   : > { %v3670_v53 = vsel %vm433_vm6, %v3666_v16, %v3655_v9 }
 0xad7   : > { %v3645_v10 = vpop.permute.xlu1 %3644  ;;  %v3674_v5 = vmax.f32 %v3670_v53, 0.0  ;;  %v8144_v53 = vld [vmem:[%s8557_s2 + $0x350] sm:$0xff]  }
 0xad8   : > { %v3669_v58 = vsel %vm428_vm5, %v9799_v7, %v3645_v10 }
 0xad9   : > { %v3685_v29 = vmul.f32 %v3684_v63, %v3674_v5 }
 0xadb   : > { %v3641_v55 = vpop.permute.xlu1 %3640  ;;  %v3693_v31 = vadd.f32 %v3692_v0, %v3685_v29 }
 0xadc   : > { %v3667_v56 = vsel %vm428_vm5, %v9804_v6, %v3641_v55 }
 0xadd   : > { %v3671_v27 = vsel %vm433_vm6, %v3667_v56, %v3657_v15  ;;  %v8145_v56 = vld [vmem:[%s8557_s2 + $0x358] sm:$0xff]  }
 0xade   : > { %v3675_v18 = vmax.f32 %v3671_v27, 0.0 }
 0xadf   : > { %v3643_v37 = vpop.permute.xlu0 %3642  ;;  %v3661_v25 = vpop.permute.xlu1 %3660 }
 0xae0   : > { %v3686_v14 = vmul.f32 %v3684_v63, %v3675_v18  ;;  %v3673_v35 = vsel %vm433_vm6, %v3669_v58, %v3661_v25  ;;  %v3668_v57 = vsel %vm428_vm5, %v9789_v33, %v3643_v37  ;;  %v8146_v37 = vld [vmem:[%s8557_s2 + $0x360] sm:$0xff]   ;;  %v8148_v25 = vld [vmem:[%s8557_s2 + $0x370] sm:$0xff]  }
 0xae1   : > { %v3677_v49 = vmax.f32 %v3673_v35, 0.0  ;;  %v8149_v35 = vld [vmem:[%s8557_s2 + $0x378] sm:$0x3f]  }
 0xae2   : > { %v3694_v6 = vadd.f32 %v3692_v0, %v3686_v14 }
 0xae3   : > { %v3659_v22 = vpop.permute.xlu0 %3658  ;;  %v3688_v17 = vmul.f32 %v3684_v63, %v3677_v49  ;;  %v3807_v11 = vpop.permute.xlu1 %3806 }
 0xae4   : > { %v3672_v52 = vsel %vm433_vm6, %v3668_v57, %v3659_v22  ;;  %v3710_v2 = vpack.c.bf16 %v3694_v6, %v3693_v31  ;;  %v9925_v7 = vsel %vm166_vm0, %v3694_v6, %v3807_v11  ;;  %v8151_v11 = vld [vmem:[%s8557_s2 + $0x388] sm:$0xff]  }
 0xae5   : > { %v3676_v26 = vmax.f32 %v3672_v52, 0.0  ;;  %v3696_v36 = vadd.f32 %v3692_v0, %v3688_v17  ;;  %v3868_v15 = vrot.slane %v9925_v7, 7  ;;  %v8150_v17 = vld [vmem:[%s8557_s2 + $0x380] sm:$0xff]  }
 0xae6   : > { %7555 = vmatprep.mubr.msk.bf16.mxu0 %vm166_vm0, %v3710_v2  ;;  %v8152_v2 = vld [vmem:[%s8557_s2 + $0x390] sm:$0xff]  }
 0xae7   : > { %v3687_v24 = vmul.f32 %v3684_v63, %v3676_v26  ;;  %v3805_v8 = vpop.permute.xlu0 %3804 }
 0xae8   : > { %v9929_v33 = vsel %vm166_vm0, %v3693_v31, %v3805_v8  ;;  %v3929_v31 = vsel %vm608_vm7, %v8149_v35, 0  ;;  %v8155_v8 = vld [vmem:[%s8557_s2 + $0x3a8] sm:$0xff]  }
 0xae9   : > { %v3695_v9 = vadd.f32 %v3692_v0, %v3687_v24  ;;  %v3867_v13 = vrot.slane %v9929_v33, 7  ;;  %v3809_v0 = vpop.permute.xlu1 %3808  ;;  %v3988_v26 = vpack.c.bf16 %v9925_v7, %v9929_v33  ;;  %v8154_v24 = vld [vmem:[%s8557_s2 + $0x3a0] sm:$0xff]  }
 0xaeb   : > { %v3711_v16 = vpack.c.bf16 %v3696_v36, %v3695_v9  ;;  %v3811_v1 = vpop.permute.xlu0 %3810  ;;  %v3873_v63 = vsel %vm261_vm1, %v3867_v13, %v3868_v15  ;;  %v9950_v58 = vsel %vm166_vm0, %v3695_v9, %v3809_v0  ;;  %v8162_v0 = vld [vmem:[%s8557_s2 + $0x3e0] sm:$0xff]  }
 0xaec   : > { %v9935_v10 = vsel %vm166_vm0, %v3696_v36, %v3811_v1  ;;  %v3876_v29 = vmul.f32 %v3873_v63, %v8592_v42  ;;  %v3869_v14 = vrot.slane %v9950_v58, 7  ;;  %v8153_v36 = vld [vmem:[%s8557_s2 + $0x398] sm:$0xff]   ;;  %v4095_v9 = vrot.slane %v9950_v58, 1 }
 0xaed   : > { %v3870_v5 = vrot.slane %v9935_v10, 7  ;;  %7556 = vmatmul.mubr.msk.bf16.vlgmr.msra.gmra.mrb[20].mxu0 %vm166_vm0, %v3711_v16  ;;  %v8156_v16 = vld [vmem:[%s8557_s2 + $0x3b0] sm:$0x3f]  }
 0xaee   : > { %7560 = vmatpush3.bf16.msra.mxu0 %v8143_v21  ;;  %v8147_v21 = vld [vmem:[%s8557_s2 + $0x368] sm:$0xff]   ;;  %v3872_v49 = vsel %vm261_vm1, %v3868_v15, %v3869_v14  ;;  %v4094_v15 = vrot.slane %v9925_v7, 1  ;;  %v4038_v63 = vsel %vm608_vm7, %v8156_v16, 0 }
 0xaef   : > { %v3874_v55 = vsel %vm261_vm1, %v3870_v5, %v3867_v13  ;;  %7561 = vmatprep.subr.bf16.mxu0 %v8144_v53  ;;  %v3871_v57 = vsel %vm261_vm1, %v3869_v14, %v3870_v5  ;;  %v3877_v22 = vmul.f32 %v3872_v49, %v8598_v46  ;;  %v4093_v13 = vrot.slane %v9929_v33, 1  ;;  %v8157_v5 = vld [vmem:[%s8557_s2 + $0x3b8] sm:$0xff]  }
 0xaf0   : > { %v3875_v27 = vmul.f32 %v3874_v55, %v8590_v41  ;;  %v3878_v6 = vmul.f32 %v3871_v57, %v8594_v43  ;;  %v4098_v1 = vsel %vm294_vm2, %v4094_v15, %v4095_v9  ;;  %v3989_v55 = vpack.c.bf16 %v9935_v10, %v9950_v58  ;;  %v8163_v58 = vld [vmem:[%s8557_s2 + $0x3e8] sm:$0x3f]  }
 0xaf1   : > { %v4102_v7 = vmul.f32 %v4098_v1, %v8608_v50  ;;  %v4155_v57 = vsel %vm608_vm7, %v8163_v58, 0 }
 0xaf2   : > { %7562 = vmatpush3.bf16.msra.mxu0 %v8144_v53  ;;  %v3879_v18 = vpack.c.bf16 %v3876_v29, %v3875_v27  ;;  %v3880_v52 = vpack.c.bf16 %v3878_v6, %v3877_v22  ;;  %v4099_v53 = vsel %vm294_vm2, %v4093_v13, %v4094_v15  ;;  %v8159_v29 = vld [vmem:[%s8557_s2 + $0x3c8] sm:$0xff]   ;;  %v8164_v22 = vld [vmem:[%s10740_s8 + $0xf0] sm:$0xff]  }
 0xaf3   : > { %7563 = vmatprep.subr.bf16.mxu0 %v8145_v56  ;;  %v4101_v33 = vmul.f32 %v4099_v53, %v8606_v48  ;;  %7613 = vmatprep.subr.bf16.mxu1 %v8164_v22 }
 0xaf4   : > { %7573 = vmatprep.mubr.msk.bf16.mxu0 %vm601_vm9, %v3879_v18  ;;  %v8160_v18 = vld [vmem:[%s8557_s2 + $0x3d0] sm:$0xff]   ;;  %7614 = vmatpush3.bf16.msra.mxu1 %v8164_v22 }
 0xaf5   : > { %v4105_v27 = vpack.c.bf16 %v4102_v7, %v4101_v33 }
 0xaf6   : > { %7564 = vmatpush3.bf16.msra.mxu0 %v8145_v56  ;;  %v8158_v56 = vld [vmem:[%s8557_s2 + $0x3c0] sm:$0xff]  }
 0xaf7   : > { %7565 = vmatprep.subr.bf16.mxu0 %v8146_v37 }
 0xafa   : > { %7566 = vmatpush3.bf16.msra.mxu0 %v8146_v37  ;;  %v8161_v37 = vld [vmem:[%s8557_s2 + $0x3d8] sm:$0xff]  }
 0xafb   : > { %7567 = vmatprep.subr.bf16.mxu0 %v8147_v21 }
 0xafe   : > { %7568 = vmatpush3.bf16.msra.mxu0 %v8147_v21  ;;  %v4096_v21 = vrot.slane %v9935_v10, 1 }
 0xaff   : > { %7569 = vmatprep.subr.bf16.mxu0 %v8148_v25 }
 0xb00   : > { %v4100_v14 = vsel %vm294_vm2, %v4096_v21, %v4093_v13 }
 0xb01   : > { %v4104_v49 = vmul.f32 %v4100_v14, %v8623_v61 }
 0xb02   : > { %7570 = vmatpush3.bf16.msra.mxu0 %v8148_v25  ;;  %v4097_v25 = vsel %vm294_vm2, %v4095_v9, %v4096_v21  ;;  %v8165_v9 = vld [vmem:[%s10740_s8 + $0xf8] sm:$0xff]  }
 0xb03   : > { %7868 = vmatprep.subr.msk.bf16.mxu0 %vm608_vm7, %v8149_v35  ;;  %v4103_v35 = vmul.f32 %v4097_v25, %v8634_v23  ;;  %7615 = vmatprep.subr.bf16.mxu1 %v8165_v9 }
 0xb04   : > { %7616 = vmatpush3.bf16.msra.mxu1 %v8165_v9 }
 0xb05   : > { %v4106_v10 = vpack.c.bf16 %v4104_v49, %v4103_v35 }
 0xb06   : > { %7572 = vmatpush3.bf16.msra.mxu0 %v3929_v31 }
 0xb07   : > { %7577 = vmatprep.subr.bf16.mxu0 %v8150_v17 }
 0xb09   : > { %7574 = vmatmul.mubr.msk.bf16.vlgmr.msra.gmra.mrb[24].mxu0 %vm601_vm9, %v3880_v52 }
 0xb0a   : > { %7578 = vmatpush3.bf16.msra.mxu0 %v8150_v17  ;;  %7591 = vmatprep.mubr.msk.bf16.mxu0 %vm601_vm9, %v3988_v26 }
 0xb0b   : > { %7579 = vmatprep.subr.bf16.mxu0 %v8151_v11 }
 0xb0e   : > { %7580 = vmatpush3.bf16.msra.mxu0 %v8151_v11 }
 0xb0f   : > { %7581 = vmatprep.subr.bf16.mxu0 %v8152_v2 }
 0xb12   : > { %7582 = vmatpush3.bf16.msra.mxu0 %v8152_v2  ;;  %v6712_v2 = vld [vmem:[%s8856_s1 + $0x5] ss:$0 sm:$0xff] }
 0xb13   : > { %7583 = vmatprep.subr.bf16.mxu0 %v8153_v36 }
 0xb16   : > { %7584 = vmatpush3.bf16.msra.mxu0 %v8153_v36 }
 0xb17   : > { %7585 = vmatprep.subr.bf16.mxu0 %v8154_v24 }
 0xb1a   : > { %7586 = vmatpush3.bf16.msra.mxu0 %v8154_v24 }
 0xb1b   : > { %7587 = vmatprep.subr.bf16.mxu0 %v8155_v8 }
 0xb1e   : > { %7588 = vmatpush3.bf16.msra.mxu0 %v8155_v8 }
 0xb1f   : > { %7869 = vmatprep.subr.msk.bf16.mxu0 %vm608_vm7, %v8156_v16 }
 0xb22   : > { %7590 = vmatpush3.bf16.msra.mxu0 %v4038_v63 }
 0xb23   : > { %7595 = vmatprep.subr.bf16.mxu0 %v8157_v5 }
 0xb25   : > { %7592 = vmatmul.mubr.msk.bf16.vlgmr.msra.gmra.mrb[24].mxu0 %vm601_vm9, %v3989_v55 }
 0xb26   : > { %7596 = vmatpush3.bf16.msra.mxu0 %v8157_v5  ;;  %7609 = vmatprep.mubr.msk.bf16.mxu0 %vm601_vm9, %v4105_v27 }
 0xb27   : > { %7597 = vmatprep.subr.bf16.mxu0 %v8158_v56 }
 0xb2a   : > { %7598 = vmatpush3.bf16.msra.mxu0 %v8158_v56 }
 0xb2b   : > { %7599 = vmatprep.subr.bf16.mxu0 %v8159_v29 }
 0xb2e   : > { %7600 = vmatpush3.bf16.msra.mxu0 %v8159_v29 }
 0xb2f   : > { %7601 = vmatprep.subr.bf16.mxu0 %v8160_v18 }
 0xb32   : > { %7602 = vmatpush3.bf16.msra.mxu0 %v8160_v18 }
 0xb33   : > { %7603 = vmatprep.subr.bf16.mxu0 %v8161_v37 }
 0xb36   : > { %7604 = vmatpush3.bf16.msra.mxu0 %v8161_v37 }
 0xb37   : > { %7605 = vmatprep.subr.bf16.mxu0 %v8162_v0 }
 0xb3a   : > { %7606 = vmatpush3.bf16.msra.mxu0 %v8162_v0 }
 0xb3b   : > { %7870 = vmatprep.subr.msk.bf16.mxu0 %vm608_vm7, %v8163_v58 }
 0xb3e   : > { %7608 = vmatpush3.bf16.msra.mxu0 %v4155_v57 }
 0xb41   : > { %7610 = vmatmul.mubr.msk.bf16.vlgmr.msra.gmra.mrb[24].mxu0 %vm601_vm9, %v4106_v10 }
 0xbc0   : > { %v10009_v6 = vpop.f32.mrb[20].mxu0 }
 0xbc1   : > { %10884 = vst [vmem:[#allocation40_spill] sm:$0xff] %v10009_v6  ;;  %v10011_v31 = vpop.f32.mrb[21].mxu0 }
 0xbc2   : > { %10885 = vst [vmem:[#allocation41_spill] sm:$0xff] %v10011_v31  ;;  %v10013_v17 = vpop.f32.mrb[22].mxu0 }
 0xbc3   : > { %10886 = vst [vmem:[#allocation42_spill] sm:$0xff] %v10013_v17  ;;  %v10017_v11 = vpop.f32.mrb[23].mxu0 }
 0xbc4   : > { %10887 = vst [vmem:[#allocation43_spill] sm:$0xff] %v10017_v11 }
 0xc14   : > { %v7611_v36 = vpop.f32.mrb[24].mxu0 }
 0xc15   : > { %v10022_v24 = vadd.f32 %v7611_v36, %v6712_v2  ;;  %v4191_v8 = vpop.f32.mrb[25].mxu0 }
 0xc16   : > { %v10027_v15 = vadd.f32 %v6712_v2, %v4191_v8  ;;  %v7612_v13 = vpop.f32.mrb[26].mxu0 }
 0xc17   : > { %v10785_v16 = vrot.slane %v10022_v24, 6  ;;  %v10783_v1 = vrot.slane %v10022_v24, 7  ;;  %v10784_v53 = vrot.slane %v10022_v24, 1  ;;  %v10032_v63 = vadd.f32 %v7612_v13, %v6712_v2  ;;  %v4194_v5 = vpop.f32.mrb[27].mxu0 }
 0xc18   : > { %v4210_v7 = vrot.slane %v10027_v15, 6  ;;  %v4222_v33 = vrot.slane %v10027_v15, 7  ;;  %v4234_v55 = vrot.slane %v10027_v15, 1  ;;  %v10037_v56 = vadd.f32 %v6712_v2, %v4194_v5 }
 0xc19   : > { %v4213_v27 = vrot.slane %v10032_v63, 6  ;;  %v4225_v29 = vrot.slane %v10032_v63, 7  ;;  %v4237_v18 = vrot.slane %v10032_v63, 1  ;;  %v4246_v37 = vrot.slane %v10027_v15, 2 }
 0xc1a   : > { %v4211_v0 = vrot.slane %v10037_v56, 6  ;;  %v4223_v21 = vrot.slane %v10037_v56, 7  ;;  %v4235_v58 = vrot.slane %v10037_v56, 1  ;;  %v4247_v25 = vrot.slane %v10037_v56, 2 }
 0xc1b   : > { %v4229_v14 = vsel %vm261_vm1, %v4225_v29, %v4222_v33  ;;  %v4217_v35 = vsel %vm228_vm3, %v4213_v27, %v4210_v7  ;;  %v4214_v49 = vsel %vm228_vm3, %v10785_v16, %v4213_v27  ;;  %v4226_v57 = vsel %vm261_vm1, %v10783_v1, %v4225_v29 }
 0xc1c   : > { %v4230_v10 = vmul.f32 %v4229_v14, %v8590_v41  ;;  %v4240_v22 = vsel %vm294_vm2, %v4234_v55, %v4235_v58  ;;  %v4228_v2 = vsel %vm261_vm1, %v4222_v33, %v4223_v21  ;;  %v4239_v36 = vsel %vm294_vm2, %v4235_v58, %v10784_v53 }
 0xc1d   : > { %v4242_v8 = vmul.f32 %v4240_v22, %v8606_v48  ;;  %v4231_v9 = vmul.f32 %v4228_v2, %v8592_v42  ;;  %v4243_v13 = vmul.f32 %v4239_v36, %v8608_v50  ;;  %v4218_v5 = vmul.f32 %v4217_v35, %v8584_v38  ;;  %v8166_v22 = vld [vmem:[%s10740_s8 + $0x100] sm:$0xff]  }
 0xc1e   : > { %v4286_v27 = vmul.f32 -0.5, %v4230_v10  ;;  %v4252_v29 = vsel %vm327_vm4, %v4246_v37, %v4247_v25  ;;  %v4262_v14 = vmul.f32 -0.1, %v4230_v10  ;;  %v4221_v33 = vmul.f32 %v4214_v49, %v8586_v39  ;;  %7617 = vmatprep.subr.bf16.mxu1 %v8166_v22 }
 0xc1f   : > { %v4290_v26 = vmul.f32 0.5, %v4242_v8  ;;  %v4287_v52 = vmul.f32 -0.5, %v4231_v9  ;;  %v4291_v1 = vmul.f32 0.5, %v4243_v13  ;;  %v4254_v58 = vmul.f32 %v4252_v29, %v8662_v19  ;;  %7618 = vmatpush3.bf16.msra.mxu1 %v8166_v22 }
 0xc20   : > { %v4258_v2 = vmul.f32 -0.2, %v4218_v5  ;;  %v4270_v36 = vmul.f32 0.1, %v4242_v8  ;;  %v4233_v35 = vmul.f32 %v4226_v57, %v8594_v43  ;;  %v4241_v10 = vsel %vm294_vm2, %v4237_v18, %v4234_v55 }
 0xc21   : > { %v4294_v53 = vadd.f32 %v4290_v26, %v4286_v27  ;;  %v4295_v49 = vadd.f32 %v4291_v1, %v4287_v52  ;;  %v4278_v16 = vmul.f32 0.2, %v4254_v58  ;;  %v4245_v31 = vmul.f32 %v4241_v10, %v8623_v61 }
 0xc22   : > { %v4266_v29 = vadd.f32 %v4262_v14, %v4258_v2  ;;  %v4249_v11 = vrot.slane %v10032_v63, 2  ;;  %v4261_v6 = vmul.f32 -0.2, %v4221_v33  ;;  %v4265_v17 = vmul.f32 -0.1, %v4233_v35 }
 0xc23   : > { %4318 = vrot.lane.b32.xlu0 %v4294_v53, %s8299_s4  ;;  %4320 = vrot.lane.b32.xlu1 %v4295_v49, %s8299_s4  ;;  %v4273_v57 = vmul.f32 0.1, %v4245_v31  ;;  %v4216_v55 = vsel %vm228_vm3, %v4210_v7, %v4211_v0  ;;  %v4248_v52 = vrot.slane %v10022_v24, 2  ;;  %v4263_v26 = vmul.f32 -0.1, %v4231_v9 }
 0xc24   : > { %v4274_v1 = vadd.f32 %v4270_v36, %v4266_v29  ;;  %v4253_v8 = vsel %vm327_vm4, %v4249_v11, %v4246_v37  ;;  %v4269_v5 = vadd.f32 %v4265_v17, %v4261_v6  ;;  %v4219_v27 = vmul.f32 %v4216_v55, %v8588_v40  ;;  %v8167_v6 = vld [vmem:[%s10740_s8 + $0x108] sm:$0xff]  }
 0xc25   : > { %v4257_v14 = vmul.f32 %v4253_v8, %v8699_v32  ;;  %v4251_v53 = vsel %vm327_vm4, %v4247_v25, %v4248_v52  ;;  %v10888_v33 = vrot.slane %v10022_v24, 6  ;;  %v10889_v36 = vrot.slane %v10022_v24, 7  ;;  %7619 = vmatprep.subr.bf16.mxu1 %v8167_v6 }
 0xc26   : > { %v4282_v58 = vadd.f32 %v4278_v16, %v4274_v1  ;;  %v4277_v22 = vadd.f32 %v4273_v57, %v4269_v5  ;;  %v4255_v9 = vmul.f32 %v4251_v53, %v8669_v45  ;;  %v4259_v2 = vmul.f32 -0.2, %v4219_v27  ;;  %7620 = vmatpush3.bf16.msra.mxu1 %v8167_v6 }
 0xc27   : > { %v4215_v7 = vsel %vm228_vm3, %v4211_v0, %v10888_v33  ;;  %v4281_v17 = vmul.f32 0.2, %v4257_v14  ;;  %v4227_v25 = vsel %vm261_vm1, %v4223_v21, %v10889_v36  ;;  %v10890_v16 = vrot.slane %v10022_v24, 1 }
 0xc28   : > { %v4220_v37 = vmul.f32 %v4215_v7, %v8596_v44  ;;  %4302 = vrot.lane.b32.xlu0 %v4282_v58, %s8300_s29  ;;  %v4267_v10 = vadd.f32 %v4263_v26, %v4259_v2  ;;  %v4271_v49 = vmul.f32 0.1, %v4243_v13  ;;  %v4232_v29 = vmul.f32 %v4227_v25, %v8598_v46 }
 0xc29   : > { %v4238_v0 = vsel %vm294_vm2, %v10890_v16, %v4237_v18  ;;  %v4285_v55 = vadd.f32 %v4281_v17, %v4277_v22  ;;  %v4250_v21 = vsel %vm327_vm4, %v4248_v52, %v4249_v11  ;;  %v4279_v18 = vmul.f32 0.2, %v4255_v9  ;;  %v8168_v11 = vld [vmem:[%s10740_s8 + $0x110] sm:$0xff]   ;;  %v8169_v9 = vld [vmem:[%s10740_s8 + $0x118] sm:$0xff]   ;;  %v6732_v16 = vld [vmem:[%s8979_s0 + $0xa] sm:$0x3] }
 0xc2a   : > { %v4244_v57 = vmul.f32 %v4238_v0, %v8634_v23  ;;  %v4260_v1 = vmul.f32 -0.2, %v4220_v37  ;;  %v4275_v8 = vadd.f32 %v4271_v49, %v4267_v10  ;;  %v4256_v5 = vmul.f32 %v4250_v21, %v8714_v51  ;;  %7621 = vmatprep.subr.bf16.mxu1 %v8168_v11 }
 0xc2b   : > { %v4264_v27 = vmul.f32 -0.1, %v4232_v29  ;;  %4308 = vrot.lane.b32.xlu1 %v4285_v55, %s8300_s29  ;;  %v4289_v53 = vmul.f32 -0.5, %v4233_v35  ;;  %v4293_v33 = vmul.f32 0.5, %v4245_v31  ;;  %v4288_v22 = vmul.f32 -0.5, %v4232_v29  ;;  %7622 = vmatpush3.bf16.msra.mxu1 %v8168_v11  ;;  %v8170_v35 = vld [vmem:[%s8557_s2 + $0x3f0] sm:$0xff]  }
 0xc2c   : > { %v4272_v13 = vmul.f32 0.1, %v4244_v57  ;;  %v4283_v14 = vadd.f32 %v4279_v18, %v4275_v8  ;;  %v4280_v58 = vmul.f32 0.2, %v4256_v5  ;;  %v4292_v2 = vmul.f32 0.5, %v4244_v57  ;;  %7623 = vmatprep.subr.bf16.mxu1 %v8169_v9 }
 0xc2d   : > { %v4268_v26 = vadd.f32 %v4264_v27, %v4260_v1  ;;  %v4297_v6 = vadd.f32 %v4293_v33, %v4289_v53  ;;  %v4348_v49 = vrot.slane %v6732_v16, %v8736_v34  ;;  %v4356_v27 = vrot.slane %v6732_v16, %v8740_v62 }
 0xc2e   : > { %v4296_v31 = vadd.f32 %v4292_v2, %v4288_v22 }
 0xc2f   : > { %v4276_v7 = vadd.f32 %v4272_v13, %v4268_v26  ;;  %4304 = vrot.lane.b32.xlu1 %v4283_v14, %s8300_s29  ;;  %7624 = vmatpush3.bf16.msra.mxu1 %v8169_v9 }
 0xc30   : > { %7629 = vmatprep.subr.bf16.mxu1 %v8170_v35 }
 0xc31   : > { %v4284_v52 = vadd.f32 %v4280_v58, %v4276_v7 }
 0xc33   : > { %4306 = vrot.lane.b32.xlu0 %v4284_v52, %s8300_s29  ;;  %4324 = vrot.lane.b32.xlu1 %v4297_v6, %s8299_s4 }
 0xc37   : > { %4322 = vrot.lane.b32.xlu0 %v4296_v31, %s8299_s4  ;;  %4470 = vrot.lane.b32.xlu1 %v8753_v54, %s8308_s22 }
 0xc3b   : > { %4468 = vrot.lane.b32.xlu0 %v8750_v20, %s8308_s22  ;;  %4472 = vrot.lane.b32.xlu1 %v8767_v3, %s8308_s22 }
 0xc3f   : > { %4474 = vrot.lane.b32.xlu0 %v8764_v59, %s8308_s22 }
 0xc95   : > { %v4319_v17 = vpop.permute.xlu0 %4318  ;;  %v4321_v37 = vpop.permute.xlu1 %4320 }
 0xc9a   : > { %v4303_v36 = vpop.permute.xlu0 %4302 }
 0xc9b   : > { %v4330_v25 = vsel %vm428_vm5, %v10027_v15, %v4303_v36 }
 0xc9c   : > { %v4334_v0 = vsel %vm433_vm6, %v4330_v25, %v4319_v17 }
 0xc9d   : > { %v4309_v10 = vpop.permute.xlu1 %4308  ;;  %v4338_v29 = vmax.f32 %v4334_v0, 0.0  ;;  %v8171_v0 = vld [vmem:[%s8557_s2 + $0x3f8] sm:$0xff]  }
 0xc9e   : > { %v4333_v15 = vsel %vm428_vm5, %v10032_v63, %v4309_v10 }
 0xc9f   : > { %v4349_v1 = vmul.f32 %v4348_v49, %v4338_v29 }
 0xca1   : > { %v4305_v57 = vpop.permute.xlu1 %4304  ;;  %v4357_v7 = vadd.f32 %v4356_v27, %v4349_v1 }
 0xca2   : > { %v4331_v55 = vsel %vm428_vm5, %v10037_v56, %v4305_v57 }
 0xca3   : > { %v4335_v21 = vsel %vm433_vm6, %v4331_v55, %v4321_v37  ;;  %v8172_v55 = vld [vmem:[%s8557_s2 + $0x400] sm:$0xff]  }
 0xca4   : > { %v4339_v8 = vmax.f32 %v4335_v21, 0.0 }
 0xca5   : > { %v4307_v5 = vpop.permute.xlu0 %4306  ;;  %v4325_v18 = vpop.permute.xlu1 %4324 }
 0xca6   : > { %v4350_v26 = vmul.f32 %v4348_v49, %v4339_v8  ;;  %v4337_v13 = vsel %vm433_vm6, %v4333_v15, %v4325_v18  ;;  %v4332_v53 = vsel %vm428_vm5, %v10022_v24, %v4307_v5  ;;  %v8173_v5 = vld [vmem:[%s8557_s2 + $0x408] sm:$0xff]   ;;  %v8175_v18 = vld [vmem:[%s8557_s2 + $0x418] sm:$0xff]  }
 0xca7   : > { %v4341_v14 = vmax.f32 %v4337_v13, 0.0  ;;  %v8176_v13 = vld [vmem:[%s8557_s2 + $0x420] sm:$0x3f]  }
 0xca8   : > { %v4358_v56 = vadd.f32 %v4356_v27, %v4350_v26 }
 0xca9   : > { %v4323_v33 = vpop.permute.xlu0 %4322  ;;  %v4352_v58 = vmul.f32 %v4348_v49, %v4341_v14  ;;  %v4471_v52 = vpop.permute.xlu1 %4470 }
 0xcaa   : > { %v4336_v11 = vsel %vm433_vm6, %v4332_v53, %v4323_v33  ;;  %v4374_v2 = vpack.c.bf16 %v4358_v56, %v4357_v7  ;;  %v10158_v63 = vsel %vm166_vm0, %v4358_v56, %v4471_v52  ;;  %v8178_v52 = vld [vmem:[%s8557_s2 + $0x430] sm:$0xff]  }
 0xcab   : > { %v4340_v22 = vmax.f32 %v4336_v11, 0.0  ;;  %v4360_v9 = vadd.f32 %v4356_v27, %v4352_v58  ;;  %v4532_v37 = vrot.slane %v10158_v63, 7  ;;  %v8177_v58 = vld [vmem:[%s8557_s2 + $0x428] sm:$0xff]  }
 0xcac   : > { %7625 = vmatprep.mubr.msk.bf16.mxu1 %vm166_vm0, %v4374_v2  ;;  %v8179_v2 = vld [vmem:[%s8557_s2 + $0x438] sm:$0xff]  }
 0xcad   : > { %v4351_v6 = vmul.f32 %v4348_v49, %v4340_v22  ;;  %v4469_v31 = vpop.permute.xlu0 %4468 }
 0xcae   : > { %v10162_v24 = vsel %vm166_vm0, %v4357_v7, %v4469_v31  ;;  %v4593_v7 = vsel %vm608_vm7, %v8176_v13, 0  ;;  %v8182_v31 = vld [vmem:[%s8557_s2 + $0x450] sm:$0xff]  }
 0xcaf   : > { %v4359_v17 = vadd.f32 %v4356_v27, %v4351_v6  ;;  %v4531_v36 = vrot.slane %v10162_v24, 7  ;;  %v4473_v27 = vpop.permute.xlu1 %4472  ;;  %v4652_v22 = vpack.c.bf16 %v10158_v63, %v10162_v24  ;;  %v8181_v6 = vld [vmem:[%s8557_s2 + $0x448] sm:$0xff]  }
 0xcb1   : > { %v4375_v25 = vpack.c.bf16 %v4360_v9, %v4359_v17  ;;  %v4475_v16 = vpop.permute.xlu0 %4474  ;;  %v4537_v49 = vsel %vm261_vm1, %v4531_v36, %v4532_v37  ;;  %v10183_v15 = vsel %vm166_vm0, %v4359_v17, %v4473_v27  ;;  %v8189_v27 = vld [vmem:[%s8557_s2 + $0x488] sm:$0xff]  }
 0xcb2   : > { %v10168_v10 = vsel %vm166_vm0, %v4360_v9, %v4475_v16  ;;  %v4540_v1 = vmul.f32 %v4537_v49, %v8592_v42  ;;  %v4533_v26 = vrot.slane %v10183_v15, 7  ;;  %v8180_v9 = vld [vmem:[%s8557_s2 + $0x440] sm:$0xff]   ;;  %v4759_v17 = vrot.slane %v10183_v15, 1 }
 0xcb3   : > { %v4534_v29 = vrot.slane %v10168_v10, 7  ;;  %7626 = vmatmul.mubr.msk.bf16.vlgmr.msra.gmra.mrb[20].mxu1 %vm166_vm0, %v4375_v25  ;;  %v8183_v25 = vld [vmem:[%s8557_s2 + $0x458] sm:$0x3f]  }
 0xcb4   : > { %7630 = vmatpush3.bf16.msra.mxu1 %v8170_v35  ;;  %v8174_v35 = vld [vmem:[%s8557_s2 + $0x410] sm:$0xff]   ;;  %v4536_v14 = vsel %vm261_vm1, %v4532_v37, %v4533_v26  ;;  %v4758_v37 = vrot.slane %v10158_v63, 1  ;;  %v4702_v49 = vsel %vm608_vm7, %v8183_v25, 0 }
 0xcb5   : > { %v4538_v57 = vsel %vm261_vm1, %v4534_v29, %v4531_v36  ;;  %7631 = vmatprep.subr.bf16.mxu1 %v8171_v0  ;;  %v4535_v53 = vsel %vm261_vm1, %v4533_v26, %v4534_v29  ;;  %v4541_v33 = vmul.f32 %v4536_v14, %v8598_v46  ;;  %v4757_v36 = vrot.slane %v10162_v24, 1  ;;  %v8184_v29 = vld [vmem:[%s8557_s2 + $0x460] sm:$0xff]  }
 0xcb6   : > { %v4539_v21 = vmul.f32 %v4538_v57, %v8590_v41  ;;  %v4542_v56 = vmul.f32 %v4535_v53, %v8594_v43  ;;  %v4762_v16 = vsel %vm294_vm2, %v4758_v37, %v4759_v17  ;;  %v4653_v57 = vpack.c.bf16 %v10168_v10, %v10183_v15  ;;  %v8190_v15 = vld [vmem:[%s8557_s2 + $0x490] sm:$0x3f]  }
 0xcb7   : > { %v4766_v63 = vmul.f32 %v4762_v16, %v8608_v50  ;;  %v4819_v53 = vsel %vm608_vm7, %v8190_v15, 0 }
 0xcb8   : > { %7632 = vmatpush3.bf16.msra.mxu1 %v8171_v0  ;;  %v4543_v8 = vpack.c.bf16 %v4540_v1, %v4539_v21  ;;  %v4544_v11 = vpack.c.bf16 %v4542_v56, %v4541_v33  ;;  %v4763_v0 = vsel %vm294_vm2, %v4757_v36, %v4758_v37  ;;  %v8186_v1 = vld [vmem:[%s8557_s2 + $0x470] sm:$0xff]  }
 0xcb9   : > { %7633 = vmatprep.subr.bf16.mxu1 %v8172_v55  ;;  %v4765_v24 = vmul.f32 %v4763_v0, %v8606_v48 }
 0xcba   : > { %7643 = vmatprep.mubr.msk.bf16.mxu1 %vm601_vm9, %v4543_v8  ;;  %v8187_v8 = vld [vmem:[%s8557_s2 + $0x478] sm:$0xff]  }
 0xcbb   : > { %v4769_v21 = vpack.c.bf16 %v4766_v63, %v4765_v24 }
 0xcbc   : > { %7634 = vmatpush3.bf16.msra.mxu1 %v8172_v55  ;;  %v8185_v55 = vld [vmem:[%s8557_s2 + $0x468] sm:$0xff]  }
 0xcbd   : > { %7635 = vmatprep.subr.bf16.mxu1 %v8173_v5 }
 0xcc0   : > { %7636 = vmatpush3.bf16.msra.mxu1 %v8173_v5  ;;  %v8188_v5 = vld [vmem:[%s8557_s2 + $0x480] sm:$0xff]   ;;  %s5561_s2 = scalar_lea.vmem %s10745_s13, %s8296_s25 }
 0xcc1   : > { %7637 = vmatprep.subr.bf16.mxu1 %v8174_v35 }
 0xcc4   : > { %7638 = vmatpush3.bf16.msra.mxu1 %v8174_v35  ;;  %v4760_v35 = vrot.slane %v10168_v10, 1 }
 0xcc5   : > { %7639 = vmatprep.subr.bf16.mxu1 %v8175_v18 }
 0xcc6   : > { %v4764_v26 = vsel %vm294_vm2, %v4760_v35, %v4757_v36 }
 0xcc7   : > { %v4768_v14 = vmul.f32 %v4764_v26, %v8623_v61 }
 0xcc8   : > { %7640 = vmatpush3.bf16.msra.mxu1 %v8175_v18  ;;  %v4761_v18 = vsel %vm294_vm2, %v4759_v17, %v4760_v35 }
 0xcc9   : > { %7871 = vmatprep.subr.msk.bf16.mxu1 %vm608_vm7, %v8176_v13  ;;  %v4767_v13 = vmul.f32 %v4761_v18, %v8634_v23 }
 0xccb   : > { %v4770_v10 = vpack.c.bf16 %v4768_v14, %v4767_v13 }
 0xccc   : > { %7642 = vmatpush3.bf16.msra.mxu1 %v4593_v7 }
 0xccd   : > { %7647 = vmatprep.subr.bf16.mxu1 %v8177_v58 }
 0xccf   : > { %7644 = vmatmul.mubr.msk.bf16.vlgmr.msra.gmra.mrb[24].mxu1 %vm601_vm9, %v4544_v11 }
 0xcd0   : > { %7648 = vmatpush3.bf16.msra.mxu1 %v8177_v58  ;;  %7661 = vmatprep.mubr.msk.bf16.mxu1 %vm601_vm9, %v4652_v22  ;;  %v8191_v22 = vld [vmem:[%s10740_s8 + $0x120] sm:$0xff]  }
 0xcd1   : > { %7649 = vmatprep.subr.bf16.mxu1 %v8178_v52  ;;  %7683 = vmatprep.subr.bf16.mxu0 %v8191_v22 }
 0xcd2   : > { %7684 = vmatpush3.bf16.msra.mxu0 %v8191_v22 }
 0xcd4   : > { %7650 = vmatpush3.bf16.msra.mxu1 %v8178_v52 }
 0xcd5   : > { %7651 = vmatprep.subr.bf16.mxu1 %v8179_v2 }
 0xcd8   : > { %7652 = vmatpush3.bf16.msra.mxu1 %v8179_v2  ;;  %v6806_v2 = vld [vmem:[%s8856_s1 + $0x6] ss:$0 sm:$0xff]  ;;  %s5277_s1 = scalar_lea.vmem %s10742_s10, %s8296_s25 }
 0xcd9   : > { %7653 = vmatprep.subr.bf16.mxu1 %v8180_v9 }
 0xcdc   : > { %7654 = vmatpush3.bf16.msra.mxu1 %v8180_v9 }
 0xcdd   : > { %7655 = vmatprep.subr.bf16.mxu1 %v8181_v6 }
 0xce0   : > { %7656 = vmatpush3.bf16.msra.mxu1 %v8181_v6 }
 0xce1   : > { %7657 = vmatprep.subr.bf16.mxu1 %v8182_v31 }
 0xce4   : > { %7658 = vmatpush3.bf16.msra.mxu1 %v8182_v31 }
 0xce5   : > { %7872 = vmatprep.subr.msk.bf16.mxu1 %vm608_vm7, %v8183_v25  ;;  %v8192_v25 = vld [vmem:[%s10740_s8 + $0x128] sm:$0xff]  }
 0xce6   : > { %7685 = vmatprep.subr.bf16.mxu0 %v8192_v25 }
 0xce7   : > { %7686 = vmatpush3.bf16.msra.mxu0 %v8192_v25 }
 0xce8   : > { %7660 = vmatpush3.bf16.msra.mxu1 %v4702_v49 }
 0xce9   : > { %7665 = vmatprep.subr.bf16.mxu1 %v8184_v29 }
 0xceb   : > { %7662 = vmatmul.mubr.msk.bf16.vlgmr.msra.gmra.mrb[24].mxu1 %vm601_vm9, %v4653_v57 }
 0xcec   : > { %7666 = vmatpush3.bf16.msra.mxu1 %v8184_v29  ;;  %7679 = vmatprep.mubr.msk.bf16.mxu1 %vm601_vm9, %v4769_v21 }
 0xced   : > { %7667 = vmatprep.subr.bf16.mxu1 %v8185_v55 }
 0xcf0   : > { %7668 = vmatpush3.bf16.msra.mxu1 %v8185_v55 }
 0xcf1   : > { %7669 = vmatprep.subr.bf16.mxu1 %v8186_v1 }
 0xcf4   : > { %7670 = vmatpush3.bf16.msra.mxu1 %v8186_v1 }
 0xcf5   : > { %7671 = vmatprep.subr.bf16.mxu1 %v8187_v8 }
 0xcf8   : > { %7672 = vmatpush3.bf16.msra.mxu1 %v8187_v8 }
 0xcf9   : > { %7673 = vmatprep.subr.bf16.mxu1 %v8188_v5 }
 0xcfc   : > { %7674 = vmatpush3.bf16.msra.mxu1 %v8188_v5 }
 0xcfd   : > { %7675 = vmatprep.subr.bf16.mxu1 %v8189_v27 }
 0xd00   : > { %7676 = vmatpush3.bf16.msra.mxu1 %v8189_v27 }
 0xd01   : > { %7873 = vmatprep.subr.msk.bf16.mxu1 %vm608_vm7, %v8190_v15 }
 0xd04   : > { %7678 = vmatpush3.bf16.msra.mxu1 %v4819_v53 }
 0xd07   : > { %7680 = vmatmul.mubr.msk.bf16.vlgmr.msra.gmra.mrb[24].mxu1 %vm601_vm9, %v4770_v10 }
 0xd86   : > { %v10239_v33 = vpop.f32.mrb[20].mxu1 }
 0xd87   : > { %v10241_v56 = vpop.f32.mrb[21].mxu1 }
 0xd88   : > { %v10243_v7 = vpop.f32.mrb[22].mxu1 }
 0xd89   : > { %v10247_v11 = vpop.f32.mrb[23].mxu1 }
 0xdda   : > { %v7681_v9 = vpop.f32.mrb[24].mxu1 }
 0xddb   : > { %v10255_v6 = vadd.f32 %v7681_v9, %v6806_v2  ;;  %v4855_v31 = vpop.f32.mrb[25].mxu1 }
 0xddc   : > { %v10257_v17 = vadd.f32 %v6806_v2, %v4855_v31  ;;  %v7682_v37 = vpop.f32.mrb[26].mxu1 }
 0xddd   : > { %v4858_v36 = vpop.f32.mrb[27].mxu1  ;;  %v10793_v16 = vrot.slane %v10255_v6, 6  ;;  %v10265_v29 = vadd.f32 %v7682_v37, %v6806_v2  ;;  %v10792_v24 = vrot.slane %v10255_v6, 7  ;;  %v10794_v57 = vrot.slane %v10255_v6, 1 }
 0xdde   : > { %v4874_v0 = vrot.slane %v10257_v17, 6  ;;  %v4886_v49 = vrot.slane %v10257_v17, 7  ;;  %v10267_v63 = vadd.f32 %v6806_v2, %v4858_v36  ;;  %v4898_v55 = vrot.slane %v10257_v17, 1 }
 0xddf   : > { %v4910_v21 = vrot.slane %v10257_v17, 2  ;;  %v4877_v1 = vrot.slane %v10265_v29, 6  ;;  %v4889_v8 = vrot.slane %v10265_v29, 7  ;;  %v4901_v5 = vrot.slane %v10265_v29, 1 }
 0xde0   : > { %v4913_v27 = vrot.slane %v10265_v29, 2  ;;  %v4875_v35 = vrot.slane %v10267_v63, 6  ;;  %v4887_v15 = vrot.slane %v10267_v63, 7  ;;  %v4899_v18 = vrot.slane %v10267_v63, 1 }
 0xde1   : > { %v4911_v26 = vrot.slane %v10267_v63, 2  ;;  %v4893_v13 = vsel %vm261_vm1, %v4889_v8, %v4886_v49  ;;  %v4881_v14 = vsel %vm228_vm3, %v4877_v1, %v4874_v0  ;;  %v4878_v53 = vsel %vm228_vm3, %v10793_v16, %v4877_v1 }
 0xde2   : > { %v4890_v10 = vsel %vm261_vm1, %v10792_v24, %v4889_v8  ;;  %v4894_v22 = vmul.f32 %v4893_v13, %v8590_v41  ;;  %v4904_v2 = vsel %vm294_vm2, %v4898_v55, %v4899_v18  ;;  %v4892_v9 = vsel %vm261_vm1, %v4886_v49, %v4887_v15 }
 0xde3   : > { %v4903_v31 = vsel %vm294_vm2, %v4899_v18, %v10794_v57  ;;  %v4906_v37 = vmul.f32 %v4904_v2, %v8606_v48  ;;  %v4895_v36 = vmul.f32 %v4892_v9, %v8592_v42  ;;  %v4882_v1 = vmul.f32 %v4881_v14, %v8584_v38 }
 0xde4   : > { %v4907_v25 = vmul.f32 %v4903_v31, %v8608_v50  ;;  %v4950_v8 = vmul.f32 -0.5, %v4894_v22  ;;  %v4916_v13 = vsel %vm327_vm4, %v4910_v21, %v4911_v26  ;;  %v4926_v52 = vmul.f32 -0.1, %v4894_v22 }
 0xde5   : > { %v4885_v49 = vmul.f32 %v4878_v53, %v8586_v39  ;;  %v4954_v58 = vmul.f32 0.5, %v4906_v37  ;;  %v4951_v24 = vmul.f32 -0.5, %v4895_v36  ;;  %v4918_v18 = vmul.f32 %v4916_v13, %v8662_v19  ;;  %v8193_v53 = vld [vmem:[%s10740_s8 + $0x130] sm:$0xff]  }
 0xde6   : > { %v4955_v16 = vmul.f32 0.5, %v4907_v25  ;;  %v4922_v57 = vmul.f32 -0.2, %v4882_v1  ;;  %v4934_v2 = vmul.f32 0.1, %v4906_v37  ;;  %v4897_v9 = vmul.f32 %v4890_v10, %v8594_v43  ;;  %7687 = vmatprep.subr.bf16.mxu0 %v8193_v53 }
 0xde7   : > { %v4905_v31 = vsel %vm294_vm2, %v4901_v5, %v4898_v55  ;;  %v4912_v14 = vrot.slane %v10255_v6, 2  ;;  %v4958_v38 = vadd.f32 %v4954_v58, %v4950_v8  ;;  %v4917_v1 = vsel %vm327_vm4, %v4913_v27, %v4910_v21  ;;  %7688 = vmatpush3.bf16.msra.mxu0 %v8193_v53  ;;  %v8194_v53 = vld [vmem:[%s10740_s8 + $0x138] sm:$0xff]  }
 0xde8   : > { %v4959_v50 = vadd.f32 %v4955_v16, %v4951_v24  ;;  %v4909_v22 = vmul.f32 %v4905_v31, %v8623_v61  ;;  %v4930_v39 = vadd.f32 %v4926_v52, %v4922_v57  ;;  %v4925_v37 = vmul.f32 -0.2, %v4885_v49  ;;  %7689 = vmatprep.subr.bf16.mxu0 %v8194_v53 }
 0xde9   : > { %v4929_v13 = vmul.f32 -0.1, %v4897_v9  ;;  %4982 = vrot.lane.b32.xlu0 %v4958_v38, %s8299_s4  ;;  %v4942_v55 = vmul.f32 0.2, %v4918_v18  ;;  %v4921_v58 = vmul.f32 %v4917_v1, %v8699_v32  ;;  %v4880_v16 = vsel %vm228_vm3, %v4874_v0, %v4875_v35 }
 0xdea   : > { %4984 = vrot.lane.b32.xlu1 %v4959_v50, %s8299_s4  ;;  %v4915_v24 = vsel %vm327_vm4, %v4911_v26, %v4912_v14  ;;  %v4938_v10 = vadd.f32 %v4934_v2, %v4930_v39  ;;  %v4937_v57 = vmul.f32 0.1, %v4909_v22  ;;  %v4883_v21 = vmul.f32 %v4880_v16, %v8588_v40 }
 0xdeb   : > { %v4933_v52 = vadd.f32 %v4929_v13, %v4925_v37  ;;  %v4945_v8 = vmul.f32 0.2, %v4921_v58  ;;  %v4919_v38 = vmul.f32 %v4915_v24, %v8669_v45  ;;  %v4927_v49 = vmul.f32 -0.1, %v4895_v36  ;;  %7690 = vmatpush3.bf16.msra.mxu0 %v8194_v53  ;;  %v10901_v53 = vld [vmem:[#allocation38_spill] sm:$0xff] }
 0xdec   : > { %v10891_v50 = vrot.slane %v10255_v6, 6  ;;  %v4946_v0 = vadd.f32 %v4942_v55, %v4938_v10  ;;  %v4923_v1 = vmul.f32 -0.2, %v4883_v21  ;;  %v4935_v26 = vmul.f32 0.1, %v4907_v25 }
 0xded   : > { %v4941_v31 = vadd.f32 %v4937_v57, %v4933_v52  ;;  %v10892_v2 = vrot.slane %v10255_v6, 7  ;;  %v10893_v13 = vrot.slane %v10255_v6, 1  ;;  %v4943_v24 = vmul.f32 0.2, %v4919_v38 }
 0xdee   : > { %v4879_v18 = vsel %vm228_vm3, %v4875_v35, %v10891_v50  ;;  %v4914_v35 = vsel %vm327_vm4, %v4912_v14, %v4913_v27  ;;  %4966 = vrot.lane.b32.xlu0 %v4946_v0, %s8300_s29  ;;  %v4931_v55 = vadd.f32 %v4927_v49, %v4923_v1  ;;  %v4953_v10 = vmul.f32 -0.5, %v4897_v9  ;;  %v8196_v9 = vld [vmem:[%s10740_s8 + $0x148] sm:$0xff]  }
 0xdef   : > { %v4884_v39 = vmul.f32 %v4879_v18, %v8596_v44  ;;  %v4891_v37 = vsel %vm261_vm1, %v4887_v15, %v10892_v2  ;;  %v4902_v36 = vsel %vm294_vm2, %v10893_v13, %v4901_v5  ;;  %v4949_v25 = vadd.f32 %v4945_v8, %v4941_v31  ;;  %v8195_v18 = vld [vmem:[%s10740_s8 + $0x140] sm:$0xff]   ;;  %v10898_v13 = vld [vmem:[#allocation35_spill] sm:$0xff] }
 0xdf0   : > { %v4896_v58 = vmul.f32 %v4891_v37, %v8598_v46  ;;  %v4908_v15 = vmul.f32 %v4902_v36, %v8634_v23  ;;  %v4939_v5 = vadd.f32 %v4935_v26, %v4931_v55  ;;  %v4920_v27 = vmul.f32 %v4914_v35, %v8714_v51  ;;  %7691 = vmatprep.subr.bf16.mxu0 %v8195_v18  ;;  %v10896_v2 = vld [vmem:[#allocation33_spill] sm:$0xff]  ;;  %v10899_v36 = vld [vmem:[#allocation34_spill] sm:$0xff] }
 0xdf1   : > { %v4924_v16 = vmul.f32 -0.2, %v4884_v39  ;;  %4972 = vrot.lane.b32.xlu1 %v4949_v25, %s8300_s29  ;;  %v4957_v8 = vmul.f32 0.5, %v4909_v22  ;;  %7692 = vmatpush3.bf16.msra.mxu0 %v8195_v18  ;;  %v10894_v26 = vpack.i.bf16 %v9314_v4, %v9310_v60  ;;  %v10895_v39 = vpack.i.bf16 %v9318_v30, %v9312_v28  ;;  %v10902_v25 = vld [vmem:[#allocation36_spill] sm:$0xff]  ;;  %v10904_v60 = vld [vmem:[#allocation39_spill] sm:$0xff]  ;;  %v10905_v4 = vld [vmem:[#allocation37_spill] sm:$0xff] }
 0xdf2   : > { %v4928_v14 = vmul.f32 -0.1, %v4896_v58  ;;  %v4947_v52 = vadd.f32 %v4943_v24, %v4939_v5  ;;  %v4936_v21 = vmul.f32 0.1, %v4908_v15  ;;  %v4944_v50 = vmul.f32 0.2, %v4920_v27  ;;  %7693 = vmatprep.subr.bf16.mxu0 %v8196_v9 }
 0xdf3   : > { %v4961_v31 = vadd.f32 %v4957_v8, %v4953_v10  ;;  %v4952_v38 = vmul.f32 -0.5, %v4896_v58  ;;  %v4956_v1 = vmul.f32 0.5, %v4908_v15  ;;  %v10897_v37 = vpack.i.bf16 %v9547_v12, %v10896_v2  ;;  %v10907_v30 = vld [vmem:[#allocation42_spill] sm:$0xff]  ;;  %v10908_v58 = vld [vmem:[#allocation40_spill] sm:$0xff]  ;;  %v10910_v15 = vld [vmem:[#allocation43_spill] sm:$0xff] }
 0xdf4   : > { %v4932_v57 = vadd.f32 %v4928_v14, %v4924_v16  ;;  %v10900_v35 = vpack.i.bf16 %v10898_v13, %v10899_v36  ;;  %v10903_v55 = vpack.i.bf16 %v10901_v53, %v10902_v25  ;;  %v10906_v28 = vpack.i.bf16 %v10904_v60, %v10905_v4  ;;  %v10911_v16 = vld [vmem:[#allocation41_spill] sm:$0xff] }
 0xdf5   : > { %4968 = vrot.lane.b32.xlu1 %v4947_v52, %s8300_s29  ;;  %v4960_v22 = vadd.f32 %v4956_v1, %v4952_v38  ;;  %7694 = vmatpush3.bf16.msra.mxu0 %v8196_v9  ;;  %v10909_v12 = vpack.i.bf16 %v10907_v30, %v10908_v58  ;;  %v10912_v5 = vpack.i.bf16 %v10910_v15, %v10911_v16 }
 0xdf6   : > { %v4940_v49 = vadd.f32 %v4936_v21, %v4932_v57  ;;  %v10913_v24 = vpack.i.bf16 %v10243_v7, %v10239_v33  ;;  %v10914_v27 = vpack.i.bf16 %v10247_v11, %v10241_v56  ;;  %v6826_v21 = vld [vmem:[%s8979_s0 + $0xc] sm:$0x3]  ;;  %s5659_s0 = scalar_lea.vmem %s10747_s15, %s8296_s25 }
 0xdf7   : > { %v5020_v11 = vrot.slane %v6826_v21, %v8740_v62 }
 0xdf8   : > { %v4948_v0 = vadd.f32 %v4944_v50, %v4940_v49  ;;  %v5012_v50 = vrot.slane %v6826_v21, %v8736_v34 }
 0xdf9   : > { %4988 = vrot.lane.b32.xlu1 %v4961_v31, %s8299_s4 }
 0xdfa   : > { %4970 = vrot.lane.b32.xlu0 %v4948_v0, %s8300_s29 }
 0xdfd   : > { %7948 = vrot.lane.b32.xlu1 %v10894_v26, %s8309_s26 }
 0xdfe   : > { %4986 = vrot.lane.b32.xlu0 %v4960_v22, %s8299_s4 }
 0xe01   : > { %7958 = vrot.lane.b32.xlu1 %v10897_v37, %s8308_s22 }
 0xe02   : > { %7943 = vrot.lane.b32.xlu0 %v10895_v39, %s8309_s26  ;;  %s5546_s26 = scalar_lea.vmem %s10744_s12, %s8524_s23 }
 0xe05   : > { %7968 = vrot.lane.b32.xlu1 %v10903_v55, %s8307_s3 }
 0xe06   : > { %7953 = vrot.lane.b32.xlu0 %v10900_v35, %s8308_s22  ;;  %s5506_s22 = scalar_lea.vmem %s10743_s11, %s8729_s30 }
 0xe09   : > { %7978 = vrot.lane.b32.xlu1 %v10909_v12, %s8306_s24 }
 0xe0a   : > { %7963 = vrot.lane.b32.xlu0 %v10906_v28, %s8307_s3  ;;  %s10915_s3 = smov 72  }
 0xe0d   : > { %7988 = vrot.lane.b32.xlu1 %v10913_v24, %s8305_s28 }
 0xe0e   : > { %7973 = vrot.lane.b32.xlu0 %v10912_v5, %s8306_s24  ;;  %s5262_s24 = scalar_lea.vmem %s10741_s9, %s8524_s23 }
 0xe0f   : > { %v8197_v4 = vld [vmem:[%s5262_s24] sm:$0xff]   ;;  %v8199_v28 = vld [vmem:[%s5262_s24 + $0x10] sm:$0xff]   ;;  %v8200_v30 = vld [vmem:[%s5262_s24 + $0x18] sm:$0xff]  }
 0xe10   : > { %7699 = vmatprep.subr.bf16.mxu0 %v8197_v4  ;;  %v8201_v58 = vld [vmem:[%s5262_s24 + $0x20] sm:$0xff]   ;;  %v8202_v12 = vld [vmem:[%s5262_s24 + $0x28] sm:$0xff]  }
 0xe12   : > { %7983 = vrot.lane.b32.xlu0 %v10914_v27, %s8305_s28 }
 0xe5b   : > { %v4983_v14 = vpop.permute.xlu0 %4982 }
 0xe5c   : > { %v4985_v10 = vpop.permute.xlu1 %4984 }
 0xe60   : > { %v4967_v52 = vpop.permute.xlu0 %4966 }
 0xe61   : > { %v4994_v57 = vsel %vm428_vm5, %v10257_v17, %v4967_v52 }
 0xe62   : > { %v4998_v8 = vsel %vm433_vm6, %v4994_v57, %v4983_v14 }
 0xe63   : > { %v4973_v49 = vpop.permute.xlu1 %4972  ;;  %v5002_v18 = vmax.f32 %v4998_v8, 0.0 }
 0xe64   : > { %v4997_v17 = vsel %vm428_vm5, %v10265_v29, %v4973_v49 }
 0xe65   : > { %v5013_v0 = vmul.f32 %v5012_v50, %v5002_v18 }
 0xe67   : > { %v4969_v33 = vpop.permute.xlu1 %4968  ;;  %v5021_v39 = vadd.f32 %v5020_v11, %v5013_v0 }
 0xe68   : > { %v4995_v7 = vsel %vm428_vm5, %v10267_v63, %v4969_v33 }
 0xe69   : > { %v4999_v56 = vsel %vm433_vm6, %v4995_v7, %v4985_v10 }
 0xe6a   : > { %v5003_v31 = vmax.f32 %v4999_v56, 0.0 }
 0xe6b   : > { %v4989_v1 = vpop.permute.xlu1 %4988 }
 0xe6c   : > { %v4971_v38 = vpop.permute.xlu0 %4970  ;;  %v5014_v9 = vmul.f32 %v5012_v50, %v5003_v31  ;;  %v5001_v22 = vsel %vm433_vm6, %v4997_v17, %v4989_v1  ;;  %v10916_v1 = vld [vmem:[#allocation31_spill] sm:$0xff] }
 0xe6d   : > { %v5005_v26 = vmax.f32 %v5001_v22, 0.0  ;;  %v4996_v63 = vsel %vm428_vm5, %v10255_v6, %v4971_v38  ;;  %v8198_v6 = vld [vmem:[%s5262_s24 + $0x8] sm:$0xff]  }
 0xe6e   : > { %v5022_v2 = vadd.f32 %v5020_v11, %v5014_v9  ;;  %v10917_v22 = vld [vmem:[#allocation29_spill] sm:$0xff] }
 0xe6f   : > { %v5016_v37 = vmul.f32 %v5012_v50, %v5005_v26  ;;  %v7949_v10 = vpop.permute.xlu1 %7948 }
 0xe70   : > { %v4987_v13 = vpop.permute.xlu0 %4986  ;;  %v5038_v35 = vpack.c.bf16 %v5022_v2, %v5021_v39  ;;  %v7951_v18 = vunpack.i.h.bf16 %v7949_v10  ;;  %v7950_v33 = vunpack.i.l.bf16 %v7949_v10 }
 0xe71   : > { %v5000_v36 = vsel %vm433_vm6, %v4996_v63, %v4987_v13  ;;  %v5024_v29 = vadd.f32 %v5020_v11, %v5016_v37  ;;  %v10918_v63 = vld [vmem:[#allocation32_spill] sm:$0xff]  ;;  %v10919_v13 = vld [vmem:[#allocation30_spill] sm:$0xff] }
 0xe72   : > { %v5004_v53 = vmax.f32 %v5000_v36, 0.0  ;;  %7695 = vmatprep.mubr.msk.bf16.mxu0 %vm166_vm0, %v5038_v35  ;;  %v5230_v9 = vsel %vm477_vm8, %v10916_v1, %v7951_v18  ;;  %v5229_v26 = vsel %vm477_vm8, %v10917_v22, %v7950_v33 }
 0xe73   : > { %v7959_v57 = vpop.permute.xlu1 %7958 }
 0xe74   : > { %v5015_v25 = vmul.f32 %v5012_v50, %v5004_v53  ;;  %v7944_v52 = vpop.permute.xlu0 %7943  ;;  %v7960_v0 = vunpack.i.l.bf16 %v7959_v57  ;;  %v7961_v31 = vunpack.i.h.bf16 %v7959_v57 }
 0xe75   : > { %v7946_v56 = vunpack.i.h.bf16 %v7944_v52 }
 0xe76   : > { %v5023_v55 = vadd.f32 %v5020_v11, %v5015_v25  ;;  %v7945_v11 = vunpack.i.l.bf16 %v7944_v52  ;;  %v5234_v25 = vsel %vm5231_vm10, %v5229_v26, %v7960_v0 }
 0xe77   : > { %v7969_v8 = vpop.permute.xlu1 %7968  ;;  %v5228_v37 = vsel %vm477_vm8, %v10918_v63, %v7946_v56 }
 0xe78   : > { %v5039_v60 = vpack.c.bf16 %v5024_v29, %v5023_v55  ;;  %v7954_v21 = vpop.permute.xlu0 %7953  ;;  %v7971_v39 = vunpack.i.h.bf16 %v7969_v8  ;;  %v7970_v2 = vunpack.i.l.bf16 %v7969_v8  ;;  %v5227_v36 = vsel %vm477_vm8, %v10919_v13, %v7945_v11 }
 0xe79   : > { %v7956_v17 = vunpack.i.h.bf16 %v7954_v21  ;;  %v7955_v38 = vunpack.i.l.bf16 %v7954_v21 }
 0xe7a   : > { %7696 = vmatmul.mubr.msk.bf16.vlgmr.msra.gmra.mrb[28].mxu0 %vm166_vm0, %v5039_v60 }
 0xe7b   : > { %7700 = vmatpush3.bf16.msra.mxu0 %v8197_v4  ;;  %v7979_v50 = vpop.permute.xlu1 %7978 }
 0xe7c   : > { %7701 = vmatprep.subr.bf16.mxu0 %v8198_v6  ;;  %v7964_v49 = vpop.permute.xlu0 %7963  ;;  %v7981_v55 = vunpack.i.h.bf16 %v7979_v50  ;;  %v7980_v60 = vunpack.i.l.bf16 %v7979_v50 }
 0xe7d   : > { %v7966_v35 = vunpack.i.h.bf16 %v7964_v49  ;;  %v7965_v53 = vunpack.i.l.bf16 %v7964_v49 }
 0xe7f   : > { %7702 = vmatpush3.bf16.msra.mxu0 %v8198_v6  ;;  %v7989_v29 = vpop.permute.xlu1 %7988 }
 0xe80   : > { %7703 = vmatprep.subr.bf16.mxu0 %v8199_v28  ;;  %v7974_v7 = vpop.permute.xlu0 %7973 }
 0xe81   : > { %v7975_v4 = vunpack.i.l.bf16 %v7974_v7 }
 0xe83   : > { %7704 = vmatpush3.bf16.msra.mxu0 %v8199_v28  ;;  %v5235_v28 = vsel %vm5231_vm10, %v5230_v9, %v7961_v31 }
 0xe84   : > { %7705 = vmatprep.subr.bf16.mxu0 %v8200_v30  ;;  %v7984_v6 = vpop.permute.xlu0 %7983 }
 0xe85   : > { %v7986_v10 = vunpack.i.h.bf16 %v7984_v6  ;;  %v7985_v52 = vunpack.i.l.bf16 %v7984_v6 }
 0xe87   : > { %7706 = vmatpush3.bf16.msra.mxu0 %v8200_v30  ;;  %v5232_v30 = vsel %vm5231_vm10, %v5227_v36, %v7955_v38 }
 0xe88   : > { %7707 = vmatprep.subr.bf16.mxu0 %v8201_v58 }
 0xe8b   : > { %7708 = vmatpush3.bf16.msra.mxu0 %v8201_v58  ;;  %v5233_v58 = vsel %vm5231_vm10, %v5228_v37, %v7956_v17 }
 0xe8c   : > { %7709 = vmatprep.subr.bf16.mxu0 %v8202_v12 }
 0xe8f   : > { %7710 = vmatpush3.bf16.msra.mxu0 %v8202_v12  ;;  %v7976_v12 = vunpack.i.h.bf16 %v7974_v7 }
 0xf4d   : > { %v7697_v15 = vpop.f32.mrb[28].mxu0 }
 0xf4e   : > { %v5116_v16 = vpop.f32.mrb[29].mxu0 }
 0xf4f   : > { %v7698_v5 = vpop.f32.mrb[30].mxu0 }
 0xf50   : > { %v7997_v24 = vpack.i.bf16 %v7698_v5, %v7697_v15  ;;  %v5119_v27 = vpop.f32.mrb[31].mxu0  ;;  %v5239_v15 = vsel %vm5236_vm11, %v5234_v25, %v7970_v2  ;;  %v7991_v5 = vunpack.i.h.bf16 %v7989_v29 }
 0xf51   : > { %v7992_v14 = vpack.i.bf16 %v5119_v27, %v5116_v16  ;;  %v5240_v16 = vsel %vm5236_vm11, %v5235_v28, %v7971_v39  ;;  %v5237_v27 = vsel %vm5236_vm11, %v5232_v30, %v7965_v53  ;;  %v5244_v57 = vsel %vm5241_vm12, %v5239_v15, %v7980_v60 }
 0xf52   : > { %7998 = vrot.lane.b32.xlu1 %v7997_v24, %s10915_s3  ;;  %v7990_v24 = vunpack.i.l.bf16 %v7989_v29  ;;  %v5245_v21 = vsel %vm5241_vm12, %v5240_v16, %v7981_v55  ;;  %v5242_v8 = vsel %vm5241_vm12, %v5237_v27, %v7975_v4 }
 0xf53   : > { %7993 = vrot.lane.b32.xlu0 %v7992_v14, %s10915_s3  ;;  %v5238_v14 = vsel %vm5236_vm11, %v5233_v58, %v7966_v35  ;;  %v5250_v11 = vsel %vm5246_vm13, %v5245_v21, %v7991_v5  ;;  %v5247_v17 = vsel %vm5246_vm13, %v5242_v8, %v7985_v52  ;;  %s5767_s3 = scalar_lea.vmem %s10748_s16, %s8729_s30 }
 0xf54   : > { %v5243_v50 = vsel %vm5241_vm12, %v5238_v14, %v7976_v12  ;;  %v5249_v56 = vsel %vm5246_vm13, %v5244_v57, %v7990_v24 }
 0xf55   : > { %v5248_v38 = vsel %vm5246_vm13, %v5243_v50, %v7986_v10 }
 0xfc4   : > { %v7999_v49 = vpop.permute.xlu1 %7998 }
 0xfc5   : > { %v8001_v18 = vunpack.i.h.bf16 %v7999_v49  ;;  %v8000_v33 = vunpack.i.l.bf16 %v7999_v49  ;;  %v7994_v7 = vpop.permute.xlu0 %7993 }
 0xfc6   : > { %v7996_v0 = vunpack.i.h.bf16 %v7994_v7  ;;  %v7995_v31 = vunpack.i.l.bf16 %v7994_v7 }
 0xfc7   : > { %v5255_v1 = vsel %vm5251_vm14, %v5250_v11, %v8001_v18  ;;  %v5254_v9 = vsel %vm5251_vm14, %v5249_v56, %v8000_v33 }
 0xfc8   : > { %v5260_v22 = vsel %vm5256_vm15, %v5255_v1, %v8764_v59  ;;  %v5259_v26 = vsel %vm5256_vm15, %v5254_v9, %v8767_v3  ;;  %v5252_v39 = vsel %vm5251_vm14, %v5247_v17, %v7995_v31  ;;  %v5253_v2 = vsel %vm5251_vm14, %v5248_v38, %v7996_v0  ;;  %v6848_v59 = vld [vmem:[%s5277_s1] ss:$0 sm:$0xff]  ;;  %v10921_v38 = vld [vmem:[#allocation27_spill] sm:$0xff]  ;;  %s5785_s1 = scalar_lea.vmem %s10749_s17, %s8729_s30 }
 0xfc9   : > { %v5276_v63 = vpack.c.bf16 %v5260_v22, %v5259_v26  ;;  %v5257_v37 = vsel %vm5256_vm15, %v5252_v39, %v8750_v20  ;;  %v5258_v13 = vsel %vm5256_vm15, %v5253_v2, %v8753_v54  ;;  %v10920_v31 = vld [vmem:[#allocation28_spill] sm:$0xff] }
 0xfca   : > { %v5275_v36 = vpack.c.bf16 %v5258_v13, %v5257_v37 }
 0xfcc   : > { %7711 = vmatprep.mubr.msk.bf16.mxu0 %vm166_vm0, %v5275_v36 }
 0xfcd   : > { %7712 = vmatmul.mubr.msk.bf16.vlgmr.msra.gmra.mrb[32].mxu0 %vm166_vm0, %v5276_v63 }
0x10a0   : > { %v7713_v3 = vpop.f32.mrb[32].mxu0 }
0x10a1   : > { %v10465_v35 = vadd.f32 %v7713_v3, %v6848_v59  ;;  %v5359_v53 = vpop.f32.mrb[33].mxu0 }
0x10a2   : > { %v10467_v29 = vadd.f32 %v6848_v59, %v5359_v53  ;;  %v7714_v20 = vpop.f32.mrb[34].mxu0 }
0x10a3   : > { %v5362_v25 = vpop.f32.mrb[35].mxu0  ;;  %v5376_v54 = vrot.slane %v10465_v35, 6  ;;  %v5388_v55 = vrot.slane %v10465_v35, 7  ;;  %v10473_v6 = vadd.f32 %v7714_v20, %v6848_v59  ;;  %v5400_v30 = vrot.slane %v10465_v35, 1 }
0x10a4   : > { %v5386_v60 = vrot.slane %v10467_v29, 7  ;;  %v5398_v4 = vrot.slane %v10467_v29, 1  ;;  %v10475_v28 = vadd.f32 %v6848_v59, %v5362_v25  ;;  %v5412_v58 = vrot.slane %v10465_v35, 2 }
0x10a5   : > { %v5374_v12 = vrot.slane %v10467_v29, 6  ;;  %v5410_v15 = vrot.slane %v10467_v29, 2  ;;  %v5377_v16 = vrot.slane %v10473_v6, 6  ;;  %v5389_v5 = vrot.slane %v10473_v6, 7 }
0x10a6   : > { %v5401_v24 = vrot.slane %v10473_v6, 1  ;;  %v5413_v27 = vrot.slane %v10473_v6, 2  ;;  %v5375_v14 = vrot.slane %v10475_v28, 6  ;;  %v5387_v10 = vrot.slane %v10475_v28, 7 }
0x10a7   : > { %v5399_v52 = vrot.slane %v10475_v28, 1  ;;  %v5411_v57 = vrot.slane %v10475_v28, 2  ;;  %v5393_v21 = vsel %vm261_vm1, %v5389_v5, %v5386_v60  ;;  %v5378_v8 = vsel %vm228_vm3, %v5376_v54, %v5377_v16 }
0x10a8   : > { %v5390_v49 = vsel %vm261_vm1, %v5388_v55, %v5389_v5  ;;  %v5405_v50 = vsel %vm294_vm2, %v5401_v24, %v5398_v4  ;;  %v5394_v18 = vmul.f32 %v5393_v21, %v8590_v41  ;;  %v5392_v7 = vsel %vm261_vm1, %v5386_v60, %v5387_v10 }
0x10a9   : > { %v5404_v33 = vsel %vm294_vm2, %v5398_v4, %v5399_v52  ;;  %v5403_v56 = vsel %vm294_vm2, %v5399_v52, %v5400_v30  ;;  %v5395_v0 = vmul.f32 %v5392_v7, %v8592_v42  ;;  %v5385_v1 = vmul.f32 %v5378_v8, %v10921_v38 }
0x10aa   : > { %v5406_v11 = vmul.f32 %v5404_v33, %v8606_v48  ;;  %v5407_v17 = vmul.f32 %v5403_v56, %v10920_v31  ;;  %v5450_v9 = vmul.f32 -0.5, %v5394_v18  ;;  %v5397_v41 = vmul.f32 %v5390_v49, %v8594_v43  ;;  %v10922_v43 = vld [vmem:[#allocation26_spill] sm:$0xff] }
0x10ab   : > { %v5409_v22 = vmul.f32 %v5405_v50, %v8623_v61  ;;  %v5417_v26 = vsel %vm327_vm4, %v5413_v27, %v5410_v15  ;;  %v5451_v2 = vmul.f32 -0.5, %v5395_v0  ;;  %v5425_v48 = vmul.f32 -0.2, %v5385_v1 }
0x10ac   : > { %v5454_v39 = vmul.f32 0.5, %v5406_v11  ;;  %v5455_v63 = vmul.f32 0.5, %v5407_v17  ;;  %v5421_v37 = vmul.f32 %v5417_v26, %v8699_v32  ;;  %v5429_v13 = vmul.f32 -0.1, %v5397_v41 }
0x10ad   : > { %v5437_v42 = vmul.f32 0.1, %v5409_v22  ;;  %v5381_v36 = vsel %vm228_vm3, %v5377_v16, %v5374_v12  ;;  %v5416_v25 = vsel %vm327_vm4, %v5410_v15, %v5411_v57  ;;  %v5426_v60 = vmul.f32 -0.1, %v5394_v18 }
0x10ae   : > { %v5458_v59 = vadd.f32 %v5454_v39, %v5450_v9  ;;  %v5459_v3 = vadd.f32 %v5455_v63, %v5451_v2  ;;  %v5445_v53 = vmul.f32 0.2, %v5421_v37  ;;  %v5382_v20 = vmul.f32 %v5381_v36, %v10922_v43  ;;  %v5507_v43 = vld [vmem:[%s5506_s22] sm:$0x3] }
0x10af   : > { %v5433_v61 = vadd.f32 %v5429_v13, %v5425_v48  ;;  %v5434_v4 = vmul.f32 0.1, %v5406_v11  ;;  %v5418_v32 = vmul.f32 %v5416_v25, %v8662_v19  ;;  %v5379_v16 = vsel %vm228_vm3, %v5375_v14, %v5376_v54  ;;  %v8206_v48 = vld [vmem:[%s5546_s26 + $0x18] sm:$0xff]   ;;  %v8207_v13 = vld [vmem:[%s5546_s26 + $0x20] sm:$0xff]  }
0x10b0   : > { %5482 = vrot.lane.b32.xlu0 %v5458_v59, %s8299_s4  ;;  %5484 = vrot.lane.b32.xlu1 %v5459_v3, %s8299_s4  ;;  %v5422_v5 = vmul.f32 -0.2, %v5382_v20  ;;  %v5391_v52 = vsel %vm261_vm1, %v5387_v10, %v5388_v55  ;;  %v5384_v8 = vmul.f32 %v5379_v16, %v8596_v44  ;;  %v5402_v49 = vsel %vm294_vm2, %v5400_v30, %v5401_v24 }
0x10b1   : > { %v5441_v21 = vadd.f32 %v5437_v42, %v5433_v61  ;;  %v5396_v15 = vmul.f32 %v5391_v52, %v8598_v46  ;;  %v5408_v18 = vmul.f32 %v5402_v49, %v8634_v23  ;;  %v5414_v19 = vsel %vm327_vm4, %v5412_v58, %v5413_v27  ;;  %v8208_v42 = vld [vmem:[%s5546_s26 + $0x28] sm:$0xff]  }
0x10b2   : > { %v5430_v50 = vadd.f32 %v5426_v60, %v5422_v5  ;;  %v5442_v33 = vmul.f32 0.2, %v5418_v32  ;;  %v5424_v7 = vmul.f32 -0.2, %v5384_v8  ;;  %v5420_v44 = vmul.f32 %v5414_v19, %v8714_v51 }
0x10b3   : > { %v5449_v54 = vadd.f32 %v5445_v53, %v5441_v21  ;;  %v5428_v55 = vmul.f32 -0.1, %v5396_v15  ;;  %v5380_v46 = vsel %vm228_vm3, %v5374_v12, %v5375_v14  ;;  %v5415_v23 = vsel %vm327_vm4, %v5411_v57, %v5412_v58 }
0x10b4   : > { %v5438_v10 = vadd.f32 %v5434_v4, %v5430_v50  ;;  %v5436_v24 = vmul.f32 0.1, %v5408_v18  ;;  %v5383_v27 = vmul.f32 %v5380_v46, %v8588_v40  ;;  %v5427_v11 = vmul.f32 -0.1, %v5395_v0 }
0x10b5   : > { %5472 = vrot.lane.b32.xlu1 %v5449_v54, %s8300_s29  ;;  %v5432_v30 = vadd.f32 %v5428_v55, %v5424_v7  ;;  %v5419_v38 = vmul.f32 %v5415_v23, %v8669_v45  ;;  %v5444_v12 = vmul.f32 0.2, %v5420_v44  ;;  %v5435_v1 = vmul.f32 0.1, %v5407_v17  ;;  %v8203_v17 = vld [vmem:[%s5546_s26] sm:$0xff]  }
0x10b6   : > { %v5446_v56 = vadd.f32 %v5442_v33, %v5438_v10  ;;  %v5423_v51 = vmul.f32 -0.2, %v5383_v27  ;;  %v5452_v58 = vmul.f32 -0.5, %v5396_v15  ;;  %v5456_v57 = vmul.f32 0.5, %v5408_v18 }
0x10b7   : > { %v5440_v31 = vadd.f32 %v5436_v24, %v5432_v30  ;;  %v5443_v39 = vmul.f32 0.2, %v5419_v38  ;;  %v5453_v2 = vmul.f32 -0.5, %v5397_v41  ;;  %v5457_v0 = vmul.f32 0.5, %v5409_v22  ;;  %v8204_v41 = vld [vmem:[%s5546_s26 + $0x8] sm:$0xff]   ;;  %v8205_v22 = vld [vmem:[%s5546_s26 + $0x10] sm:$0xff]  }
0x10b8   : > { %5466 = vrot.lane.b32.xlu0 %v5446_v56, %s8300_s29  ;;  %v5431_v14 = vadd.f32 %v5427_v11, %v5423_v51  ;;  %v5460_v63 = vadd.f32 %v5456_v57, %v5452_v58  ;;  %v8310_v37 = vmov 0.0   ;;  %vm8311_vm1 = vmmov 0  }
0x10b9   : > { %v5448_v9 = vadd.f32 %v5444_v12, %v5440_v31  ;;  %v5461_v45 = vadd.f32 %v5457_v0, %v5453_v2  ;;  %7715 = vmatprep.subr.bf16.mxu0 %v8310_v37  ;;  %7737 = vmatprep.subr.bf16.mxu1 %v8310_v37  ;;  %v5511_v25 = vrot.slane %v5507_v43, %v8736_v34  ;;  %vm5571_vm2 = vcmask 1041409  }
0x10ba   : > { %v5439_v26 = vadd.f32 %v5435_v1, %v5431_v14  ;;  %7716 = vmatpush3.bf16.msra.mxu0 %v8203_v17  ;;  %7727 = vmatprep.mubr.msk.bf16.mxu0 %vm8311_vm1, %v8310_v37  ;;  %v5519_v5 = vrot.slane %v5507_v43, %v8740_v62 }
0x10bb   : > { %7717 = vmatprep.subr.bf16.mxu0 %v8310_v37  ;;  %7749 = vmatprep.mubr.msk.bf16.mxu1 %vm8311_vm1, %v8310_v37 }
0x10bc   : > { %5470 = vrot.lane.b32.xlu0 %v5448_v9, %s8300_s29  ;;  %v5447_v40 = vadd.f32 %v5443_v39, %v5439_v26 }
0x10be   : > { %5468 = vrot.lane.b32.xlu1 %v5447_v40, %s8300_s29  ;;  %7718 = vmatpush3.bf16.msra.mxu0 %v8204_v41 }
0x10bf   : > { %7719 = vmatprep.subr.bf16.mxu0 %v8310_v37 }
0x10c0   : > { %5486 = vrot.lane.b32.xlu0 %v5460_v63, %s8299_s4 }
0x10c2   : > { %5488 = vrot.lane.b32.xlu1 %v5461_v45, %s8299_s4  ;;  %7720 = vmatpush3.bf16.msra.mxu0 %v8205_v22  ;;  %s6907_s4 = sshll.u32 %s8296_s25, 3  ;;  %s91_s25 = sadd.s32 1, %s8296_s25  }
0x10c3   : > { %7721 = vmatprep.subr.bf16.mxu0 %v8310_v37  ;;  %s10568_s28 = scalar_lea.vmem %s10746_s14, %s6907_s4  ;;  %s5828_s4 = scalar_lea.vmem %s10750_s18, %s8524_s23 }
0x10c4   : > { %v8209_v45 = vld [vmem:[%s10568_s28] sm:$0x3f]   ;;  %p88_p0 = scmp.ge.s32.totalorder %s91_s25, 7  }
0x10c5   :  { %vm8314_vm3 = vmmov (%p88_p0), 0   ;;  %s10930_s6 = sld [smem:[#allocation44_spill]] (%p88_p0)  ;;  %vm6088_vm4 = vcmask (%p88_p0), 9216  }
0x10c6   : > { %7722 = vmatpush3.bf16.msra.mxu0 %v8206_v48 }
0x10c7   : > { %7723 = vmatprep.subr.bf16.mxu0 %v8310_v37 }
0x10ca   : > { %7724 = vmatpush3.bf16.msra.mxu0 %v8207_v13  ;;  %v5674_v13 = vsel %vm608_vm7, %v8209_v45, 0 }
0x10cb   : > { %7725 = vmatprep.subr.bf16.mxu0 %v8310_v37 }
0x10ce   : > { %7726 = vmatpush3.bf16.msra.mxu0 %v8208_v42  ;;  %v6858_v42 = vld [vmem:[%s5561_s2] ss:$0 sm:$0xff] }
0x10cf   : > { %7731 = vmatprep.subr.bf16.mxu0 %v8310_v37 }
0x1122   : > { %v5483_v36 = vpop.permute.xlu0 %5482  ;;  %v5485_v59 = vpop.permute.xlu1 %5484 }
0x1127   : > { %v5473_v53 = vpop.permute.xlu1 %5472 }
0x1128   : > { %v5497_v18 = vsel %vm428_vm5, %v10473_v6, %v5473_v53 }
0x112a   : > { %v5467_v3 = vpop.permute.xlu0 %5466 }
0x112b   : > { %v5494_v20 = vsel %vm428_vm5, %v10467_v29, %v5467_v3 }
0x112c   : > { %v5498_v61 = vsel %vm433_vm6, %v5494_v20, %v5483_v36 }
0x112d   : > { %v5502_v60 = vmax.f32 %v5498_v61, 0.0 }
0x112e   : > { %v5471_v4 = vpop.permute.xlu0 %5470 }
0x112f   : > { %v5512_v16 = vmul.f32 %v5511_v25, %v5502_v60  ;;  %v5496_v52 = vsel %vm428_vm5, %v10465_v35, %v5471_v4  ;;  %v8211_v60 = vld [vmem:[%s5828_s4 + $0x8] sm:$0xff]   ;;  %v8212_v4 = vld [vmem:[%s5828_s4 + $0x10] sm:$0xff]  }
0x1130   : > { %v5469_v32 = vpop.permute.xlu1 %5468 }
0x1131   : > { %v5495_v21 = vsel %vm428_vm5, %v10475_v28, %v5469_v32  ;;  %v10588_v54 = vadd.f32 %v5519_v5, %v5512_v16  ;;  %v8213_v32 = vld [vmem:[%s5828_s4 + $0x18] sm:$0xff]   ;;  %v8215_v16 = vld [vmem:[%s5828_s4 + $0x28] sm:$0xff]  }
0x1132   : > { %v5487_v8 = vpop.permute.xlu0 %5486  ;;  %v5499_v15 = vsel %vm433_vm6, %v5495_v21, %v5485_v59 }
0x1133   : > { %v5500_v29 = vsel %vm433_vm6, %v5496_v52, %v5487_v8  ;;  %v5503_v49 = vmax.f32 %v5499_v15, 0.0  ;;  %v5524_v46 = vsel %vm166_vm0, %v10588_v54, 0.0  ;;  %v6867_v52 = vld [vmem:[%s5659_s0] ss:$0 sm:$0xff] }
0x1134   : > { %v5504_v50 = vmax.f32 %v5500_v29, 0.0  ;;  %v5489_v19 = vpop.permute.xlu1 %5488 }
0x1135   : > { %v5513_v33 = vmul.f32 %v5511_v25, %v5503_v49  ;;  %v5501_v35 = vsel %vm433_vm6, %v5497_v18, %v5489_v19 }
0x1136   : > { %v5514_v7 = vmul.f32 %v5511_v25, %v5504_v50  ;;  %v5505_v55 = vmax.f32 %v5501_v35, 0.0 }
0x1137   : > { %v10591_v10 = vadd.f32 %v5519_v5, %v5513_v33 }
0x1138   : > { %v10593_v28 = vadd.f32 %v5519_v5, %v5514_v7  ;;  %v5515_v44 = vmul.f32 %v5511_v25, %v5505_v55  ;;  %v8210_v25 = vld [vmem:[%s5828_s4] sm:$0xff]   ;;  %v8312_v7 = vmov 1966171168  }
0x1139   : > { %v5525_v23 = vsel %vm166_vm0, %v10591_v10, 0.0  ;;  %7738 = vmatpush3.bf16.msra.mxu1 %v8210_v25 }
0x113a   : > { %v5526_v6 = vadd.f32 %v5525_v23, %v5524_v46  ;;  %v5533_v30 = vsel %vm166_vm0, %v10593_v28, 0.0  ;;  %v10601_v24 = vadd.f32 %v5519_v5, %v5515_v44  ;;  %7739 = vmatprep.subr.bf16.mxu1 %v8310_v37  ;;  %v8214_v5 = vld [vmem:[%s5828_s4 + $0x20] sm:$0xff]  }
0x113c   : > { %v5527_v27 = vrot.slane %v5526_v6, 4  ;;  %v5534_v56 = vsel %vm166_vm0, %v10601_v24, 0.0 }
0x113d   : > { %v5535_v11 = vadd.f32 %v5534_v56, %v5533_v30  ;;  %7740 = vmatpush3.bf16.msra.mxu1 %v8211_v60  ;;  %v5768_v30 = vld [vmem:[%s5767_s3] sm:$0x3]  ;;  %s8315_s3 = smov (%p88_p0), [#allocation2]  }
0x113e   : > { %v5528_v31 = vadd.f32 %v5527_v27, %v5526_v6  ;;  %7741 = vmatprep.subr.bf16.mxu1 %v8310_v37  ;;  %s6096_s22 = sshll.u32 (%p88_p0), %s8315_s3, 4  ;;  %s6097_s22 = int_to_ptr.vmem [resolvable:$true] %s6096_s22 }
0x113f   : > { %v5536_v38 = vrot.slane %v5535_v11, 4  ;;  %s8226_s21 = scalar_lea.vmem (%p88_p0), %s6097_s22, 32  ;;  %p8231_p2 = scmp.lt.s32.totalorder (%p88_p0), %s6097_s22, %s6097_s22 }
0x1140   : > { %v5529_v51 = vrot.slane %v5528_v31, 2  ;;  %p8227_p1 = scmp.ne.s32.totalorder (%p88_p0), %s6097_s22, %s8226_s21  ;;  %p8232_p3 = scmp.lt.s32.totalorder (%p88_p0), %s8226_s21, %s8226_s21 }
0x1141   : > { %v5537_v12 = vadd.f32 %v5536_v38, %v5535_v11  ;;  %7742 = vmatpush3.bf16.msra.mxu1 %v8212_v4  ;;  %v5772_v38 = vrot.slane %v5768_v30, %v8736_v34 }
0x1142   : > { %v5530_v14 = vadd.f32 %v5529_v51, %v5528_v31  ;;  %7743 = vmatprep.subr.bf16.mxu1 %v8310_v37  ;;  %v5786_v51 = vld [vmem:[%s5785_s1] sm:$0x3]  ;;  %p8233_p4 = por (%p88_p0), %p8232_p3, %p8231_p2 }
0x1143   : > { %v5538_v1 = vrot.slane %v5537_v12, 2 }
0x1144   : > { %v5531_v9 = vrot.slane %v5530_v14, 1  ;;  %p8234_p5 = pnand (%p88_p0), %p8233_p4, %p8227_p1 }
0x1145   : > { %v5539_v58 = vadd.f32 %v5538_v1, %v5537_v12  ;;  %7744 = vmatpush3.bf16.msra.mxu1 %v8213_v32  ;;  %v10923_v1 = vld [vmem:[#allocation22_spill] sm:$0xff] }
0x1146   : > { %v5532_v57 = vadd.f32 %v5531_v9, %v5530_v14  ;;  %7745 = vmatprep.subr.bf16.mxu1 %v8310_v37 }
0x1147   : > { %v5540_v26 = vrot.slane %v5539_v58, 1 }
0x1148   : > { %v5543_v39 = vmul.f32 0.0625, %v5532_v57 }
0x1149   : > { %v5541_v40 = vadd.f32 %v5540_v26, %v5539_v58  ;;  %7746 = vmatpush3.bf16.msra.mxu1 %v8214_v5  ;;  %v10924_v58 = vld [vmem:[#allocation23_spill] sm:$0xff]  ;;  %v5780_v26 = vrot.slane %v5768_v30, %v8740_v62 }
0x114a   : > { %v5559_v0 = vpack.c.bf16 %v5543_v39, %v5543_v39  ;;  %7747 = vmatprep.subr.bf16.mxu1 %v8310_v37  ;;  %v10925_v39 = vld [vmem:[#allocation24_spill] sm:$0xff] }
0x114b   : > { %v5544_v2 = vmul.f32 0.0625, %v5541_v40 }
0x114c   : > { %v5569_v41 = vunpack.c.l.b16 %v5559_v0 }
0x114d   : > { %v5560_v63 = vpack.c.bf16 %v5544_v2, %v5544_v2  ;;  %7748 = vmatpush3.bf16.msra.mxu1 %v8215_v16  ;;  %v10926_v2 = vld [vmem:[#allocation25_spill] sm:$0xff] }
0x114f   : > { %v5570_v17 = vunpack.c.l.b16 %v5560_v63 }
0x1151   : > { %v5572_v22 = vsel %vm5571_vm2, %v5570_v17, %v5569_v41 }
0x1152   : > { %v5573_v48 = vpack.c.b16 %v5572_v22, %v5572_v22 }
0x1154   : > { %7728 = vmatmul.mubr.msk.bf16.vlgmr.msra.gmra.mrb[36].mxu0 %vm166_vm0, %v5573_v48 }
0x1155   : > { %7732 = vmatpush3.bf16.msra.mxu0 %v5674_v13  ;;  %7733 = vmatprep.mubr.msk.bf16.mxu0 %vm8311_vm1, %v8310_v37  ;;  %v5724_v37 = vunpack.c.l.s4 %v8312_v7 }
0x1157   : > { %v5725_v35 = vunpack.c.0.s8 %v5724_v37 }
0x1159   : > { %v5728_v55 = vsub.s32 %v5725_v35, %v8604_v47 }
0x1227   : > { %v5647_v36 = vpop.f32.mrb[36].mxu0 }
0x1228   : > { %v5648_v59 = vadd.f32 %v6858_v42, %v5647_v36  ;;  %v7729_v3 = vpop.f32.mrb[37].mxu0 }
0x1229   : > { %v5650_v53 = vpop.f32.mrb[38].mxu0 }
0x122a   : > { %v5653_v43 = vmax.f32 %v5648_v59, 0.0  ;;  %v7730_v20 = vpop.f32.mrb[39].mxu0 }
0x122c   : > { %v5658_v61 = vpack.c.bf16 %v5653_v43, %v5653_v43 }
0x122e   : > { %7734 = vmatmul.mubr.msk.bf16.vlgmr.msra.gmra.mrb[40].mxu0 %vm477_vm8, %v5658_v61 }
0x1301   : > { %v5710_v21 = vpop.f32.mrb[40].mxu0 }
0x1302   : > { %v5711_v8 = vadd.f32 %v6867_v52, %v5710_v21  ;;  %v7735_v15 = vpop.f32.mrb[41].mxu0 }
0x1303   : > { %v5713_v29 = vpop.f32.mrb[42].mxu0 }
0x1304   : > { %v5716_v49 = vsub.f32 0.0, %v5711_v8  ;;  %v7736_v50 = vpop.f32.mrb[43].mxu0 }
0x1306   : > { %v5717_v18 = vmul.f32 1.442695, %v5716_v49 }
0x1308   : > { %8216 = vpow2.f32 %v5717_v18 }
0x1312   : > { %v8217_v19 = vpop.eup %8216 }
0x1313   : > { %v5719_v33 = vadd.f32 1.0, %v8217_v19 }
0x1315   : > { %8218 = vrcp.f32 %v5719_v33 }
0x131f   : > { %v8219_v44 = vpop.eup %8218 }
0x1320   : > { %v5729_v46 = vrot.slane %v8219_v44, %v5728_v55 }
0x1322   : > { %v5730_v23 = vcombine.high %v5729_v46, %v5729_v46  ;;  %v5737_v6 = vrot.slane %v5729_v46, %v5728_v55 }
0x1324   : > { %v5744_v27 = vrot.slane %v5730_v23, %v5728_v55  ;;  %v5748_v56 = vrot.slane %v5737_v6, %v8736_v34 }
0x1326   : > { %v5752_v11 = vrot.slane %v5744_v27, %v8736_v34  ;;  %v5755_v47 = vmul.f32 %v5748_v56, %v10588_v54  ;;  %v5756_v31 = vmul.f32 %v5748_v56, %v10591_v10  ;;  %v5790_v10 = vrot.slane %v5786_v51, %v8736_v34 }
0x1328   : > { %v5757_v12 = vmul.f32 %v5752_v11, %v10593_v28  ;;  %v5758_v14 = vmul.f32 %v5752_v11, %v10601_v24  ;;  %v5759_v9 = vadd.f32 %v5755_v47, %v10923_v1  ;;  %v5760_v57 = vadd.f32 %v5756_v31, %v10924_v58 }
0x1329   : > { %v5798_v24 = vrot.slane %v5786_v51, %v8740_v62 }
0x132a   : > { %v5761_v40 = vadd.f32 %v5757_v12, %v10925_v39  ;;  %v5762_v0 = vadd.f32 %v5758_v14, %v10926_v2  ;;  %v5763_v54 = vmax.f32 %v5759_v9, 0.0  ;;  %v5764_v63 = vmax.f32 %v5760_v57, 0.0  ;;  %v10927_v14 = vld [vmem:[#allocation21_spill] sm:$0xff]  ;;  %v6880_v2 = vld [vmem:[%s10930_s6 + $0xf0] sm:$0xff] (%p88_p0) }
0x132b   :  { %v8313_v39 = vmov (%p88_p0), 0.0  }
0x132c   : > { %v5765_v45 = vmax.f32 %v5761_v40, 0.0  ;;  %v5766_v17 = vmax.f32 %v5762_v0, 0.0  ;;  %v5773_v41 = vmul.f32 %v5772_v38, %v5763_v54  ;;  %v5774_v28 = vmul.f32 %v5772_v38, %v5764_v63  ;;  %7753 = vmatprep.subr.bf16.mxu0 (%p88_p0), %v8313_v39  ;;  %v8221_v40 = vld [vmem:[%s10750_s18 + $0x158] sm:$0xff] (%p88_p0)   ;;  %7765 = vmatprep.mubr.msk.bf16.mxu0 (%p88_p0), %vm8314_vm3, %v8313_v39  ;;  %v6882_v54 = vld [vmem:[%s10749_s17 + $0xe] sm:$0x3] (%p88_p0) }
0x132d   :  { %v6881_v0 = vld [vmem:[%s10930_s6 + $0xf8] sm:$0xff] (%p88_p0)  ;;  %v5939_v63 = vrot.slane (%p88_p0), %v6882_v54, %v8736_v34  ;;  %v8224_v34 = vld [vmem:[%s10750_s18 + $0x170] sm:$0xff] (%p88_p0)  }
0x132e   : > { %v5775_v22 = vmul.f32 %v5772_v38, %v5765_v45  ;;  %v5776_v48 = vmul.f32 %v5772_v38, %v5766_v17  ;;  %v5781_v20 = vadd.f32 %v5780_v26, %v5773_v41   ;;  %v5782_v19 = vadd.f32 %v5780_v26, %v5774_v28   ;;  %v8223_v45 = vld [vmem:[%s10750_s18 + $0x168] sm:$0xff] (%p88_p0)  }
0x132f   :  { %v5942_v28 = vmul.f32 (%p88_p0), %v6880_v2, %v5939_v63 }
0x1330   : > { %v5783_v18 = vadd.f32 %v5780_v26, %v5775_v22   ;;  %v5784_v17 = vadd.f32 %v5780_v26, %v5776_v48   ;;  %v5791_v13 = vmul.f32 %v5790_v10, %v5781_v20  ;;  %v5792_v42 = vmul.f32 %v5790_v10, %v5782_v19  ;;  %v8220_v26 = vld [vmem:[%s10750_s18 + $0x150] sm:$0xff] (%p88_p0)   ;;  %v8222_v20 = vld [vmem:[%s10750_s18 + $0x160] sm:$0xff] (%p88_p0)   ;;  %v6879_v19 = vld [vmem:[%s10930_s6 + $0xe8] sm:$0xff] (%p88_p0) }
0x1331   :  { %7754 = vmatpush3.bf16.msra.mxu0 (%p88_p0), %v8220_v26  ;;  %v5941_v41 = vmul.f32 (%p88_p0), %v6879_v19, %v5939_v63 }
0x1332   : > { %v5793_v36 = vmul.f32 %v5790_v10, %v5783_v18  ;;  %v5794_v59 = vmul.f32 %v5790_v10, %v5784_v17  ;;  %v5799_v3 = vadd.f32 %v5798_v24, %v5791_v13  ;;  %v5800_v53 = vadd.f32 %v5798_v24, %v5792_v42  ;;  %7755 = vmatprep.subr.bf16.mxu0 (%p88_p0), %v8313_v39  ;;  %v6878_v18 = vld [vmem:[%s10930_s6 + $0xe0] sm:$0xff] (%p88_p0) }
0x1333   :  { %v5947_v10 = vrot.slane (%p88_p0), %v6882_v54, %v8740_v62  ;;  %v5940_v17 = vmul.f32 (%p88_p0), %v6878_v18, %v5939_v63 }
0x1334   : > { %v5801_v43 = vadd.f32 %v5798_v24, %v5793_v36  ;;  %v5802_v61 = vadd.f32 %v5798_v24, %v5794_v59  ;;  %v5803_v25 = vmax.f32 %v5799_v3, 0.0  ;;  %v5804_v60 = vmax.f32 %v5800_v53, 0.0 }
0x1335   :  { %7756 = vmatpush3.bf16.msra.mxu0 (%p88_p0), %v8221_v40  ;;  %v5943_v24 = vmul.f32 (%p88_p0), %v6881_v0, %v5939_v63  ;;  %v5948_v22 = vadd.f32 (%p88_p0), %v5947_v10, %v5940_v17  ;;  %v5949_v48 = vadd.f32 (%p88_p0), %v5947_v10, %v5941_v41  ;;  %v5950_v13 = vadd.f32 (%p88_p0), %v5947_v10, %v5942_v28 }
0x1336   : > { %v5805_v4 = vmax.f32 %v5801_v43, 0.0  ;;  %v5806_v32 = vmax.f32 %v5802_v61, 0.0  ;;  %v5807_v5 = vsel %vm166_vm0, %v5803_v25, 0.0  ;;  %v5808_v16 = vsel %vm166_vm0, %v5804_v60, 0.0  ;;  %7757 = vmatprep.subr.bf16.mxu0 (%p88_p0), %v8313_v39 }
0x1337   : > { %v5809_v52 = vadd.f32 %v5808_v16, %v5807_v5  ;;  %v5951_v42 = vadd.f32 (%p88_p0), %v5947_v10, %v5943_v24  ;;  %v5952_v62 = vmax.f32 (%p88_p0), %v5948_v22, 0.0  ;;  %v5953_v36 = vmax.f32 (%p88_p0), %v5949_v48, 0.0 }
0x1338   : > { %v5816_v21 = vsel %vm166_vm0, %v5805_v4, 0.0  ;;  %v5817_v8 = vsel %vm166_vm0, %v5806_v32, 0.0  ;;  %v5954_v59 = vmax.f32 (%p88_p0), %v5950_v13, 0.0  ;;  %v8225_v32 = vld [vmem:[%s10750_s18 + $0x178] sm:$0xff] (%p88_p0)  }
0x1339   : > { %v5810_v15 = vrot.slane %v5809_v52, 4  ;;  %v5818_v29 = vadd.f32 %v5817_v8, %v5816_v21  ;;  %7758 = vmatpush3.bf16.msra.mxu0 (%p88_p0), %v8222_v20  ;;  %v5955_v3 = vmax.f32 (%p88_p0), %v5951_v42, 0.0  ;;  %v5957_v53 = vsel (%p88_p0), %vm166_vm0, %v5952_v62, 0.0 }
0x133a   :  { %7759 = vmatprep.subr.bf16.mxu0 (%p88_p0), %v8313_v39  ;;  %v5958_v43 = vsel (%p88_p0), %vm166_vm0, %v5953_v36, 0.0  ;;  %v5966_v61 = vsel (%p88_p0), %vm166_vm0, %v5954_v59, 0.0 }
0x133b   : > { %v5811_v49 = vadd.f32 %v5810_v15, %v5809_v52  ;;  %v5819_v50 = vrot.slane %v5818_v29, 4  ;;  %v5967_v25 = vsel (%p88_p0), %vm166_vm0, %v5955_v3, 0.0  ;;  %v5959_v60 = vadd.f32 (%p88_p0), %v5958_v43, %v5957_v53 }
0x133c   :  { %v5968_v4 = vadd.f32 (%p88_p0), %v5967_v25, %v5966_v61 }
0x133d   : > { %v5812_v33 = vrot.slane %v5811_v49, 2  ;;  %v5820_v7 = vadd.f32 %v5819_v50, %v5818_v29  ;;  %7760 = vmatpush3.bf16.msra.mxu0 (%p88_p0), %v8223_v45  ;;  %v5960_v5 = vrot.slane (%p88_p0), %v5959_v60, 4 }
0x133e   :  { %7761 = vmatprep.subr.bf16.mxu0 (%p88_p0), %v8313_v39 }
0x133f   : > { %v5813_v37 = vadd.f32 %v5812_v33, %v5811_v49  ;;  %v5821_v35 = vrot.slane %v5820_v7, 2  ;;  %v5961_v52 = vadd.f32 (%p88_p0), %v5960_v5, %v5959_v60 }
0x1341   : > { %v5814_v55 = vrot.slane %v5813_v37, 1  ;;  %v5822_v44 = vadd.f32 %v5821_v35, %v5820_v7  ;;  %7762 = vmatpush3.bf16.msra.mxu0 (%p88_p0), %v8224_v34  ;;  %v5962_v8 = vrot.slane (%p88_p0), %v5961_v52, 2 }
0x1342   :  { %7763 = vmatprep.subr.bf16.mxu0 (%p88_p0), %v8313_v39 }
0x1343   : > { %v5815_v46 = vadd.f32 %v5814_v55, %v5813_v37  ;;  %v5823_v23 = vrot.slane %v5822_v44, 1  ;;  %v5963_v29 = vadd.f32 (%p88_p0), %v5962_v8, %v5961_v52 }
0x1345   : > { %v5824_v6 = vadd.f32 %v5823_v23, %v5822_v44  ;;  %v5825_v30 = vmul.f32 0.0625, %v5815_v46  ;;  %7764 = vmatpush3.bf16.msra.mxu0 (%p88_p0), %v8225_v32  ;;  %v5964_v50 = vrot.slane (%p88_p0), %v5963_v29, 1 }
0x1347   : > { %v5826_v27 = vmul.f32 0.0625, %v5824_v6  ;;  %v5841_v56 = vpack.c.bf16 %v5825_v30, %v5825_v30  ;;  %v5965_v7 = vadd.f32 (%p88_p0), %v5964_v50, %v5963_v29 }
0x1349   : > { %v5842_v11 = vpack.c.bf16 %v5826_v27, %v5826_v27  ;;  %v5845_v47 = vunpack.c.l.b16 %v5841_v56  ;;  %v5976_v35 = vmul.f32 (%p88_p0), 0.0625, %v5965_v7 }
0x134b   : > { %v5846_v31 = vunpack.c.l.b16 %v5842_v11  ;;  %v5991_v44 = vpack.c.bf16 (%p88_p0), %v5976_v35, %v5976_v35  ;;  %v6902_v11 = vld [vmem:[%s10751_s19] ss:$0 sm:$0xff] (%p88_p0) }
0x134d   : > { %v5847_v38 = vsel %vm5571_vm2, %v5846_v31, %v5845_v47  ;;  %v5995_v23 = vunpack.c.l.b16 (%p88_p0), %v5991_v44 }
0x134e   : > { %v5848_v51 = vpack.c.b16 %v5847_v38, %v5847_v38 }
0x1350   : > { %7750 = vmatmul.mubr.msk.bf16.vlgmr.msra.gmra.mrb[28].mxu1 %vm166_vm0, %v5848_v51 }
0x1421   :  { %90 = sbr.rel (!%p88_p0) target bundleno = 21 (0x15), region = 154 }
0x1423   : > { %v5922_v12 = vpop.f32.mrb[28].mxu1 }
0x1424   : > { %v10659_v16 = vadd.f32 %v10927_v14, %v5922_v12   ;;  %v7751_v9 = vpop.f32.mrb[29].mxu1 }
0x1425   : > { %v5925_v58 = vpop.f32.mrb[30].mxu1 }
0x1426   : > { %v10928_v1 = vmov %v10659_v16  ;;  %v7752_v57 = vpop.f32.mrb[31].mxu1 }
0x1427   : > { %v10929_v16 = vmov %v10928_v1 }
0x1428   :  { %v5969_v16 = vrot.slane %v5968_v4, 4 }
0x142a   :  { %v5970_v21 = vadd.f32 %v5969_v16, %v5968_v4 }
0x142c   :  { %v5971_v15 = vrot.slane %v5970_v21, 2 }
0x142e   :  { %v5972_v49 = vadd.f32 %v5971_v15, %v5970_v21 }
0x1430   :  { %v5973_v33 = vrot.slane %v5972_v49, 1 }
0x1432   :  { %v5974_v37 = vadd.f32 %v5973_v33, %v5972_v49 }
0x1434   :  { %v5977_v55 = vmul.f32 0.0625, %v5974_v37 }
0x1436   :  { %v5992_v46 = vpack.c.bf16 %v5977_v55, %v5977_v55 }
0x1438   :  { %v5996_v6 = vunpack.c.l.b16 %v5992_v46 }
0x143a   :  { %v5998_v30 = vsel %vm5571_vm2, %v5996_v6, %v5995_v23 }
0x143b   :  { %v5999_v27 = vpack.c.b16 %v5998_v30, %v5998_v30 }
0x143d   :  { %7766 = vmatmul.mubr.msk.bf16.vlgmr.msra.gmra.mrb[0].mxu0 %vm166_vm0, %v5999_v27 }
0x1510   :  { %v6073_v56 = vpop.f32.mrb[0].mxu0 }
0x1511   :  { %v6079_v47 = vadd.f32 %v6073_v56, %v10928_v1  ;;  %v7767_v31 = vpop.f32.mrb[1].mxu0 }
0x1512   :  { %v6076_v38 = vpop.f32.mrb[2].mxu0 }
0x1513   :  { %v7768_v51 = vpop.f32.mrb[3].mxu0  ;;  %v6087_v12 = vadd.f32 %v6902_v11, %v6079_v47 }
0x1515   :  { %6089 = vst.msk [vmem:[#allocation2] sm:$0x3] %vm6088_vm4, %v6087_v12 }
0x1516   :  { %8237 = shalt.err (!%p8234_p5)
}
0x1517   :  { %s8238_s30 = scalar_lea.hbm %s10752_s20, 32 }
0x1518   :  { %p8239_p6 = scmp.ne.s32.totalorder %s10752_s20, %s8238_s30  ;;  %p8242_p7 = scmp.lt.u32.totalorder %s8238_s30, %s10752_s20 }
0x151a   :  { %p8244_p8 = pnand %p8242_p7, %p8239_p6 }
0x151c   :  { %8247 = shalt.err (!%p8244_p8)
}
0x151d   :  { %6099 = dma.vmem_to_hbm [thread:$0]  %s6097_s22, 32, %s10752_s20, [#allocation3]  }
0x151e   :  { %8272 = dma.done.wait [#allocation3], 32  }
0x151f   :  { %8273 = vsyncadd [#allocation3], 4294967264 }
0x1520   :  { %6103 = vsyncpa [#allocation3], 1 }

</bundles_post_ra>
